<compile_context>
chip_gen: v5e
topology: v5e:2x2
jax: 0.10.0
libtpu: 0.0.40
codegen_flags: <defaults>
</compile_context>

<pallas_src>
from functools import partial

import numpy as np
import jax
import jax.numpy as jnp
from jax.experimental import pallas as pl
from jax.experimental.pallas import tpu as pltpu

LAYER_TOKENS = ['conv', 'relu', 'batchnorm', 'tanh', 'sigmoid', 'fc', 'softmax',
                'residual', 'mobilenet', 'pool', '<PAD>', '<EOS>']
VOCAB_SIZE = len(LAYER_TOKENS)   # 12
VOCAB_PAD = 128                  # lane-dense head width (one full vreg of lanes)


# ----------------------------------------------------------------------------
# Pallas kernel: full forward pass (encoder + decoder + head) for one batch block.
# All operands are tiny and live entirely in VMEM.
# ----------------------------------------------------------------------------
def phase2_kernel(x_ref,                                    # [T, Bb, D_in]
                  wih_f_ref, whh_f_ref, b_f_ref,            # LSTM fwd : [D,4H],[H,4H],[1,4H]
                  wih_b_ref, b_b_ref,                       # LSTM bwd : [D,4H],[1,4H]
                  wih_g_ref, whh_g_ref, bih_g_ref, bhh_g_ref,  # GRU: [2H,3H],[H,3H],[1,3H],[1,3H]
                  wo_ref, bo_ref,                           # head: [H,Vp],[1,Vp]
                  out_ref,                                  # [max_len, Bb, Vp]
                  xg_scr,                                   # VMEM [T, Bb, 4H]
                  hs_scr):                                  # VMEM [max_len, Bb, H]
    T, Bb, D = x_ref.shape
    H = whh_f_ref.shape[0]
    L, _, Vp = out_ref.shape
    f32 = jnp.float32

    # ---- encoder (forward dir): hoisted input projection, one batched matmul ----
    x2 = x_ref[...].reshape(T * Bb, D)
    xg_scr[...] = (jnp.dot(x2, wih_f_ref[...], preferred_element_type=f32)
                   + b_f_ref[...]).reshape(T, Bb, 4 * H)

    whh_f = whh_f_ref[...]
    h = jnp.zeros((Bb, H), f32)
    c = jnp.zeros((Bb, H), f32)
    # Fully unrolled: T is a small compile-time constant; per-step inputs come
    # from VMEM scratch so the unroll keeps live ranges bounded.  With H=128
    # every gate slice below is 128-lane aligned (whole vregs, no lane shifts).
    for t in range(T):
        gates = xg_scr[t] + jnp.dot(h, whh_f, preferred_element_type=f32)   # [Bb, 4H]
        i = jax.nn.sigmoid(gates[:, 0 * H:1 * H])
        f = jax.nn.sigmoid(gates[:, 1 * H:2 * H])
        g = jnp.tanh(gates[:, 2 * H:3 * H])
        o = jax.nn.sigmoid(gates[:, 3 * H:4 * H])
        c = f * c + i * g
        h = o * jnp.tanh(c)
    h_fwd = h

    # ---- encoder (backward dir) ----
    # Only enc_out[:, -1, :] is consumed downstream; for the reversed scan that
    # is exactly one cell step on x[T-1] from the zero state (h0 = c0 = 0), so
    # the Whh term and the forget-gate contribution vanish.
    # NOTE: this shortcut breaks if the model is ever extended to consume the
    # full encoder output (e.g. attention) or variable-length/padded sequences.
    gates_b = (jnp.dot(x_ref[T - 1], wih_b_ref[...], preferred_element_type=f32)
               + b_b_ref[...])
    i_b = jax.nn.sigmoid(gates_b[:, 0 * H:1 * H])
    g_b = jnp.tanh(gates_b[:, 2 * H:3 * H])
    o_b = jax.nn.sigmoid(gates_b[:, 3 * H:4 * H])
    h_bwd = o_b * jnp.tanh(i_b * g_b)

    # ---- GRU decoder ----
    # Decoder input is the constant context concat(h_fwd, h_bwd) at every step:
    # fold the concat into two matmuls and hoist the whole input-gate term.
    xg = (jnp.dot(h_fwd, wih_g_ref[0:H, :], preferred_element_type=f32)
          + jnp.dot(h_bwd, wih_g_ref[H:2 * H, :], preferred_element_type=f32)
          + bih_g_ref[...])                                   # [Bb, 3H]
    xr = xg[:, 0 * H:1 * H]
    xz = xg[:, 1 * H:2 * H]
    xn = xg[:, 2 * H:3 * H]
    whh_g = whh_g_ref[...]
    bhh_g = bhh_g_ref[...]

    h = jnp.zeros((Bb, H), f32)
    for t in range(L):                                        # fully unrolled
        hg = jnp.dot(h, whh_g, preferred_element_type=f32) + bhh_g          # [Bb, 3H]
        r = jax.nn.sigmoid(xr + hg[:, 0 * H:1 * H])
        z = jax.nn.sigmoid(xz + hg[:, 1 * H:2 * H])
        n = jnp.tanh(xn + r * hg[:, 2 * H:3 * H])   # b_hn stays inside r*(.) (PyTorch GRU)
        h = (1.0 - z) * n + z * h
        hs_scr[t] = h

    # ---- head: one batched Linear + LogSoftmax over all decoder steps ----
    hs2 = hs_scr[...].reshape(L * Bb, H)
    logits = jnp.dot(hs2, wo_ref[...], preferred_element_type=f32) + bo_ref[...]  # [L*Bb, Vp]
    m = jnp.max(logits, axis=-1, keepdims=True)
    lse = m + jnp.log(jnp.sum(jnp.exp(logits - m), axis=-1, keepdims=True))
    out_ref[...] = (logits - lse).reshape(L, Bb, Vp)          # single lane-dense write


# ----------------------------------------------------------------------------
# One-time parameter layout prep (transposes, bias folds, 128-lane head padding)
# ----------------------------------------------------------------------------
def prepare_params(p, vocab_pad=VOCAB_PAD):
    H = p['lstm_whh_f'].shape[1]
    V = p['out_w'].shape[0]
    Vp = max(vocab_pad, V)
    wo = jnp.zeros((H, Vp), jnp.float32).at[:, :V].set(p['out_w'].T)
    # pad-lane bias is a large negative *finite* value so exp() underflows to exactly 0
    bo = jnp.full((1, Vp), -1e30, jnp.float32).at[0, :V].set(p['out_b'])
    return dict(
        wih_f=p['lstm_wih_f'].T.astype(jnp.float32),
        whh_f=p['lstm_whh_f'].T.astype(jnp.float32),
        b_f=(p['lstm_bih_f'] + p['lstm_bhh_f']).reshape(1, 4 * H).astype(jnp.float32),
        wih_b=p['lstm_wih_b'].T.astype(jnp.float32),
        b_b=(p['lstm_bih_b'] + p['lstm_bhh_b']).reshape(1, 4 * H).astype(jnp.float32),
        wih_g=p['gru_wih'].T.astype(jnp.float32),
        whh_g=p['gru_whh'].T.astype(jnp.float32),
        bih_g=p['gru_bih'].reshape(1, 3 * H).astype(jnp.float32),
        bhh_g=p['gru_bhh'].reshape(1, 3 * H).astype(jnp.float32),
        wo=wo, bo=bo,
    )


# ----------------------------------------------------------------------------
# Wrapper: grid over batch blocks (parallel -> v7x megacore), jitted.
# ----------------------------------------------------------------------------
@partial(jax.jit, static_argnames=('max_len', 'vocab'))
def phase2_forward(x, prep, max_len=50, vocab=VOCAB_SIZE):
    """x: [B, T, input_dim] float32 -> [B, max_len, vocab] log-probs."""
    B, T, D = x.shape
    H = prep['whh_f'].shape[0]
    Vp = prep['wo'].shape[1]

    Bb = min(B, 8)                       # one f32 sublane group per batch block
    assert B % Bb == 0, "batch must be a multiple of the batch block"
    grid = (B // Bb,)

    x_tm = jnp.transpose(x, (1, 0, 2)).astype(jnp.float32)    # [T, B, D] (time-major)

    weights = (prep['wih_f'], prep['whh_f'], prep['b_f'],
               prep['wih_b'], prep['b_b'],
               prep['wih_g'], prep['whh_g'], prep['bih_g'], prep['bhh_g'],
               prep['wo'], prep['bo'])

    in_specs = [pl.BlockSpec((T, Bb, D), lambda b: (0, b, 0))]
    in_specs += [pl.BlockSpec(w.shape, lambda b: (0, 0)) for w in weights]

    out_tm = pl.pallas_call(
        phase2_kernel,
        out_shape=jax.ShapeDtypeStruct((max_len, B, Vp), jnp.float32),
        grid=grid,
        in_specs=in_specs,
        out_specs=pl.BlockSpec((max_len, Bb, Vp), lambda b: (0, b, 0)),
        scratch_shapes=[pltpu.VMEM((T, Bb, 4 * H), jnp.float32),       # hoisted LSTM input gates
                        pltpu.VMEM((max_len, Bb, H), jnp.float32)],    # decoder hidden states
        compiler_params=pltpu.CompilerParams(
            dimension_semantics=("parallel",)),
    )(x_tm, *weights)

    # back to PyTorch convention [B, max_len, V]; drop the head padding lanes
    return jnp.transpose(out_tm[:, :, :vocab], (1, 0, 2))


# ----------------------------------------------------------------------------
# Deterministic parameter init (PyTorch-style uniform(-1/sqrt(H), 1/sqrt(H)))
# ----------------------------------------------------------------------------
def init_params(key, input_dim, hidden_dim):
    H, D, V = hidden_dim, input_dim, VOCAB_SIZE
    k = 1.0 / np.sqrt(H)
    shapes = {
        'lstm_wih_f': (4 * H, D), 'lstm_whh_f': (4 * H, H),
        'lstm_bih_f': (4 * H,),   'lstm_bhh_f': (4 * H,),
        'lstm_wih_b': (4 * H, D), 'lstm_whh_b': (4 * H, H),
        'lstm_bih_b': (4 * H,),   'lstm_bhh_b': (4 * H,),
        'gru_wih': (3 * H, 2 * H), 'gru_whh': (3 * H, H),
        'gru_bih': (3 * H,),       'gru_bhh': (3 * H,),
        'out_w': (V, H),           'out_b': (V,),
    }
    keys = jax.random.split(key, len(shapes))
    return {name: jax.random.uniform(kk, shp, jnp.float32, -k, k)
            for kk, (name, shp) in zip(keys, shapes.items())}


# ----------------------------------------------------------------------------
# Pure-JAX reference (literal transcription of the PyTorch forward)
# ----------------------------------------------------------------------------
def ref_forward(x, p, max_len=50):
    B, T, D = x.shape
    H = p['lstm_whh_f'].shape[1]

    def lstm_scan(x_seq, wih, whh, bih, bhh):
        h = jnp.zeros((B, H)); c = jnp.zeros((B, H)); outs = []
        for t in range(x_seq.shape[1]):
            gates = x_seq[:, t] @ wih.T + bih + h @ whh.T + bhh
            i, f, g, o = jnp.split(gates, 4, axis=-1)
            c = jax.nn.sigmoid(f) * c + jax.nn.sigmoid(i) * jnp.tanh(g)
            h = jax.nn.sigmoid(o) * jnp.tanh(c)
            outs.append(h)
        return jnp.stack(outs, axis=1)

    out_f = lstm_scan(x, p['lstm_wih_f'], p['lstm_whh_f'], p['lstm_bih_f'], p['lstm_bhh_f'])
    out_b = lstm_scan(x[:, ::-1], p['lstm_wih_b'], p['lstm_whh_b'],
                      p['lstm_bih_b'], p['lstm_bhh_b'])[:, ::-1]
    enc_out = jnp.concatenate([out_f, out_b], axis=-1)
    context = enc_out[:, -1, :]                                   # [B, 2H]

    h = jnp.zeros((B, H)); outs = []
    xg = context @ p['gru_wih'].T + p['gru_bih']
    for _ in range(max_len):
        hg = h @ p['gru_whh'].T + p['gru_bhh']
        r = jax.nn.sigmoid(xg[:, :H] + hg[:, :H])
        z = jax.nn.sigmoid(xg[:, H:2 * H] + hg[:, H:2 * H])
        n = jnp.tanh(xg[:, 2 * H:] + r * hg[:, 2 * H:])
        h = (1.0 - z) * n + z * h
        outs.append(h)
    dec = jnp.stack(outs, axis=1)
    logits = dec @ p['out_w'].T + p['out_b']
    return jax.nn.log_softmax(logits, axis=-1)


if __name__ == "__main__":
    # hidden_dim = 128 matches the module default and keeps all gate slices
    # vreg-aligned; B=8 fills one f32 sublane group.
    B, T, INPUT_DIM, HIDDEN_DIM, MAX_LEN = 8, 8, 10, 128, 8

    key = jax.random.PRNGKey(0)
    pkey, xkey = jax.random.split(key)
    params = init_params(pkey, INPUT_DIM, HIDDEN_DIM)
    prep = prepare_params(params)
    x = jax.random.normal(xkey, (B, T, INPUT_DIM), jnp.float32)

    out = jax.block_until_ready(phase2_forward(x, prep, max_len=MAX_LEN))

    with jax.default_matmul_precision("highest"):
        ref = jax.block_until_ready(ref_forward(x, params, max_len=MAX_LEN))

    assert out.shape == (B, MAX_LEN, VOCAB_SIZE), out.shape
    err = float(np.max(np.abs(np.asarray(out) - np.asarray(ref))))
    assert np.allclose(np.asarray(out), np.asarray(ref), atol=1e-3, rtol=1e-3), err
    # log-probs must normalize (padded head lanes contribute exactly 0)
    assert np.allclose(np.exp(np.asarray(out)).sum(-1), 1.0, atol=1e-4)

    print("KERNEL_OK")
</pallas_src>

<mosaic_0001>
module attributes {stable_mosaic.version = 11 : i64} {
  func.func @phase2_kernel(%arg0: i32, %arg1: memref<8x8x10xf32, #tpu.memory_space<vmem>>, %arg2: memref<10x512xf32, #tpu.memory_space<vmem>>, %arg3: memref<128x512xf32, #tpu.memory_space<vmem>>, %arg4: memref<1x512xf32, #tpu.memory_space<vmem>>, %arg5: memref<10x512xf32, #tpu.memory_space<vmem>>, %arg6: memref<1x512xf32, #tpu.memory_space<vmem>>, %arg7: memref<256x384xf32, #tpu.memory_space<vmem>>, %arg8: memref<128x384xf32, #tpu.memory_space<vmem>>, %arg9: memref<1x384xf32, #tpu.memory_space<vmem>>, %arg10: memref<1x384xf32, #tpu.memory_space<vmem>>, %arg11: memref<128x128xf32, #tpu.memory_space<vmem>>, %arg12: memref<1x128xf32, #tpu.memory_space<vmem>>, %arg13: memref<8x8x128xf32, #tpu.memory_space<vmem>>, %arg14: memref<8x8x512xf32, #tpu.memory_space<vmem>>, %arg15: memref<8x8x128xf32, #tpu.memory_space<vmem>>) attributes {dimension_semantics = [#tpu.dimension_semantics<parallel>], iteration_bounds = array<i64: 1>, scalar_prefetch = 0 : i64, scratch_operands = 2 : i64, tpu.core_type = #tpu.core_type<tc>, window_params = [{transform_indices = @transform_0, window_bounds = array<i64: 8, 8, 10>}, {pipeline_mode = #tpu.pipeline_mode<synchronous>, transform_indices = @transform_1, window_bounds = array<i64: 10, 512>}, {pipeline_mode = #tpu.pipeline_mode<synchronous>, transform_indices = @transform_2, window_bounds = array<i64: 128, 512>}, {pipeline_mode = #tpu.pipeline_mode<synchronous>, transform_indices = @transform_3, window_bounds = array<i64: 1, 512>}, {pipeline_mode = #tpu.pipeline_mode<synchronous>, transform_indices = @transform_4, window_bounds = array<i64: 10, 512>}, {pipeline_mode = #tpu.pipeline_mode<synchronous>, transform_indices = @transform_5, window_bounds = array<i64: 1, 512>}, {pipeline_mode = #tpu.pipeline_mode<synchronous>, transform_indices = @transform_6, window_bounds = array<i64: 256, 384>}, {pipeline_mode = #tpu.pipeline_mode<synchronous>, transform_indices = @transform_7, window_bounds = array<i64: 128, 384>}, {pipeline_mode = #tpu.pipeline_mode<synchronous>, transform_indices = @transform_8, window_bounds = array<i64: 1, 384>}, {pipeline_mode = #tpu.pipeline_mode<synchronous>, transform_indices = @transform_9, window_bounds = array<i64: 1, 384>}, {pipeline_mode = #tpu.pipeline_mode<synchronous>, transform_indices = @transform_10, window_bounds = array<i64: 128, 128>}, {pipeline_mode = #tpu.pipeline_mode<synchronous>, transform_indices = @transform_11, window_bounds = array<i64: 1, 128>}, {transform_indices = @transform_12, window_bounds = array<i64: 8, 8, 128>}]} {
    %c0 = arith.constant 0 : index
    %c0_0 = arith.constant 0 : index
    %c0_1 = arith.constant 0 : index
    %0 = vector.load %arg1[%c0, %c0_0, %c0_1] : memref<8x8x10xf32, #tpu.memory_space<vmem>>, vector<8x8x10xf32>
    %1 = vector.shape_cast %0 : vector<8x8x10xf32> to vector<64x10xf32>
    %c0_2 = arith.constant 0 : index
    %c0_3 = arith.constant 0 : index
    %2 = vector.load %arg2[%c0_2, %c0_3] : memref<10x512xf32, #tpu.memory_space<vmem>>, vector<10x512xf32>
    %cst = arith.constant dense<0.000000e+00> : vector<64x512xf32>
    %3 = tpu.matmul %1, %2, %cst {dimension_numbers = #tpu.dot_dimension_numbers<[1], [0], [0], [1], [0, 0, 1, 1], [], []>} : vector<64x10xf32>, vector<10x512xf32>, vector<64x512xf32> -> vector<64x512xf32>
    %c0_4 = arith.constant 0 : index
    %c0_5 = arith.constant 0 : index
    %4 = vector.load %arg4[%c0_4, %c0_5] : memref<1x512xf32, #tpu.memory_space<vmem>>, vector<1x512xf32>
    %5 = vector.broadcast %4 : vector<1x512xf32> to vector<64x512xf32>
    %6 = arith.addf %3, %5 : vector<64x512xf32>
    %7 = vector.shape_cast %6 : vector<64x512xf32> to vector<8x8x512xf32>
    %c0_6 = arith.constant 0 : index
    %c0_7 = arith.constant 0 : index
    %c0_8 = arith.constant 0 : index
    %8 = vector.load %arg14[%c0_6, %c0_7, %c0_8] : memref<8x8x512xf32, #tpu.memory_space<vmem>>, vector<8x8x512xf32>
    tpu.vector_store %arg14[%c0_6, %c0_7, %c0_8], %7 {strides = array<i32>} : memref<8x8x512xf32, #tpu.memory_space<vmem>>, vector<8x8x512xf32>,
    %c0_9 = arith.constant 0 : index
    %c0_10 = arith.constant 0 : index
    %9 = vector.load %arg3[%c0_9, %c0_10] : memref<128x512xf32, #tpu.memory_space<vmem>>, vector<128x512xf32>
    %cst_11 = arith.constant 0.000000e+00 : f32
    %10 = vector.broadcast %cst_11 : f32 to vector<8x128xf32>
    %cst_12 = arith.constant 0.000000e+00 : f32
    %11 = vector.broadcast %cst_12 : f32 to vector<8x128xf32>
    %c0_13 = arith.constant 0 : index
    %c0_14 = arith.constant 0 : index
    %c0_15 = arith.constant 0 : index
    %12 = vector.load %arg14[%c0_13, %c0_14, %c0_15] : memref<8x8x512xf32, #tpu.memory_space<vmem>>, vector<1x8x512xf32>
    %13 = vector.shape_cast %12 : vector<1x8x512xf32> to vector<8x512xf32>
    %cst_16 = arith.constant dense<0.000000e+00> : vector<8x512xf32>
    %14 = tpu.matmul %10, %9, %cst_16 {dimension_numbers = #tpu.dot_dimension_numbers<[1], [0], [0], [1], [0, 0, 1, 1], [], []>} : vector<8x128xf32>, vector<128x512xf32>, vector<8x512xf32> -> vector<8x512xf32>
    %15 = arith.addf %13, %14 : vector<8x512xf32>
    %16 = vector.extract_strided_slice %15 {offsets = [0, 0], sizes = [8, 128], strides = [1, 1]} : vector<8x512xf32> to vector<8x128xf32>
    %17 = arith.negf %16 : vector<8x128xf32>
    %18 = math.exp %17 : vector<8x128xf32>
    %cst_17 = arith.constant 1.000000e+00 : f32
    %19 = vector.broadcast %cst_17 : f32 to vector<8x128xf32>
    %20 = arith.addf %19, %18 : vector<8x128xf32>
    %21 = arith.divf %19, %20 : vector<8x128xf32>
    %22 = vector.extract_strided_slice %15 {offsets = [0, 128], sizes = [8, 128], strides = [1, 1]} : vector<8x512xf32> to vector<8x128xf32>
    %23 = arith.negf %22 : vector<8x128xf32>
    %24 = math.exp %23 : vector<8x128xf32>
    %cst_18 = arith.constant 1.000000e+00 : f32
    %25 = vector.broadcast %cst_18 : f32 to vector<8x128xf32>
    %26 = arith.addf %25, %24 : vector<8x128xf32>
    %27 = arith.divf %25, %26 : vector<8x128xf32>
    %28 = vector.extract_strided_slice %15 {offsets = [0, 256], sizes = [8, 128], strides = [1, 1]} : vector<8x512xf32> to vector<8x128xf32>
    %29 = math.tanh %28 : vector<8x128xf32>
    %30 = vector.extract_strided_slice %15 {offsets = [0, 384], sizes = [8, 128], strides = [1, 1]} : vector<8x512xf32> to vector<8x128xf32>
    %31 = arith.negf %30 : vector<8x128xf32>
    %32 = math.exp %31 : vector<8x128xf32>
    %cst_19 = arith.constant 1.000000e+00 : f32
    %33 = vector.broadcast %cst_19 : f32 to vector<8x128xf32>
    %34 = arith.addf %33, %32 : vector<8x128xf32>
    %35 = arith.divf %33, %34 : vector<8x128xf32>
    %36 = arith.mulf %27, %11 : vector<8x128xf32>
    %37 = arith.mulf %21, %29 : vector<8x128xf32>
    %38 = arith.addf %36, %37 : vector<8x128xf32>
    %39 = math.tanh %38 : vector<8x128xf32>
    %40 = arith.mulf %35, %39 : vector<8x128xf32>
    %c1 = arith.constant 1 : index
    %c0_20 = arith.constant 0 : index
    %c0_21 = arith.constant 0 : index
    %41 = vector.load %arg14[%c1, %c0_20, %c0_21] : memref<8x8x512xf32, #tpu.memory_space<vmem>>, vector<1x8x512xf32>
    %42 = vector.shape_cast %41 : vector<1x8x512xf32> to vector<8x512xf32>
    %cst_22 = arith.constant dense<0.000000e+00> : vector<8x512xf32>
    %43 = tpu.matmul %40, %9, %cst_22 {dimension_numbers = #tpu.dot_dimension_numbers<[1], [0], [0], [1], [0, 0, 1, 1], [], []>} : vector<8x128xf32>, vector<128x512xf32>, vector<8x512xf32> -> vector<8x512xf32>
    %44 = arith.addf %42, %43 : vector<8x512xf32>
    %45 = vector.extract_strided_slice %44 {offsets = [0, 0], sizes = [8, 128], strides = [1, 1]} : vector<8x512xf32> to vector<8x128xf32>
    %46 = arith.negf %45 : vector<8x128xf32>
    %47 = math.exp %46 : vector<8x128xf32>
    %cst_23 = arith.constant 1.000000e+00 : f32
    %48 = vector.broadcast %cst_23 : f32 to vector<8x128xf32>
    %49 = arith.addf %48, %47 : vector<8x128xf32>
    %50 = arith.divf %48, %49 : vector<8x128xf32>
    %51 = vector.extract_strided_slice %44 {offsets = [0, 128], sizes = [8, 128], strides = [1, 1]} : vector<8x512xf32> to vector<8x128xf32>
    %52 = arith.negf %51 : vector<8x128xf32>
    %53 = math.exp %52 : vector<8x128xf32>
    %cst_24 = arith.constant 1.000000e+00 : f32
    %54 = vector.broadcast %cst_24 : f32 to vector<8x128xf32>
    %55 = arith.addf %54, %53 : vector<8x128xf32>
    %56 = arith.divf %54, %55 : vector<8x128xf32>
    %57 = vector.extract_strided_slice %44 {offsets = [0, 256], sizes = [8, 128], strides = [1, 1]} : vector<8x512xf32> to vector<8x128xf32>
    %58 = math.tanh %57 : vector<8x128xf32>
    %59 = vector.extract_strided_slice %44 {offsets = [0, 384], sizes = [8, 128], strides = [1, 1]} : vector<8x512xf32> to vector<8x128xf32>
    %60 = arith.negf %59 : vector<8x128xf32>
    %61 = math.exp %60 : vector<8x128xf32>
    %cst_25 = arith.constant 1.000000e+00 : f32
    %62 = vector.broadcast %cst_25 : f32 to vector<8x128xf32>
    %63 = arith.addf %62, %61 : vector<8x128xf32>
    %64 = arith.divf %62, %63 : vector<8x128xf32>
    %65 = arith.mulf %56, %38 : vector<8x128xf32>
    %66 = arith.mulf %50, %58 : vector<8x128xf32>
    %67 = arith.addf %65, %66 : vector<8x128xf32>
    %68 = math.tanh %67 : vector<8x128xf32>
    %69 = arith.mulf %64, %68 : vector<8x128xf32>
    %c2 = arith.constant 2 : index
    %c0_26 = arith.constant 0 : index
    %c0_27 = arith.constant 0 : index
    %70 = vector.load %arg14[%c2, %c0_26, %c0_27] : memref<8x8x512xf32, #tpu.memory_space<vmem>>, vector<1x8x512xf32>
    %71 = vector.shape_cast %70 : vector<1x8x512xf32> to vector<8x512xf32>
    %cst_28 = arith.constant dense<0.000000e+00> : vector<8x512xf32>
    %72 = tpu.matmul %69, %9, %cst_28 {dimension_numbers = #tpu.dot_dimension_numbers<[1], [0], [0], [1], [0, 0, 1, 1], [], []>} : vector<8x128xf32>, vector<128x512xf32>, vector<8x512xf32> -> vector<8x512xf32>
    %73 = arith.addf %71, %72 : vector<8x512xf32>
    %74 = vector.extract_strided_slice %73 {offsets = [0, 0], sizes = [8, 128], strides = [1, 1]} : vector<8x512xf32> to vector<8x128xf32>
    %75 = arith.negf %74 : vector<8x128xf32>
    %76 = math.exp %75 : vector<8x128xf32>
    %cst_29 = arith.constant 1.000000e+00 : f32
    %77 = vector.broadcast %cst_29 : f32 to vector<8x128xf32>
    %78 = arith.addf %77, %76 : vector<8x128xf32>
    %79 = arith.divf %77, %78 : vector<8x128xf32>
    %80 = vector.extract_strided_slice %73 {offsets = [0, 128], sizes = [8, 128], strides = [1, 1]} : vector<8x512xf32> to vector<8x128xf32>
    %81 = arith.negf %80 : vector<8x128xf32>
    %82 = math.exp %81 : vector<8x128xf32>
    %cst_30 = arith.constant 1.000000e+00 : f32
    %83 = vector.broadcast %cst_30 : f32 to vector<8x128xf32>
    %84 = arith.addf %83, %82 : vector<8x128xf32>
    %85 = arith.divf %83, %84 : vector<8x128xf32>
    %86 = vector.extract_strided_slice %73 {offsets = [0, 256], sizes = [8, 128], strides = [1, 1]} : vector<8x512xf32> to vector<8x128xf32>
    %87 = math.tanh %86 : vector<8x128xf32>
    %88 = vector.extract_strided_slice %73 {offsets = [0, 384], sizes = [8, 128], strides = [1, 1]} : vector<8x512xf32> to vector<8x128xf32>
    %89 = arith.negf %88 : vector<8x128xf32>
    %90 = math.exp %89 : vector<8x128xf32>
    %cst_31 = arith.constant 1.000000e+00 : f32
    %91 = vector.broadcast %cst_31 : f32 to vector<8x128xf32>
    %92 = arith.addf %91, %90 : vector<8x128xf32>
    %93 = arith.divf %91, %92 : vector<8x128xf32>
    %94 = arith.mulf %85, %67 : vector<8x128xf32>
    %95 = arith.mulf %79, %87 : vector<8x128xf32>
    %96 = arith.addf %94, %95 : vector<8x128xf32>
    %97 = math.tanh %96 : vector<8x128xf32>
    %98 = arith.mulf %93, %97 : vector<8x128xf32>
    %c3 = arith.constant 3 : index
    %c0_32 = arith.constant 0 : index
    %c0_33 = arith.constant 0 : index
    %99 = vector.load %arg14[%c3, %c0_32, %c0_33] : memref<8x8x512xf32, #tpu.memory_space<vmem>>, vector<1x8x512xf32>
    %100 = vector.shape_cast %99 : vector<1x8x512xf32> to vector<8x512xf32>
    %cst_34 = arith.constant dense<0.000000e+00> : vector<8x512xf32>
    %101 = tpu.matmul %98, %9, %cst_34 {dimension_numbers = #tpu.dot_dimension_numbers<[1], [0], [0], [1], [0, 0, 1, 1], [], []>} : vector<8x128xf32>, vector<128x512xf32>, vector<8x512xf32> -> vector<8x512xf32>
    %102 = arith.addf %100, %101 : vector<8x512xf32>
    %103 = vector.extract_strided_slice %102 {offsets = [0, 0], sizes = [8, 128], strides = [1, 1]} : vector<8x512xf32> to vector<8x128xf32>
    %104 = arith.negf %103 : vector<8x128xf32>
    %105 = math.exp %104 : vector<8x128xf32>
    %cst_35 = arith.constant 1.000000e+00 : f32
    %106 = vector.broadcast %cst_35 : f32 to vector<8x128xf32>
    %107 = arith.addf %106, %105 : vector<8x128xf32>
    %108 = arith.divf %106, %107 : vector<8x128xf32>
    %109 = vector.extract_strided_slice %102 {offsets = [0, 128], sizes = [8, 128], strides = [1, 1]} : vector<8x512xf32> to vector<8x128xf32>
    %110 = arith.negf %109 : vector<8x128xf32>
    %111 = math.exp %110 : vector<8x128xf32>
    %cst_36 = arith.constant 1.000000e+00 : f32
    %112 = vector.broadcast %cst_36 : f32 to vector<8x128xf32>
    %113 = arith.addf %112, %111 : vector<8x128xf32>
    %114 = arith.divf %112, %113 : vector<8x128xf32>
    %115 = vector.extract_strided_slice %102 {offsets = [0, 256], sizes = [8, 128], strides = [1, 1]} : vector<8x512xf32> to vector<8x128xf32>
    %116 = math.tanh %115 : vector<8x128xf32>
    %117 = vector.extract_strided_slice %102 {offsets = [0, 384], sizes = [8, 128], strides = [1, 1]} : vector<8x512xf32> to vector<8x128xf32>
    %118 = arith.negf %117 : vector<8x128xf32>
    %119 = math.exp %118 : vector<8x128xf32>
    %cst_37 = arith.constant 1.000000e+00 : f32
    %120 = vector.broadcast %cst_37 : f32 to vector<8x128xf32>
    %121 = arith.addf %120, %119 : vector<8x128xf32>
    %122 = arith.divf %120, %121 : vector<8x128xf32>
    %123 = arith.mulf %114, %96 : vector<8x128xf32>
    %124 = arith.mulf %108, %116 : vector<8x128xf32>
    %125 = arith.addf %123, %124 : vector<8x128xf32>
    %126 = math.tanh %125 : vector<8x128xf32>
    %127 = arith.mulf %122, %126 : vector<8x128xf32>
    %c4 = arith.constant 4 : index
    %c0_38 = arith.constant 0 : index
    %c0_39 = arith.constant 0 : index
    %128 = vector.load %arg14[%c4, %c0_38, %c0_39] : memref<8x8x512xf32, #tpu.memory_space<vmem>>, vector<1x8x512xf32>
    %129 = vector.shape_cast %128 : vector<1x8x512xf32> to vector<8x512xf32>
    %cst_40 = arith.constant dense<0.000000e+00> : vector<8x512xf32>
    %130 = tpu.matmul %127, %9, %cst_40 {dimension_numbers = #tpu.dot_dimension_numbers<[1], [0], [0], [1], [0, 0, 1, 1], [], []>} : vector<8x128xf32>, vector<128x512xf32>, vector<8x512xf32> -> vector<8x512xf32>
    %131 = arith.addf %129, %130 : vector<8x512xf32>
    %132 = vector.extract_strided_slice %131 {offsets = [0, 0], sizes = [8, 128], strides = [1, 1]} : vector<8x512xf32> to vector<8x128xf32>
    %133 = arith.negf %132 : vector<8x128xf32>
    %134 = math.exp %133 : vector<8x128xf32>
    %cst_41 = arith.constant 1.000000e+00 : f32
    %135 = vector.broadcast %cst_41 : f32 to vector<8x128xf32>
    %136 = arith.addf %135, %134 : vector<8x128xf32>
    %137 = arith.divf %135, %136 : vector<8x128xf32>
    %138 = vector.extract_strided_slice %131 {offsets = [0, 128], sizes = [8, 128], strides = [1, 1]} : vector<8x512xf32> to vector<8x128xf32>
    %139 = arith.negf %138 : vector<8x128xf32>
    %140 = math.exp %139 : vector<8x128xf32>
    %cst_42 = arith.constant 1.000000e+00 : f32
    %141 = vector.broadcast %cst_42 : f32 to vector<8x128xf32>
    %142 = arith.addf %141, %140 : vector<8x128xf32>
    %143 = arith.divf %141, %142 : vector<8x128xf32>
    %144 = vector.extract_strided_slice %131 {offsets = [0, 256], sizes = [8, 128], strides = [1, 1]} : vector<8x512xf32> to vector<8x128xf32>
    %145 = math.tanh %144 : vector<8x128xf32>
    %146 = vector.extract_strided_slice %131 {offsets = [0, 384], sizes = [8, 128], strides = [1, 1]} : vector<8x512xf32> to vector<8x128xf32>
    %147 = arith.negf %146 : vector<8x128xf32>
    %148 = math.exp %147 : vector<8x128xf32>
    %cst_43 = arith.constant 1.000000e+00 : f32
    %149 = vector.broadcast %cst_43 : f32 to vector<8x128xf32>
    %150 = arith.addf %149, %148 : vector<8x128xf32>
    %151 = arith.divf %149, %150 : vector<8x128xf32>
    %152 = arith.mulf %143, %125 : vector<8x128xf32>
    %153 = arith.mulf %137, %145 : vector<8x128xf32>
    %154 = arith.addf %152, %153 : vector<8x128xf32>
    %155 = math.tanh %154 : vector<8x128xf32>
    %156 = arith.mulf %151, %155 : vector<8x128xf32>
    %c5 = arith.constant 5 : index
    %c0_44 = arith.constant 0 : index
    %c0_45 = arith.constant 0 : index
    %157 = vector.load %arg14[%c5, %c0_44, %c0_45] : memref<8x8x512xf32, #tpu.memory_space<vmem>>, vector<1x8x512xf32>
    %158 = vector.shape_cast %157 : vector<1x8x512xf32> to vector<8x512xf32>
    %cst_46 = arith.constant dense<0.000000e+00> : vector<8x512xf32>
    %159 = tpu.matmul %156, %9, %cst_46 {dimension_numbers = #tpu.dot_dimension_numbers<[1], [0], [0], [1], [0, 0, 1, 1], [], []>} : vector<8x128xf32>, vector<128x512xf32>, vector<8x512xf32> -> vector<8x512xf32>
    %160 = arith.addf %158, %159 : vector<8x512xf32>
    %161 = vector.extract_strided_slice %160 {offsets = [0, 0], sizes = [8, 128], strides = [1, 1]} : vector<8x512xf32> to vector<8x128xf32>
    %162 = arith.negf %161 : vector<8x128xf32>
    %163 = math.exp %162 : vector<8x128xf32>
    %cst_47 = arith.constant 1.000000e+00 : f32
    %164 = vector.broadcast %cst_47 : f32 to vector<8x128xf32>
    %165 = arith.addf %164, %163 : vector<8x128xf32>
    %166 = arith.divf %164, %165 : vector<8x128xf32>
    %167 = vector.extract_strided_slice %160 {offsets = [0, 128], sizes = [8, 128], strides = [1, 1]} : vector<8x512xf32> to vector<8x128xf32>
    %168 = arith.negf %167 : vector<8x128xf32>
    %169 = math.exp %168 : vector<8x128xf32>
    %cst_48 = arith.constant 1.000000e+00 : f32
    %170 = vector.broadcast %cst_48 : f32 to vector<8x128xf32>
    %171 = arith.addf %170, %169 : vector<8x128xf32>
    %172 = arith.divf %170, %171 : vector<8x128xf32>
    %173 = vector.extract_strided_slice %160 {offsets = [0, 256], sizes = [8, 128], strides = [1, 1]} : vector<8x512xf32> to vector<8x128xf32>
    %174 = math.tanh %173 : vector<8x128xf32>
    %175 = vector.extract_strided_slice %160 {offsets = [0, 384], sizes = [8, 128], strides = [1, 1]} : vector<8x512xf32> to vector<8x128xf32>
    %176 = arith.negf %175 : vector<8x128xf32>
    %177 = math.exp %176 : vector<8x128xf32>
    %cst_49 = arith.constant 1.000000e+00 : f32
    %178 = vector.broadcast %cst_49 : f32 to vector<8x128xf32>
    %179 = arith.addf %178, %177 : vector<8x128xf32>
    %180 = arith.divf %178, %179 : vector<8x128xf32>
    %181 = arith.mulf %172, %154 : vector<8x128xf32>
    %182 = arith.mulf %166, %174 : vector<8x128xf32>
    %183 = arith.addf %181, %182 : vector<8x128xf32>
    %184 = math.tanh %183 : vector<8x128xf32>
    %185 = arith.mulf %180, %184 : vector<8x128xf32>
    %c6 = arith.constant 6 : index
    %c0_50 = arith.constant 0 : index
    %c0_51 = arith.constant 0 : index
    %186 = vector.load %arg14[%c6, %c0_50, %c0_51] : memref<8x8x512xf32, #tpu.memory_space<vmem>>, vector<1x8x512xf32>
    %187 = vector.shape_cast %186 : vector<1x8x512xf32> to vector<8x512xf32>
    %cst_52 = arith.constant dense<0.000000e+00> : vector<8x512xf32>
    %188 = tpu.matmul %185, %9, %cst_52 {dimension_numbers = #tpu.dot_dimension_numbers<[1], [0], [0], [1], [0, 0, 1, 1], [], []>} : vector<8x128xf32>, vector<128x512xf32>, vector<8x512xf32> -> vector<8x512xf32>
    %189 = arith.addf %187, %188 : vector<8x512xf32>
    %190 = vector.extract_strided_slice %189 {offsets = [0, 0], sizes = [8, 128], strides = [1, 1]} : vector<8x512xf32> to vector<8x128xf32>
    %191 = arith.negf %190 : vector<8x128xf32>
    %192 = math.exp %191 : vector<8x128xf32>
    %cst_53 = arith.constant 1.000000e+00 : f32
    %193 = vector.broadcast %cst_53 : f32 to vector<8x128xf32>
    %194 = arith.addf %193, %192 : vector<8x128xf32>
    %195 = arith.divf %193, %194 : vector<8x128xf32>
    %196 = vector.extract_strided_slice %189 {offsets = [0, 128], sizes = [8, 128], strides = [1, 1]} : vector<8x512xf32> to vector<8x128xf32>
    %197 = arith.negf %196 : vector<8x128xf32>
    %198 = math.exp %197 : vector<8x128xf32>
    %cst_54 = arith.constant 1.000000e+00 : f32
    %199 = vector.broadcast %cst_54 : f32 to vector<8x128xf32>
    %200 = arith.addf %199, %198 : vector<8x128xf32>
    %201 = arith.divf %199, %200 : vector<8x128xf32>
    %202 = vector.extract_strided_slice %189 {offsets = [0, 256], sizes = [8, 128], strides = [1, 1]} : vector<8x512xf32> to vector<8x128xf32>
    %203 = math.tanh %202 : vector<8x128xf32>
    %204 = vector.extract_strided_slice %189 {offsets = [0, 384], sizes = [8, 128], strides = [1, 1]} : vector<8x512xf32> to vector<8x128xf32>
    %205 = arith.negf %204 : vector<8x128xf32>
    %206 = math.exp %205 : vector<8x128xf32>
    %cst_55 = arith.constant 1.000000e+00 : f32
    %207 = vector.broadcast %cst_55 : f32 to vector<8x128xf32>
    %208 = arith.addf %207, %206 : vector<8x128xf32>
    %209 = arith.divf %207, %208 : vector<8x128xf32>
    %210 = arith.mulf %201, %183 : vector<8x128xf32>
    %211 = arith.mulf %195, %203 : vector<8x128xf32>
    %212 = arith.addf %210, %211 : vector<8x128xf32>
    %213 = math.tanh %212 : vector<8x128xf32>
    %214 = arith.mulf %209, %213 : vector<8x128xf32>
    %c7 = arith.constant 7 : index
    %c0_56 = arith.constant 0 : index
    %c0_57 = arith.constant 0 : index
    %215 = vector.load %arg14[%c7, %c0_56, %c0_57] : memref<8x8x512xf32, #tpu.memory_space<vmem>>, vector<1x8x512xf32>
    %216 = vector.shape_cast %215 : vector<1x8x512xf32> to vector<8x512xf32>
    %cst_58 = arith.constant dense<0.000000e+00> : vector<8x512xf32>
    %217 = tpu.matmul %214, %9, %cst_58 {dimension_numbers = #tpu.dot_dimension_numbers<[1], [0], [0], [1], [0, 0, 1, 1], [], []>} : vector<8x128xf32>, vector<128x512xf32>, vector<8x512xf32> -> vector<8x512xf32>
    %218 = arith.addf %216, %217 : vector<8x512xf32>
    %219 = vector.extract_strided_slice %218 {offsets = [0, 0], sizes = [8, 128], strides = [1, 1]} : vector<8x512xf32> to vector<8x128xf32>
    %220 = arith.negf %219 : vector<8x128xf32>
    %221 = math.exp %220 : vector<8x128xf32>
    %cst_59 = arith.constant 1.000000e+00 : f32
    %222 = vector.broadcast %cst_59 : f32 to vector<8x128xf32>
    %223 = arith.addf %222, %221 : vector<8x128xf32>
    %224 = arith.divf %222, %223 : vector<8x128xf32>
    %225 = vector.extract_strided_slice %218 {offsets = [0, 128], sizes = [8, 128], strides = [1, 1]} : vector<8x512xf32> to vector<8x128xf32>
    %226 = arith.negf %225 : vector<8x128xf32>
    %227 = math.exp %226 : vector<8x128xf32>
    %cst_60 = arith.constant 1.000000e+00 : f32
    %228 = vector.broadcast %cst_60 : f32 to vector<8x128xf32>
    %229 = arith.addf %228, %227 : vector<8x128xf32>
    %230 = arith.divf %228, %229 : vector<8x128xf32>
    %231 = vector.extract_strided_slice %218 {offsets = [0, 256], sizes = [8, 128], strides = [1, 1]} : vector<8x512xf32> to vector<8x128xf32>
    %232 = math.tanh %231 : vector<8x128xf32>
    %233 = vector.extract_strided_slice %218 {offsets = [0, 384], sizes = [8, 128], strides = [1, 1]} : vector<8x512xf32> to vector<8x128xf32>
    %234 = arith.negf %233 : vector<8x128xf32>
    %235 = math.exp %234 : vector<8x128xf32>
    %cst_61 = arith.constant 1.000000e+00 : f32
    %236 = vector.broadcast %cst_61 : f32 to vector<8x128xf32>
    %237 = arith.addf %236, %235 : vector<8x128xf32>
    %238 = arith.divf %236, %237 : vector<8x128xf32>
    %239 = arith.mulf %230, %212 : vector<8x128xf32>
    %240 = arith.mulf %224, %232 : vector<8x128xf32>
    %241 = arith.addf %239, %240 : vector<8x128xf32>
    %242 = math.tanh %241 : vector<8x128xf32>
    %243 = arith.mulf %238, %242 : vector<8x128xf32>
    %c7_62 = arith.constant 7 : index
    %c0_63 = arith.constant 0 : index
    %c0_64 = arith.constant 0 : index
    %244 = vector.load %arg1[%c7_62, %c0_63, %c0_64] : memref<8x8x10xf32, #tpu.memory_space<vmem>>, vector<1x8x10xf32>
    %245 = vector.shape_cast %244 : vector<1x8x10xf32> to vector<8x10xf32>
    %c0_65 = arith.constant 0 : index
    %c0_66 = arith.constant 0 : index
    %246 = vector.load %arg5[%c0_65, %c0_66] : memref<10x512xf32, #tpu.memory_space<vmem>>, vector<10x512xf32>
    %cst_67 = arith.constant dense<0.000000e+00> : vector<8x512xf32>
    %247 = tpu.matmul %245, %246, %cst_67 {dimension_numbers = #tpu.dot_dimension_numbers<[1], [0], [0], [1], [0, 0, 1, 1], [], []>} : vector<8x10xf32>, vector<10x512xf32>, vector<8x512xf32> -> vector<8x512xf32>
    %c0_68 = arith.constant 0 : index
    %c0_69 = arith.constant 0 : index
    %248 = vector.load %arg6[%c0_68, %c0_69] : memref<1x512xf32, #tpu.memory_space<vmem>>, vector<1x512xf32>
    %249 = vector.broadcast %248 : vector<1x512xf32> to vector<8x512xf32>
    %250 = arith.addf %247, %249 : vector<8x512xf32>
    %251 = vector.extract_strided_slice %250 {offsets = [0, 0], sizes = [8, 128], strides = [1, 1]} : vector<8x512xf32> to vector<8x128xf32>
    %252 = arith.negf %251 : vector<8x128xf32>
    %253 = math.exp %252 : vector<8x128xf32>
    %cst_70 = arith.constant 1.000000e+00 : f32
    %254 = vector.broadcast %cst_70 : f32 to vector<8x128xf32>
    %255 = arith.addf %254, %253 : vector<8x128xf32>
    %256 = arith.divf %254, %255 : vector<8x128xf32>
    %257 = vector.extract_strided_slice %250 {offsets = [0, 256], sizes = [8, 128], strides = [1, 1]} : vector<8x512xf32> to vector<8x128xf32>
    %258 = math.tanh %257 : vector<8x128xf32>
    %259 = vector.extract_strided_slice %250 {offsets = [0, 384], sizes = [8, 128], strides = [1, 1]} : vector<8x512xf32> to vector<8x128xf32>
    %260 = arith.negf %259 : vector<8x128xf32>
    %261 = math.exp %260 : vector<8x128xf32>
    %cst_71 = arith.constant 1.000000e+00 : f32
    %262 = vector.broadcast %cst_71 : f32 to vector<8x128xf32>
    %263 = arith.addf %262, %261 : vector<8x128xf32>
    %264 = arith.divf %262, %263 : vector<8x128xf32>
    %265 = arith.mulf %256, %258 : vector<8x128xf32>
    %266 = math.tanh %265 : vector<8x128xf32>
    %267 = arith.mulf %264, %266 : vector<8x128xf32>
    %c0_72 = arith.constant 0 : index
    %c0_73 = arith.constant 0 : index
    %268 = vector.load %arg7[%c0_72, %c0_73] : memref<256x384xf32, #tpu.memory_space<vmem>>, vector<128x384xf32>
    %cst_74 = arith.constant dense<0.000000e+00> : vector<8x384xf32>
    %269 = tpu.matmul %243, %268, %cst_74 {dimension_numbers = #tpu.dot_dimension_numbers<[1], [0], [0], [1], [0, 0, 1, 1], [], []>} : vector<8x128xf32>, vector<128x384xf32>, vector<8x384xf32> -> vector<8x384xf32>
    %c128 = arith.constant 128 : index
    %c0_75 = arith.constant 0 : index
    %270 = vector.load %arg7[%c128, %c0_75] : memref<256x384xf32, #tpu.memory_space<vmem>>, vector<128x384xf32>
    %cst_76 = arith.constant dense<0.000000e+00> : vector<8x384xf32>
    %271 = tpu.matmul %267, %270, %cst_76 {dimension_numbers = #tpu.dot_dimension_numbers<[1], [0], [0], [1], [0, 0, 1, 1], [], []>} : vector<8x128xf32>, vector<128x384xf32>, vector<8x384xf32> -> vector<8x384xf32>
    %272 = arith.addf %269, %271 : vector<8x384xf32>
    %c0_77 = arith.constant 0 : index
    %c0_78 = arith.constant 0 : index
    %273 = vector.load %arg9[%c0_77, %c0_78] : memref<1x384xf32, #tpu.memory_space<vmem>>, vector<1x384xf32>
    %274 = vector.broadcast %273 : vector<1x384xf32> to vector<8x384xf32>
    %275 = arith.addf %272, %274 : vector<8x384xf32>
    %276 = vector.extract_strided_slice %275 {offsets = [0, 0], sizes = [8, 128], strides = [1, 1]} : vector<8x384xf32> to vector<8x128xf32>
    %277 = vector.extract_strided_slice %275 {offsets = [0, 128], sizes = [8, 128], strides = [1, 1]} : vector<8x384xf32> to vector<8x128xf32>
    %278 = vector.extract_strided_slice %275 {offsets = [0, 256], sizes = [8, 128], strides = [1, 1]} : vector<8x384xf32> to vector<8x128xf32>
    %c0_79 = arith.constant 0 : index
    %c0_80 = arith.constant 0 : index
    %279 = vector.load %arg8[%c0_79, %c0_80] : memref<128x384xf32, #tpu.memory_space<vmem>>, vector<128x384xf32>
    %c0_81 = arith.constant 0 : index
    %c0_82 = arith.constant 0 : index
    %280 = vector.load %arg10[%c0_81, %c0_82] : memref<1x384xf32, #tpu.memory_space<vmem>>, vector<1x384xf32>
    %cst_83 = arith.constant 0.000000e+00 : f32
    %281 = vector.broadcast %cst_83 : f32 to vector<8x128xf32>
    %cst_84 = arith.constant dense<0.000000e+00> : vector<8x384xf32>
    %282 = tpu.matmul %281, %279, %cst_84 {dimension_numbers = #tpu.dot_dimension_numbers<[1], [0], [0], [1], [0, 0, 1, 1], [], []>} : vector<8x128xf32>, vector<128x384xf32>, vector<8x384xf32> -> vector<8x384xf32>
    %283 = vector.broadcast %280 : vector<1x384xf32> to vector<8x384xf32>
    %284 = arith.addf %282, %283 : vector<8x384xf32>
    %285 = vector.extract_strided_slice %284 {offsets = [0, 0], sizes = [8, 128], strides = [1, 1]} : vector<8x384xf32> to vector<8x128xf32>
    %286 = arith.addf %276, %285 : vector<8x128xf32>
    %287 = arith.negf %286 : vector<8x128xf32>
    %288 = math.exp %287 : vector<8x128xf32>
    %cst_85 = arith.constant 1.000000e+00 : f32
    %289 = vector.broadcast %cst_85 : f32 to vector<8x128xf32>
    %290 = arith.addf %289, %288 : vector<8x128xf32>
    %291 = arith.divf %289, %290 : vector<8x128xf32>
    %292 = vector.extract_strided_slice %284 {offsets = [0, 128], sizes = [8, 128], strides = [1, 1]} : vector<8x384xf32> to vector<8x128xf32>
    %293 = arith.addf %277, %292 : vector<8x128xf32>
    %294 = arith.negf %293 : vector<8x128xf32>
    %295 = math.exp %294 : vector<8x128xf32>
    %cst_86 = arith.constant 1.000000e+00 : f32
    %296 = vector.broadcast %cst_86 : f32 to vector<8x128xf32>
    %297 = arith.addf %296, %295 : vector<8x128xf32>
    %298 = arith.divf %296, %297 : vector<8x128xf32>
    %299 = vector.extract_strided_slice %284 {offsets = [0, 256], sizes = [8, 128], strides = [1, 1]} : vector<8x384xf32> to vector<8x128xf32>
    %300 = arith.mulf %291, %299 : vector<8x128xf32>
    %301 = arith.addf %278, %300 : vector<8x128xf32>
    %302 = math.tanh %301 : vector<8x128xf32>
    %cst_87 = arith.constant 1.000000e+00 : f32
    %303 = vector.broadcast %cst_87 : f32 to vector<8x128xf32>
    %304 = arith.subf %303, %298 : vector<8x128xf32>
    %305 = arith.mulf %304, %302 : vector<8x128xf32>
    %306 = arith.mulf %298, %281 : vector<8x128xf32>
    %307 = arith.addf %305, %306 : vector<8x128xf32>
    %c0_88 = arith.constant 0 : index
    %c0_89 = arith.constant 0 : index
    %c0_90 = arith.constant 0 : index
    %308 = vector.load %arg15[%c0_88, %c0_89, %c0_90] : memref<8x8x128xf32, #tpu.memory_space<vmem>>, vector<1x8x128xf32>
    %309 = vector.shape_cast %308 : vector<1x8x128xf32> to vector<8x128xf32>
    %310 = vector.shape_cast %307 : vector<8x128xf32> to vector<1x8x128xf32>
    tpu.vector_store %arg15[%c0_88, %c0_89, %c0_90], %310 {strides = array<i32>} : memref<8x8x128xf32, #tpu.memory_space<vmem>>, vector<1x8x128xf32>,
    %cst_91 = arith.constant dense<0.000000e+00> : vector<8x384xf32>
    %311 = tpu.matmul %307, %279, %cst_91 {dimension_numbers = #tpu.dot_dimension_numbers<[1], [0], [0], [1], [0, 0, 1, 1], [], []>} : vector<8x128xf32>, vector<128x384xf32>, vector<8x384xf32> -> vector<8x384xf32>
    %312 = vector.broadcast %280 : vector<1x384xf32> to vector<8x384xf32>
    %313 = arith.addf %311, %312 : vector<8x384xf32>
    %314 = vector.extract_strided_slice %313 {offsets = [0, 0], sizes = [8, 128], strides = [1, 1]} : vector<8x384xf32> to vector<8x128xf32>
    %315 = arith.addf %276, %314 : vector<8x128xf32>
    %316 = arith.negf %315 : vector<8x128xf32>
    %317 = math.exp %316 : vector<8x128xf32>
    %cst_92 = arith.constant 1.000000e+00 : f32
    %318 = vector.broadcast %cst_92 : f32 to vector<8x128xf32>
    %319 = arith.addf %318, %317 : vector<8x128xf32>
    %320 = arith.divf %318, %319 : vector<8x128xf32>
    %321 = vector.extract_strided_slice %313 {offsets = [0, 128], sizes = [8, 128], strides = [1, 1]} : vector<8x384xf32> to vector<8x128xf32>
    %322 = arith.addf %277, %321 : vector<8x128xf32>
    %323 = arith.negf %322 : vector<8x128xf32>
    %324 = math.exp %323 : vector<8x128xf32>
    %cst_93 = arith.constant 1.000000e+00 : f32
    %325 = vector.broadcast %cst_93 : f32 to vector<8x128xf32>
    %326 = arith.addf %325, %324 : vector<8x128xf32>
    %327 = arith.divf %325, %326 : vector<8x128xf32>
    %328 = vector.extract_strided_slice %313 {offsets = [0, 256], sizes = [8, 128], strides = [1, 1]} : vector<8x384xf32> to vector<8x128xf32>
    %329 = arith.mulf %320, %328 : vector<8x128xf32>
    %330 = arith.addf %278, %329 : vector<8x128xf32>
    %331 = math.tanh %330 : vector<8x128xf32>
    %cst_94 = arith.constant 1.000000e+00 : f32
    %332 = vector.broadcast %cst_94 : f32 to vector<8x128xf32>
    %333 = arith.subf %332, %327 : vector<8x128xf32>
    %334 = arith.mulf %333, %331 : vector<8x128xf32>
    %335 = arith.mulf %327, %307 : vector<8x128xf32>
    %336 = arith.addf %334, %335 : vector<8x128xf32>
    %c1_95 = arith.constant 1 : index
    %c0_96 = arith.constant 0 : index
    %c0_97 = arith.constant 0 : index
    %337 = vector.load %arg15[%c1_95, %c0_96, %c0_97] : memref<8x8x128xf32, #tpu.memory_space<vmem>>, vector<1x8x128xf32>
    %338 = vector.shape_cast %337 : vector<1x8x128xf32> to vector<8x128xf32>
    %339 = vector.shape_cast %336 : vector<8x128xf32> to vector<1x8x128xf32>
    tpu.vector_store %arg15[%c1_95, %c0_96, %c0_97], %339 {strides = array<i32>} : memref<8x8x128xf32, #tpu.memory_space<vmem>>, vector<1x8x128xf32>,
    %cst_98 = arith.constant dense<0.000000e+00> : vector<8x384xf32>
    %340 = tpu.matmul %336, %279, %cst_98 {dimension_numbers = #tpu.dot_dimension_numbers<[1], [0], [0], [1], [0, 0, 1, 1], [], []>} : vector<8x128xf32>, vector<128x384xf32>, vector<8x384xf32> -> vector<8x384xf32>
    %341 = vector.broadcast %280 : vector<1x384xf32> to vector<8x384xf32>
    %342 = arith.addf %340, %341 : vector<8x384xf32>
    %343 = vector.extract_strided_slice %342 {offsets = [0, 0], sizes = [8, 128], strides = [1, 1]} : vector<8x384xf32> to vector<8x128xf32>
    %344 = arith.addf %276, %343 : vector<8x128xf32>
    %345 = arith.negf %344 : vector<8x128xf32>
    %346 = math.exp %345 : vector<8x128xf32>
    %cst_99 = arith.constant 1.000000e+00 : f32
    %347 = vector.broadcast %cst_99 : f32 to vector<8x128xf32>
    %348 = arith.addf %347, %346 : vector<8x128xf32>
    %349 = arith.divf %347, %348 : vector<8x128xf32>
    %350 = vector.extract_strided_slice %342 {offsets = [0, 128], sizes = [8, 128], strides = [1, 1]} : vector<8x384xf32> to vector<8x128xf32>
    %351 = arith.addf %277, %350 : vector<8x128xf32>
    %352 = arith.negf %351 : vector<8x128xf32>
    %353 = math.exp %352 : vector<8x128xf32>
    %cst_100 = arith.constant 1.000000e+00 : f32
    %354 = vector.broadcast %cst_100 : f32 to vector<8x128xf32>
    %355 = arith.addf %354, %353 : vector<8x128xf32>
    %356 = arith.divf %354, %355 : vector<8x128xf32>
    %357 = vector.extract_strided_slice %342 {offsets = [0, 256], sizes = [8, 128], strides = [1, 1]} : vector<8x384xf32> to vector<8x128xf32>
    %358 = arith.mulf %349, %357 : vector<8x128xf32>
    %359 = arith.addf %278, %358 : vector<8x128xf32>
    %360 = math.tanh %359 : vector<8x128xf32>
    %cst_101 = arith.constant 1.000000e+00 : f32
    %361 = vector.broadcast %cst_101 : f32 to vector<8x128xf32>
    %362 = arith.subf %361, %356 : vector<8x128xf32>
    %363 = arith.mulf %362, %360 : vector<8x128xf32>
    %364 = arith.mulf %356, %336 : vector<8x128xf32>
    %365 = arith.addf %363, %364 : vector<8x128xf32>
    %c2_102 = arith.constant 2 : index
    %c0_103 = arith.constant 0 : index
    %c0_104 = arith.constant 0 : index
    %366 = vector.load %arg15[%c2_102, %c0_103, %c0_104] : memref<8x8x128xf32, #tpu.memory_space<vmem>>, vector<1x8x128xf32>
    %367 = vector.shape_cast %366 : vector<1x8x128xf32> to vector<8x128xf32>
    %368 = vector.shape_cast %365 : vector<8x128xf32> to vector<1x8x128xf32>
    tpu.vector_store %arg15[%c2_102, %c0_103, %c0_104], %368 {strides = array<i32>} : memref<8x8x128xf32, #tpu.memory_space<vmem>>, vector<1x8x128xf32>,
    %cst_105 = arith.constant dense<0.000000e+00> : vector<8x384xf32>
    %369 = tpu.matmul %365, %279, %cst_105 {dimension_numbers = #tpu.dot_dimension_numbers<[1], [0], [0], [1], [0, 0, 1, 1], [], []>} : vector<8x128xf32>, vector<128x384xf32>, vector<8x384xf32> -> vector<8x384xf32>
    %370 = vector.broadcast %280 : vector<1x384xf32> to vector<8x384xf32>
    %371 = arith.addf %369, %370 : vector<8x384xf32>
    %372 = vector.extract_strided_slice %371 {offsets = [0, 0], sizes = [8, 128], strides = [1, 1]} : vector<8x384xf32> to vector<8x128xf32>
    %373 = arith.addf %276, %372 : vector<8x128xf32>
    %374 = arith.negf %373 : vector<8x128xf32>
    %375 = math.exp %374 : vector<8x128xf32>
    %cst_106 = arith.constant 1.000000e+00 : f32
    %376 = vector.broadcast %cst_106 : f32 to vector<8x128xf32>
    %377 = arith.addf %376, %375 : vector<8x128xf32>
    %378 = arith.divf %376, %377 : vector<8x128xf32>
    %379 = vector.extract_strided_slice %371 {offsets = [0, 128], sizes = [8, 128], strides = [1, 1]} : vector<8x384xf32> to vector<8x128xf32>
    %380 = arith.addf %277, %379 : vector<8x128xf32>
    %381 = arith.negf %380 : vector<8x128xf32>
    %382 = math.exp %381 : vector<8x128xf32>
    %cst_107 = arith.constant 1.000000e+00 : f32
    %383 = vector.broadcast %cst_107 : f32 to vector<8x128xf32>
    %384 = arith.addf %383, %382 : vector<8x128xf32>
    %385 = arith.divf %383, %384 : vector<8x128xf32>
    %386 = vector.extract_strided_slice %371 {offsets = [0, 256], sizes = [8, 128], strides = [1, 1]} : vector<8x384xf32> to vector<8x128xf32>
    %387 = arith.mulf %378, %386 : vector<8x128xf32>
    %388 = arith.addf %278, %387 : vector<8x128xf32>
    %389 = math.tanh %388 : vector<8x128xf32>
    %cst_108 = arith.constant 1.000000e+00 : f32
    %390 = vector.broadcast %cst_108 : f32 to vector<8x128xf32>
    %391 = arith.subf %390, %385 : vector<8x128xf32>
    %392 = arith.mulf %391, %389 : vector<8x128xf32>
    %393 = arith.mulf %385, %365 : vector<8x128xf32>
    %394 = arith.addf %392, %393 : vector<8x128xf32>
    %c3_109 = arith.constant 3 : index
    %c0_110 = arith.constant 0 : index
    %c0_111 = arith.constant 0 : index
    %395 = vector.load %arg15[%c3_109, %c0_110, %c0_111] : memref<8x8x128xf32, #tpu.memory_space<vmem>>, vector<1x8x128xf32>
    %396 = vector.shape_cast %395 : vector<1x8x128xf32> to vector<8x128xf32>
    %397 = vector.shape_cast %394 : vector<8x128xf32> to vector<1x8x128xf32>
    tpu.vector_store %arg15[%c3_109, %c0_110, %c0_111], %397 {strides = array<i32>} : memref<8x8x128xf32, #tpu.memory_space<vmem>>, vector<1x8x128xf32>,
    %cst_112 = arith.constant dense<0.000000e+00> : vector<8x384xf32>
    %398 = tpu.matmul %394, %279, %cst_112 {dimension_numbers = #tpu.dot_dimension_numbers<[1], [0], [0], [1], [0, 0, 1, 1], [], []>} : vector<8x128xf32>, vector<128x384xf32>, vector<8x384xf32> -> vector<8x384xf32>
    %399 = vector.broadcast %280 : vector<1x384xf32> to vector<8x384xf32>
    %400 = arith.addf %398, %399 : vector<8x384xf32>
    %401 = vector.extract_strided_slice %400 {offsets = [0, 0], sizes = [8, 128], strides = [1, 1]} : vector<8x384xf32> to vector<8x128xf32>
    %402 = arith.addf %276, %401 : vector<8x128xf32>
    %403 = arith.negf %402 : vector<8x128xf32>
    %404 = math.exp %403 : vector<8x128xf32>
    %cst_113 = arith.constant 1.000000e+00 : f32
    %405 = vector.broadcast %cst_113 : f32 to vector<8x128xf32>
    %406 = arith.addf %405, %404 : vector<8x128xf32>
    %407 = arith.divf %405, %406 : vector<8x128xf32>
    %408 = vector.extract_strided_slice %400 {offsets = [0, 128], sizes = [8, 128], strides = [1, 1]} : vector<8x384xf32> to vector<8x128xf32>
    %409 = arith.addf %277, %408 : vector<8x128xf32>
    %410 = arith.negf %409 : vector<8x128xf32>
    %411 = math.exp %410 : vector<8x128xf32>
    %cst_114 = arith.constant 1.000000e+00 : f32
    %412 = vector.broadcast %cst_114 : f32 to vector<8x128xf32>
    %413 = arith.addf %412, %411 : vector<8x128xf32>
    %414 = arith.divf %412, %413 : vector<8x128xf32>
    %415 = vector.extract_strided_slice %400 {offsets = [0, 256], sizes = [8, 128], strides = [1, 1]} : vector<8x384xf32> to vector<8x128xf32>
    %416 = arith.mulf %407, %415 : vector<8x128xf32>
    %417 = arith.addf %278, %416 : vector<8x128xf32>
    %418 = math.tanh %417 : vector<8x128xf32>
    %cst_115 = arith.constant 1.000000e+00 : f32
    %419 = vector.broadcast %cst_115 : f32 to vector<8x128xf32>
    %420 = arith.subf %419, %414 : vector<8x128xf32>
    %421 = arith.mulf %420, %418 : vector<8x128xf32>
    %422 = arith.mulf %414, %394 : vector<8x128xf32>
    %423 = arith.addf %421, %422 : vector<8x128xf32>
    %c4_116 = arith.constant 4 : index
    %c0_117 = arith.constant 0 : index
    %c0_118 = arith.constant 0 : index
    %424 = vector.load %arg15[%c4_116, %c0_117, %c0_118] : memref<8x8x128xf32, #tpu.memory_space<vmem>>, vector<1x8x128xf32>
    %425 = vector.shape_cast %424 : vector<1x8x128xf32> to vector<8x128xf32>
    %426 = vector.shape_cast %423 : vector<8x128xf32> to vector<1x8x128xf32>
    tpu.vector_store %arg15[%c4_116, %c0_117, %c0_118], %426 {strides = array<i32>} : memref<8x8x128xf32, #tpu.memory_space<vmem>>, vector<1x8x128xf32>,
    %cst_119 = arith.constant dense<0.000000e+00> : vector<8x384xf32>
    %427 = tpu.matmul %423, %279, %cst_119 {dimension_numbers = #tpu.dot_dimension_numbers<[1], [0], [0], [1], [0, 0, 1, 1], [], []>} : vector<8x128xf32>, vector<128x384xf32>, vector<8x384xf32> -> vector<8x384xf32>
    %428 = vector.broadcast %280 : vector<1x384xf32> to vector<8x384xf32>
    %429 = arith.addf %427, %428 : vector<8x384xf32>
    %430 = vector.extract_strided_slice %429 {offsets = [0, 0], sizes = [8, 128], strides = [1, 1]} : vector<8x384xf32> to vector<8x128xf32>
    %431 = arith.addf %276, %430 : vector<8x128xf32>
    %432 = arith.negf %431 : vector<8x128xf32>
    %433 = math.exp %432 : vector<8x128xf32>
    %cst_120 = arith.constant 1.000000e+00 : f32
    %434 = vector.broadcast %cst_120 : f32 to vector<8x128xf32>
    %435 = arith.addf %434, %433 : vector<8x128xf32>
    %436 = arith.divf %434, %435 : vector<8x128xf32>
    %437 = vector.extract_strided_slice %429 {offsets = [0, 128], sizes = [8, 128], strides = [1, 1]} : vector<8x384xf32> to vector<8x128xf32>
    %438 = arith.addf %277, %437 : vector<8x128xf32>
    %439 = arith.negf %438 : vector<8x128xf32>
    %440 = math.exp %439 : vector<8x128xf32>
    %cst_121 = arith.constant 1.000000e+00 : f32
    %441 = vector.broadcast %cst_121 : f32 to vector<8x128xf32>
    %442 = arith.addf %441, %440 : vector<8x128xf32>
    %443 = arith.divf %441, %442 : vector<8x128xf32>
    %444 = vector.extract_strided_slice %429 {offsets = [0, 256], sizes = [8, 128], strides = [1, 1]} : vector<8x384xf32> to vector<8x128xf32>
    %445 = arith.mulf %436, %444 : vector<8x128xf32>
    %446 = arith.addf %278, %445 : vector<8x128xf32>
    %447 = math.tanh %446 : vector<8x128xf32>
    %cst_122 = arith.constant 1.000000e+00 : f32
    %448 = vector.broadcast %cst_122 : f32 to vector<8x128xf32>
    %449 = arith.subf %448, %443 : vector<8x128xf32>
    %450 = arith.mulf %449, %447 : vector<8x128xf32>
    %451 = arith.mulf %443, %423 : vector<8x128xf32>
    %452 = arith.addf %450, %451 : vector<8x128xf32>
    %c5_123 = arith.constant 5 : index
    %c0_124 = arith.constant 0 : index
    %c0_125 = arith.constant 0 : index
    %453 = vector.load %arg15[%c5_123, %c0_124, %c0_125] : memref<8x8x128xf32, #tpu.memory_space<vmem>>, vector<1x8x128xf32>
    %454 = vector.shape_cast %453 : vector<1x8x128xf32> to vector<8x128xf32>
    %455 = vector.shape_cast %452 : vector<8x128xf32> to vector<1x8x128xf32>
    tpu.vector_store %arg15[%c5_123, %c0_124, %c0_125], %455 {strides = array<i32>} : memref<8x8x128xf32, #tpu.memory_space<vmem>>, vector<1x8x128xf32>,
    %cst_126 = arith.constant dense<0.000000e+00> : vector<8x384xf32>
    %456 = tpu.matmul %452, %279, %cst_126 {dimension_numbers = #tpu.dot_dimension_numbers<[1], [0], [0], [1], [0, 0, 1, 1], [], []>} : vector<8x128xf32>, vector<128x384xf32>, vector<8x384xf32> -> vector<8x384xf32>
    %457 = vector.broadcast %280 : vector<1x384xf32> to vector<8x384xf32>
    %458 = arith.addf %456, %457 : vector<8x384xf32>
    %459 = vector.extract_strided_slice %458 {offsets = [0, 0], sizes = [8, 128], strides = [1, 1]} : vector<8x384xf32> to vector<8x128xf32>
    %460 = arith.addf %276, %459 : vector<8x128xf32>
    %461 = arith.negf %460 : vector<8x128xf32>
    %462 = math.exp %461 : vector<8x128xf32>
    %cst_127 = arith.constant 1.000000e+00 : f32
    %463 = vector.broadcast %cst_127 : f32 to vector<8x128xf32>
    %464 = arith.addf %463, %462 : vector<8x128xf32>
    %465 = arith.divf %463, %464 : vector<8x128xf32>
    %466 = vector.extract_strided_slice %458 {offsets = [0, 128], sizes = [8, 128], strides = [1, 1]} : vector<8x384xf32> to vector<8x128xf32>
    %467 = arith.addf %277, %466 : vector<8x128xf32>
    %468 = arith.negf %467 : vector<8x128xf32>
    %469 = math.exp %468 : vector<8x128xf32>
    %cst_128 = arith.constant 1.000000e+00 : f32
    %470 = vector.broadcast %cst_128 : f32 to vector<8x128xf32>
    %471 = arith.addf %470, %469 : vector<8x128xf32>
    %472 = arith.divf %470, %471 : vector<8x128xf32>
    %473 = vector.extract_strided_slice %458 {offsets = [0, 256], sizes = [8, 128], strides = [1, 1]} : vector<8x384xf32> to vector<8x128xf32>
    %474 = arith.mulf %465, %473 : vector<8x128xf32>
    %475 = arith.addf %278, %474 : vector<8x128xf32>
    %476 = math.tanh %475 : vector<8x128xf32>
    %cst_129 = arith.constant 1.000000e+00 : f32
    %477 = vector.broadcast %cst_129 : f32 to vector<8x128xf32>
    %478 = arith.subf %477, %472 : vector<8x128xf32>
    %479 = arith.mulf %478, %476 : vector<8x128xf32>
    %480 = arith.mulf %472, %452 : vector<8x128xf32>
    %481 = arith.addf %479, %480 : vector<8x128xf32>
    %c6_130 = arith.constant 6 : index
    %c0_131 = arith.constant 0 : index
    %c0_132 = arith.constant 0 : index
    %482 = vector.load %arg15[%c6_130, %c0_131, %c0_132] : memref<8x8x128xf32, #tpu.memory_space<vmem>>, vector<1x8x128xf32>
    %483 = vector.shape_cast %482 : vector<1x8x128xf32> to vector<8x128xf32>
    %484 = vector.shape_cast %481 : vector<8x128xf32> to vector<1x8x128xf32>
    tpu.vector_store %arg15[%c6_130, %c0_131, %c0_132], %484 {strides = array<i32>} : memref<8x8x128xf32, #tpu.memory_space<vmem>>, vector<1x8x128xf32>,
    %cst_133 = arith.constant dense<0.000000e+00> : vector<8x384xf32>
    %485 = tpu.matmul %481, %279, %cst_133 {dimension_numbers = #tpu.dot_dimension_numbers<[1], [0], [0], [1], [0, 0, 1, 1], [], []>} : vector<8x128xf32>, vector<128x384xf32>, vector<8x384xf32> -> vector<8x384xf32>
    %486 = vector.broadcast %280 : vector<1x384xf32> to vector<8x384xf32>
    %487 = arith.addf %485, %486 : vector<8x384xf32>
    %488 = vector.extract_strided_slice %487 {offsets = [0, 0], sizes = [8, 128], strides = [1, 1]} : vector<8x384xf32> to vector<8x128xf32>
    %489 = arith.addf %276, %488 : vector<8x128xf32>
    %490 = arith.negf %489 : vector<8x128xf32>
    %491 = math.exp %490 : vector<8x128xf32>
    %cst_134 = arith.constant 1.000000e+00 : f32
    %492 = vector.broadcast %cst_134 : f32 to vector<8x128xf32>
    %493 = arith.addf %492, %491 : vector<8x128xf32>
    %494 = arith.divf %492, %493 : vector<8x128xf32>
    %495 = vector.extract_strided_slice %487 {offsets = [0, 128], sizes = [8, 128], strides = [1, 1]} : vector<8x384xf32> to vector<8x128xf32>
    %496 = arith.addf %277, %495 : vector<8x128xf32>
    %497 = arith.negf %496 : vector<8x128xf32>
    %498 = math.exp %497 : vector<8x128xf32>
    %cst_135 = arith.constant 1.000000e+00 : f32
    %499 = vector.broadcast %cst_135 : f32 to vector<8x128xf32>
    %500 = arith.addf %499, %498 : vector<8x128xf32>
    %501 = arith.divf %499, %500 : vector<8x128xf32>
    %502 = vector.extract_strided_slice %487 {offsets = [0, 256], sizes = [8, 128], strides = [1, 1]} : vector<8x384xf32> to vector<8x128xf32>
    %503 = arith.mulf %494, %502 : vector<8x128xf32>
    %504 = arith.addf %278, %503 : vector<8x128xf32>
    %505 = math.tanh %504 : vector<8x128xf32>
    %cst_136 = arith.constant 1.000000e+00 : f32
    %506 = vector.broadcast %cst_136 : f32 to vector<8x128xf32>
    %507 = arith.subf %506, %501 : vector<8x128xf32>
    %508 = arith.mulf %507, %505 : vector<8x128xf32>
    %509 = arith.mulf %501, %481 : vector<8x128xf32>
    %510 = arith.addf %508, %509 : vector<8x128xf32>
    %c7_137 = arith.constant 7 : index
    %c0_138 = arith.constant 0 : index
    %c0_139 = arith.constant 0 : index
    %511 = vector.load %arg15[%c7_137, %c0_138, %c0_139] : memref<8x8x128xf32, #tpu.memory_space<vmem>>, vector<1x8x128xf32>
    %512 = vector.shape_cast %511 : vector<1x8x128xf32> to vector<8x128xf32>
    %513 = vector.shape_cast %510 : vector<8x128xf32> to vector<1x8x128xf32>
    tpu.vector_store %arg15[%c7_137, %c0_138, %c0_139], %513 {strides = array<i32>} : memref<8x8x128xf32, #tpu.memory_space<vmem>>, vector<1x8x128xf32>,
    %c0_140 = arith.constant 0 : index
    %c0_141 = arith.constant 0 : index
    %c0_142 = arith.constant 0 : index
    %514 = vector.load %arg15[%c0_140, %c0_141, %c0_142] : memref<8x8x128xf32, #tpu.memory_space<vmem>>, vector<8x8x128xf32>
    %515 = vector.shape_cast %514 : vector<8x8x128xf32> to vector<64x128xf32>
    %c0_143 = arith.constant 0 : index
    %c0_144 = arith.constant 0 : index
    %516 = vector.load %arg11[%c0_143, %c0_144] : memref<128x128xf32, #tpu.memory_space<vmem>>, vector<128x128xf32>
    %cst_145 = arith.constant dense<0.000000e+00> : vector<64x128xf32>
    %517 = tpu.matmul %515, %516, %cst_145 {dimension_numbers = #tpu.dot_dimension_numbers<[1], [0], [0], [1], [0, 0, 1, 1], [], []>} : vector<64x128xf32>, vector<128x128xf32>, vector<64x128xf32> -> vector<64x128xf32>
    %c0_146 = arith.constant 0 : index
    %c0_147 = arith.constant 0 : index
    %518 = vector.load %arg12[%c0_146, %c0_147] : memref<1x128xf32, #tpu.memory_space<vmem>>, vector<1x128xf32>
    %519 = vector.broadcast %518 : vector<1x128xf32> to vector<64x128xf32>
    %520 = arith.addf %517, %519 : vector<64x128xf32>
    %cst_148 = arith.constant dense<0xFF800000> : vector<64xf32>
    %521 = vector.multi_reduction <maximumf>, %520, %cst_148 [1] : vector<64x128xf32> to vector<64xf32>
    %522 = vector.shape_cast %521 : vector<64xf32> to vector<64x1xf32>
    %523 = vector.broadcast %522 : vector<64x1xf32> to vector<64x128xf32>
    %524 = arith.subf %520, %523 : vector<64x128xf32>
    %525 = math.exp %524 : vector<64x128xf32>
    %cst_149 = arith.constant dense<0.000000e+00> : vector<64xf32>
    %526 = vector.multi_reduction <add>, %525, %cst_149 [1] : vector<64x128xf32> to vector<64xf32>
    %527 = vector.shape_cast %526 : vector<64xf32> to vector<64x1xf32>
    %528 = math.log %527 : vector<64x1xf32>
    %529 = arith.addf %522, %528 : vector<64x1xf32>
    %530 = vector.broadcast %529 : vector<64x1xf32> to vector<64x128xf32>
    %531 = arith.subf %520, %530 : vector<64x128xf32>
    %532 = vector.shape_cast %531 : vector<64x128xf32> to vector<8x8x128xf32>
    %c0_150 = arith.constant 0 : index
    %c0_151 = arith.constant 0 : index
    %c0_152 = arith.constant 0 : index
    %533 = vector.load %arg13[%c0_150, %c0_151, %c0_152] : memref<8x8x128xf32, #tpu.memory_space<vmem>>, vector<8x8x128xf32>
    tpu.vector_store %arg13[%c0_150, %c0_151, %c0_152], %532 {strides = array<i32>} : memref<8x8x128xf32, #tpu.memory_space<vmem>>, vector<8x8x128xf32>,
    return
  }
  func.func @transform_0(%arg0: i32) -> (i32, i32, i32) {
    %c0_i32 = arith.constant 0 : i32
    %c0_i32_0 = arith.constant 0 : i32
    %c0_i32_1 = arith.constant 0 : i32
    return %c0_i32, %arg0, %c0_i32_0 : i32, i32, i32
  }
  func.func @transform_1(%arg0: i32) -> (i32, i32) {
    %c0_i32 = arith.constant 0 : i32
    %c0_i32_0 = arith.constant 0 : i32
    %c0_i32_1 = arith.constant 0 : i32
    return %c0_i32, %c0_i32_0 : i32, i32
  }
  func.func @transform_2(%arg0: i32) -> (i32, i32) {
    %c0_i32 = arith.constant 0 : i32
    %c0_i32_0 = arith.constant 0 : i32
    %c0_i32_1 = arith.constant 0 : i32
    return %c0_i32, %c0_i32_0 : i32, i32
  }
  func.func @transform_3(%arg0: i32) -> (i32, i32) {
    %c0_i32 = arith.constant 0 : i32
    %c0_i32_0 = arith.constant 0 : i32
    %c0_i32_1 = arith.constant 0 : i32
    return %c0_i32, %c0_i32_0 : i32, i32
  }
  func.func @transform_4(%arg0: i32) -> (i32, i32) {
    %c0_i32 = arith.constant 0 : i32
    %c0_i32_0 = arith.constant 0 : i32
    %c0_i32_1 = arith.constant 0 : i32
    return %c0_i32, %c0_i32_0 : i32, i32
  }
  func.func @transform_5(%arg0: i32) -> (i32, i32) {
    %c0_i32 = arith.constant 0 : i32
    %c0_i32_0 = arith.constant 0 : i32
    %c0_i32_1 = arith.constant 0 : i32
    return %c0_i32, %c0_i32_0 : i32, i32
  }
  func.func @transform_6(%arg0: i32) -> (i32, i32) {
    %c0_i32 = arith.constant 0 : i32
    %c0_i32_0 = arith.constant 0 : i32
    %c0_i32_1 = arith.constant 0 : i32
    return %c0_i32, %c0_i32_0 : i32, i32
  }
  func.func @transform_7(%arg0: i32) -> (i32, i32) {
    %c0_i32 = arith.constant 0 : i32
    %c0_i32_0 = arith.constant 0 : i32
    %c0_i32_1 = arith.constant 0 : i32
    return %c0_i32, %c0_i32_0 : i32, i32
  }
  func.func @transform_8(%arg0: i32) -> (i32, i32) {
    %c0_i32 = arith.constant 0 : i32
    %c0_i32_0 = arith.constant 0 : i32
    %c0_i32_1 = arith.constant 0 : i32
    return %c0_i32, %c0_i32_0 : i32, i32
  }
  func.func @transform_9(%arg0: i32) -> (i32, i32) {
    %c0_i32 = arith.constant 0 : i32
    %c0_i32_0 = arith.constant 0 : i32
    %c0_i32_1 = arith.constant 0 : i32
    return %c0_i32, %c0_i32_0 : i32, i32
  }
  func.func @transform_10(%arg0: i32) -> (i32, i32) {
    %c0_i32 = arith.constant 0 : i32
    %c0_i32_0 = arith.constant 0 : i32
    %c0_i32_1 = arith.constant 0 : i32
    return %c0_i32, %c0_i32_0 : i32, i32
  }
  func.func @transform_11(%arg0: i32) -> (i32, i32) {
    %c0_i32 = arith.constant 0 : i32
    %c0_i32_0 = arith.constant 0 : i32
    %c0_i32_1 = arith.constant 0 : i32
    return %c0_i32, %c0_i32_0 : i32, i32
  }
  func.func @transform_12(%arg0: i32) -> (i32, i32, i32) {
    %c0_i32 = arith.constant 0 : i32
    %c0_i32_0 = arith.constant 0 : i32
    %c0_i32_1 = arith.constant 0 : i32
    return %c0_i32, %arg0, %c0_i32_0 : i32, i32, i32
  }
}

</mosaic_0001>

<bundles_post_ra>
// kernel: phase2_forward.1
= control target key start
LH: loop header
LB: loop body
LE: loop exit
PB: predicated region body
PF: predicated region fallthrough
CT: control target
= control target key end

     0   :  { %17 = vsyncpa [#allocation5], 0  ;;  %s5822_s0 = inlined_call_operand.vmem [shape: f32[8,8,10], index: 0, kind: input, shape index: {}]   ;;  %s5823_s1 = inlined_call_operand.hbm [shape: f32[10,512], index: 1, kind: input, shape index: {}]   ;;  %s5824_s2 = inlined_call_operand.hbm [shape: f32[128,512], index: 2, kind: input, shape index: {}]   ;;  %s5825_s3 = inlined_call_operand.vmem [shape: f32[1,512], index: 3, kind: input, shape index: {}]   ;;  %s5826_s4 = inlined_call_operand.hbm [shape: f32[10,512], index: 4, kind: input, shape index: {}]   ;;  %s5827_s5 = inlined_call_operand.vmem [shape: f32[1,512], index: 5, kind: input, shape index: {}]   ;;  %s5828_s6 = inlined_call_operand.hbm [shape: f32[256,384], index: 6, kind: input, shape index: {}]   ;;  %s5829_s7 = inlined_call_operand.hbm [shape: f32[128,384], index: 7, kind: input, shape index: {}]   ;;  %s5830_s8 = inlined_call_operand.hbm [shape: f32[1,384], index: 8, kind: input, shape index: {}]   ;;  %s5831_s9 = inlined_call_operand.hbm [shape: f32[1,384], index: 9, kind: input, shape index: {}]   ;;  %s5832_s10 = inlined_call_operand.vmem [shape: f32[128,128], index: 10, kind: input, shape index: {}]   ;;  %s5833_s11 = inlined_call_operand.vmem [shape: f32[1,128], index: 11, kind: input, shape index: {}]   ;;  %s5834_s12 = inlined_call_operand.vmem [shape: f32[8,8,128], index: 12, kind: output, shape index: {}]  }
   0x1   :  { %18 = vsyncpa [#allocation7], 0 }
   0x2   :  { %19 = vsyncpa [#allocation10], 0 }
   0x3   :  { %20 = vsyncpa [#allocation13], 0  ;;  %s40_s23 = sshll.u32 %s5824_s2, 4  ;;  %s3782_s24 = smov [#allocation6]   ;;  %s41_s23 = int_to_ptr.hbm [resolvable:$true] %s40_s23 }
   0x4   :  { %s42_s25 = sshll.u32 %s3782_s24, 4  ;;  %s70_s28 = sshll.u32 %s5828_s6, 4  ;;  %s43_s25 = int_to_ptr.vmem [resolvable:$true] %s42_s25  ;;  %s71_s28 = int_to_ptr.hbm [resolvable:$true] %s70_s28 }
   0x5   :  { %s3783_s29 = smov 512   ;;  %s3784_s30 = smov 32  }
   0x6   :  { %48 = dma.hbm_to_vmem [thread:$0]  %s41_s23, 8192, %s43_s25, [#allocation7], %s3783_s29, %s3783_s29, %s3784_s30  }
   0x7   :  { %s3785_s13 = smov [#allocation9]   ;;  %s3786_s15 = smov 384  }
   0x8   :  { %s72_s14 = sshll.u32 %s3785_s13, 4  ;;  %s3787_s2 = smov 24   ;;  %s73_s14 = int_to_ptr.vmem [resolvable:$true] %s72_s14 }
   0x9   :  { %78 = dma.hbm_to_vmem [thread:$0]  %s71_s28, 12288, %s73_s14, [#allocation10], %s3786_s15, %s3786_s15, %s3787_s2  }
   0xa   :  { %s97_s6 = sshll.u32 %s5830_s8, 4  ;;  %s3788_s18 = smov [#allocation12]   ;;  %s98_s6 = int_to_ptr.hbm [resolvable:$true] %s97_s6 }
   0xb   :  { %s99_s19 = sshll.u32 %s3788_s18, 4  ;;  %s27_s22 = sshll.u32 %s5823_s1, 4  ;;  %s100_s19 = int_to_ptr.vmem [resolvable:$true] %s99_s19  ;;  %s28_s22 = int_to_ptr.hbm [resolvable:$true] %s27_s22 }
   0xc   :  { %102 = dma.hbm_to_vmem [thread:$0]  %s98_s6, 48, %s100_s19, [#allocation13]  }
   0xd   :  { %s3789_s23 = smov [#allocation4]   ;;  %s55_s27 = sshll.u32 %s5826_s4, 4  ;;  %s56_s27 = int_to_ptr.hbm [resolvable:$true] %s55_s27 }
   0xe   :  { %s29_s24 = sshll.u32 %s3789_s23, 4  ;;  %s83_s13 = sshll.u32 %s5829_s7, 4  ;;  %s30_s24 = int_to_ptr.vmem [resolvable:$true] %s29_s24  ;;  %s84_s13 = int_to_ptr.hbm [resolvable:$true] %s83_s13 }
   0xf   :  { %35 = dma.hbm_to_vmem [thread:$0]  %s28_s22, 1024, %s30_s24, [#allocation5], %s3783_s29, %s3783_s29, %s3784_s30  }
  0x10   :  { %s3790_s14 = smov [#allocation8]   ;;  %s3791_s16 = smov [#allocation11]  }
  0x11   :  { %s57_s1 = sshll.u32 %s3790_s14, 4  ;;  %s85_s4 = sshll.u32 %s3791_s16, 4  ;;  %s58_s1 = int_to_ptr.vmem [resolvable:$true] %s57_s1  ;;  %s86_s4 = int_to_ptr.vmem [resolvable:$true] %s85_s4 }
  0x12   :  { %63 = dma.hbm_to_vmem [thread:$0]  %s56_s27, 1024, %s58_s1, [#allocation7], %s3783_s29, %s3783_s29, %s3784_s30  }
  0x13   :  { %s108_s18 = sshll.u32 %s5831_s9, 4  ;;  %s3792_s7 = smov [#allocation14]   ;;  %s109_s18 = int_to_ptr.hbm [resolvable:$true] %s108_s18 }
  0x14   :  { %91 = dma.hbm_to_vmem [thread:$0]  %s84_s13, 6144, %s86_s4, [#allocation10], %s3786_s15, %s3786_s15, %s3787_s2  }
  0x15   :  { %s110_s19 = sshll.u32 %s3792_s7, 4  ;;  %s111_s19 = int_to_ptr.vmem [resolvable:$true] %s110_s19 }
  0x16   :  { %113 = dma.hbm_to_vmem [thread:$0]  %s109_s18, 48, %s111_s19, [#allocation13]  }
  0x17   :  { %3774 = dma.done.wait [#allocation5], 1024  }
  0x18   :  { %3775 = vsyncadd [#allocation5], 4294966272 }
  0x19   :  { %3776 = dma.done.wait [#allocation7], 9216  }
  0x1a   :  { %3777 = vsyncadd [#allocation7], 4294958080 }
  0x1b   :  { %3778 = dma.done.wait [#allocation10], 18432  }
  0x1c   :  { %3779 = vsyncadd [#allocation10], 4294948864 }
  0x1d   :  { %3780 = dma.done.wait [#allocation13], 96  }
  0x1e   :  { %3781 = vsyncadd [#allocation13], 4294967200  ;;  %vm197_vm0 = vcmask 1041408   ;;  %v158_v0 = vld [vmem:[#allocation4 + $0x20] sm:$0x3]  ;;  %v155_v4 = vld [vmem:[#allocation4 + $0x8] sm:$0xff] }
  0x1f   :  { %v159_v1 = vld [vmem:[#allocation4 + $0x28] sm:$0x3]  ;;  %v161_v2 = vld [vmem:[#allocation4 + $0x38] sm:$0x3]  ;;  %3142 = vmatpush.msk.msra.mxu0 %vm197_vm0, %v158_v0  ;;  %v154_v3 = vld [vmem:[#allocation4] sm:$0xff]  ;;  %vm172_vm1 = vcmask 80896  }
  0x20   :  { %3227 = vmatpush.msk.msra.mxu2 %vm197_vm0, %v159_v1  ;;  %v157_v5 = vld [vmem:[#allocation4 + $0x18] sm:$0xff]  ;;  %3169 = vmatpush.msk.msra.mxu3 %vm197_vm0, %v161_v2  ;;  %v3901_v6 = vld [vmem:[%s5822_s0] sm:$0xff]  ;;  %v160_v8 = vld [vmem:[#allocation4 + $0x30] sm:$0x3]  ;;  %v5835_v2 = vmov 0.0  }
  0x21   :  { %v3906_v7 = vld [vmem:[%s5822_s0 + $0x20] sm:$0xff]  ;;  %3151 = vmatpush.msk.msra.mxu1 %vm197_vm0, %v159_v1  ;;  %225 = vmatpush.msra.mxu0 %v154_v3  ;;  %v3915_v9 = vld [vmem:[#allocation6 + $0x1e8] sm:$0xff]  ;;  %v156_v10 = vld [vmem:[#allocation4 + $0x10] sm:$0xff] }
  0x22   :  { %3228 = vmatpush.msra.mxu2 %v155_v4  ;;  %348 = vmatpush.msra.mxu3 %v157_v5  ;;  %5971 = vst [vmem:[#allocation19_spill] sm:$0xff] %v3915_v9  ;;  %v3918_v11 = vld [vmem:[#allocation6 + $0x1e0] sm:$0xff]  ;;  %v3922_v12 = vld [vmem:[#allocation6 + $0x1c8] sm:$0xff]  ;;  %v3928_v14 = vld [vmem:[#allocation6 + $0x1f8] sm:$0xff] }
  0x23   :  { %3143 = vmatmul.msk.f32.vlgmr.msra.gmra.mxu0 %vm172_vm1, %v3901_v6  ;;  %3156 = vmatmul.msk.f32.vlgmr.msra.gmra.mxu2 %vm172_vm1, %v3906_v7  ;;  %5972 = vst [vmem:[#allocation20_spill] sm:$0xff] %v3922_v12  ;;  %v3925_v13 = vld [vmem:[#allocation6 + $0x1c0] sm:$0xff]  ;;  %v3933_v15 = vld [vmem:[%s5822_s0 + $0x8] sm:$0xff]  ;;  %v3947_v19 = vld [vmem:[#allocation6 + $0x1d8] sm:$0xff] }
  0x24   :  { %3170 = vmatmul.msk.f32.vlgmr.msra.gmra.mxu3 %vm172_vm1, %v3901_v6  ;;  %3160 = vmatpush.msk.msrb.mxu2 %vm197_vm0, %v160_v8  ;;  %v3935_v16 = vld [vmem:[#allocation6 + $0x1a8] sm:$0xff]  ;;  %v3939_v17 = vld [vmem:[#allocation6 + $0x1a0] sm:$0xff]  ;;  %v3958_v22 = vld [vmem:[#allocation6 + $0x1b8] sm:$0xff] }
  0x25   :  { %266 = vmatpush.msra.mxu1 %v155_v4  ;;  %474 = vmatpush.msrb.mxu0 %v3918_v11  ;;  %5973 = vst [vmem:[#allocation21_spill] sm:$0xff] %v3935_v16  ;;  %v3944_v18 = vld [vmem:[%s5822_s0 + $0x28] sm:$0xff]  ;;  %v3953_v21 = vld [vmem:[#allocation6 + $0x180] sm:$0xff]  ;;  %v3966_v24 = vld [vmem:[#allocation6 + $0x1f0] sm:$0xff] }
  0x26   :  { %3152 = vmatmul.msk.f32.vlgmr.msra.gmra.mxu1 %vm172_vm1, %v3901_v6  ;;  %307 = vmatpush.msrb.mxu2 %v156_v10  ;;  %v3949_v20 = vld [vmem:[#allocation6 + $0x188] sm:$0xff]  ;;  %v3970_v25 = vld [vmem:[#allocation6 + $0x160] sm:$0xff]  ;;  %v3972_v26 = vld [vmem:[#allocation6 + $0x198] sm:$0xff] }
  0x27   :  { %494 = vmatpush.msrb.mxu1 %v3915_v9  ;;  %475 = vmatpush.msrb.mxu0 %v3925_v13  ;;  %v3964_v23 = vld [vmem:[#allocation6 + $0x168] sm:$0xff]  ;;  %v3979_v28 = vld [vmem:[#allocation6 + $0x1d0] sm:$0xff]  ;;  %v3983_v29 = vld [vmem:[#allocation6 + $0x140] sm:$0xff] }
  0x28   :  { %534 = vmatpush.msrb.mxu3 %v3928_v14  ;;  %v3976_v27 = vld [vmem:[#allocation6 + $0x148] sm:$0xff]  ;;  %514 = vmatpush.msra.mxu2 %v3966_v24  ;;  %v3985_v30 = vld [vmem:[#allocation6 + $0x178] sm:$0xff]  ;;  %v3990_v31 = vld [vmem:[%s5822_s0 + $0x10] sm:$0xff] }
  0x29   :  { %495 = vmatpush.msrb.mxu1 %v3922_v12  ;;  %476 = vmatpush.msrb.mxu0 %v3939_v17  ;;  %5974 = vst [vmem:[#allocation22_spill] sm:$0xff] %v3976_v27  ;;  %v3992_v32 = vld [vmem:[#allocation6 + $0x128] sm:$0xff]  ;;  %v3999_v33 = vld [vmem:[%s5822_s0 + $0x30] sm:$0xff]  ;;  %v4012_v36 = vld [vmem:[#allocation6 + $0x120] sm:$0xff] }
  0x2a   :  { %535 = vmatpush.msrb.mxu3 %v3947_v19  ;;  %515 = vmatpush.msra.mxu2 %v3979_v28  ;;  %v4003_v34 = vld [vmem:[#allocation6 + $0x108] sm:$0xff]  ;;  %v4007_v35 = vld [vmem:[#allocation6 + $0x1b0] sm:$0xff]  ;;  %v4020_v38 = vld [vmem:[#allocation6 + $0x158] sm:$0xff] }
  0x2b   :  { %3144 = vmatmul.msk.f32.gmra.mxu0 %vm172_vm1, %v3933_v15  ;;  %496 = vmatpush.msrb.mxu1 %v3935_v16  ;;  %v4018_v37 = vld [vmem:[#allocation6 + $0xe8] sm:$0xff]  ;;  %v4024_v39 = vld [vmem:[#allocation6 + $0x190] sm:$0xff]  ;;  %v4026_v40 = vld [vmem:[#allocation6 + $0x100] sm:$0xff] }
  0x2c   :  { %3157 = vmatmul.msk.f32.gmra.mxu2 %vm172_vm1, %v3944_v18  ;;  %3171 = vmatmul.msk.f32.gmra.mxu3 %vm172_vm1, %v3933_v15  ;;  %v4030_v41 = vld [vmem:[#allocation6 + $0xc8] sm:$0xff]  ;;  %v4033_v42 = vld [vmem:[#allocation6 + $0x138] sm:$0xff]  ;;  %v4037_v43 = vld [vmem:[#allocation6 + $0x170] sm:$0xff] }
  0x2d   :  { %497 = vmatpush.msrb.mxu1 %v3949_v20  ;;  %477 = vmatpush.msrb.mxu0 %v3953_v21  ;;  %v4039_v44 = vld [vmem:[#allocation6 + $0xe0] sm:$0xff]  ;;  %v4044_v45 = vld [vmem:[%s5822_s0 + $0x18] sm:$0xff]  ;;  %v4046_v46 = vld [vmem:[#allocation6 + $0xa8] sm:$0xff] }
  0x2e   :  { %3153 = vmatmul.msk.f32.gmra.mxu1 %vm172_vm1, %v3933_v15  ;;  %536 = vmatpush.msrb.mxu3 %v3958_v22  ;;  %5975 = vst [vmem:[#allocation23_spill] sm:$0xff] %v4046_v46  ;;  %v4053_v47 = vld [vmem:[%s5822_s0 + $0x38] sm:$0xff]  ;;  %v4057_v48 = vld [vmem:[#allocation6 + $0x88] sm:$0xff]  ;;  %v4066_v50 = vld [vmem:[#allocation6 + $0xc0] sm:$0xff] }
  0x2f   :  { %498 = vmatpush.msrb.mxu1 %v3964_v23  ;;  %478 = vmatpush.msrb.mxu0 %v3970_v25  ;;  %5976 = vst [vmem:[#allocation24_spill] sm:$0xff] %v4057_v48  ;;  %v4059_v49 = vld [vmem:[#allocation6 + $0x118] sm:$0xff]  ;;  %v4072_v51 = vld [vmem:[#allocation6 + $0x68] sm:$0xff]  ;;  %v4078_v53 = vld [vmem:[#allocation6 + $0x150] sm:$0xff] }
  0x30   :  { %537 = vmatpush.msrb.mxu3 %v3972_v26  ;;  %516 = vmatpush.msra.mxu2 %v4007_v35  ;;  %5977 = vst [vmem:[#allocation25_spill] sm:$0xff] %v4072_v51  ;;  %v4074_v52 = vld [vmem:[#allocation6 + $0xf8] sm:$0xff]  ;;  %v4080_v54 = vld [vmem:[#allocation6 + $0xa0] sm:$0xff]  ;;  %v4084_v55 = vld [vmem:[#allocation6 + $0x48] sm:$0xff] }
  0x31   :  { %499 = vmatpush.msrb.mxu1 %v3976_v27  ;;  %479 = vmatpush.msrb.mxu0 %v3983_v29  ;;  %5978 = vst [vmem:[#allocation26_spill] sm:$0xff] %v4080_v54  ;;  %v4087_v56 = vld [vmem:[#allocation6 + $0xd8] sm:$0xff]  ;;  %v4091_v57 = vld [vmem:[#allocation6 + $0x80] sm:$0xff]  ;;  %v4093_v58 = vld [vmem:[#allocation6 + $0x130] sm:$0xff] }
  0x32   :  { %538 = vmatpush.msrb.mxu3 %v3985_v30  ;;  %517 = vmatpush.msra.mxu2 %v4024_v39  ;;  %5979 = vst [vmem:[#allocation27_spill] sm:$0xff] %v4084_v55  ;;  %v4095_v59 = vld [vmem:[#allocation6 + $0x28] sm:$0xff]  ;;  %v4103_v61 = vld [vmem:[#allocation6 + $0xb8] sm:$0xff]  ;;  %v4110_v62 = vld [vmem:[#allocation6 + $0x60] sm:$0xff] }
  0x33   :  { %3145 = vmatmul.msk.f32.gmra.mxu0 %vm172_vm1, %v3990_v31  ;;  %500 = vmatpush.msrb.mxu1 %v3992_v32  ;;  %5980 = vst [vmem:[#allocation28_spill] sm:$0xff] %v4091_v57  ;;  %v4101_v60 = vld [vmem:[#allocation6 + $0x8] sm:$0xff]  ;;  %v4116_v63 = vld [vmem:[#allocation6 + $0x98] sm:$0xff]  ;;  %v4118_v0 = vld [vmem:[#allocation6 + $0x110] sm:$0xff] }
  0x34   :  { %3158 = vmatmul.msk.f32.gmra.mxu2 %vm172_vm1, %v3999_v33  ;;  %3172 = vmatmul.msk.f32.gmra.mxu3 %vm172_vm1, %v3990_v31  ;;  %5981 = vst [vmem:[#allocation29_spill] sm:$0xff] %v4095_v59  ;;  %v4122_v1 = vld [vmem:[#allocation6 + $0x40] sm:$0xff]  ;;  %v4126_v3 = vld [vmem:[#allocation6 + $0x78] sm:$0xff]  ;;  %v4128_v4 = vld [vmem:[#allocation6 + $0xf0] sm:$0xff] }
  0x35   :  { %501 = vmatpush.msrb.mxu1 %v4003_v34  ;;  %480 = vmatpush.msrb.mxu0 %v4012_v36  ;;  %5982 = vst [vmem:[#allocation30_spill] sm:$0xff] %v4101_v60  ;;  %v4132_v5 = vld [vmem:[#allocation6 + $0x20] sm:$0xff]  ;;  %v4141_v8 = vld [vmem:[#allocation6 + $0x38] sm:$0xff] }
  0x36   :  { %3154 = vmatmul.msk.f32.gmra.mxu1 %vm172_vm1, %v3990_v31  ;;  %539 = vmatpush.msrb.mxu3 %v4020_v38  ;;  %5983 = vst [vmem:[#allocation31_spill] sm:$0xff] %v4103_v61  ;;  %v4143_v10 = vld [vmem:[#allocation6] sm:$0xff] }
  0x37   :  { %502 = vmatpush.msrb.mxu1 %v4018_v37  ;;  %481 = vmatpush.msrb.mxu0 %v4026_v40  ;;  %5984 = vst [vmem:[#allocation32_spill] sm:$0xff] %v4110_v62 }
  0x38   :  { %540 = vmatpush.msrb.mxu3 %v4033_v42  ;;  %518 = vmatpush.msra.mxu2 %v4037_v43  ;;  %5985 = vst [vmem:[#allocation33_spill] sm:$0xff] %v4116_v63 }
  0x39   :  { %503 = vmatpush.msrb.mxu1 %v4030_v41  ;;  %482 = vmatpush.msrb.mxu0 %v4039_v44  ;;  %5986 = vst [vmem:[#allocation34_spill] sm:$0xff] %v4122_v1 }
  0x3a   :  { %541 = vmatpush.msrb.mxu3 %v4059_v49  ;;  %519 = vmatpush.msra.mxu2 %v4078_v53  ;;  %5987 = vst [vmem:[#allocation35_spill] sm:$0xff] %v4126_v3 }
  0x3b   :  { %3146 = vmatmul.msk.f32.gmra.mxu0 %vm172_vm1, %v4044_v45  ;;  %504 = vmatpush.msrb.mxu1 %v4046_v46  ;;  %5988 = vst [vmem:[#allocation36_spill] sm:$0xff] %v4128_v4 }
  0x3c   :  { %3159 = vmatmul.msk.f32.gmra.mxu2 %vm172_vm1, %v4053_v47  ;;  %3173 = vmatmul.msk.f32.gmra.mxu3 %vm172_vm1, %v4044_v45  ;;  %5989 = vst [vmem:[#allocation37_spill] sm:$0xff] %v4132_v5 }
  0x3d   :  { %505 = vmatpush.msrb.mxu1 %v4057_v48  ;;  %483 = vmatpush.msrb.mxu0 %v4066_v50  ;;  %5991 = vst [vmem:[#allocation39_spill] sm:$0xff] %v4141_v8 }
  0x3e   :  { %3155 = vmatmul.msk.f32.gmra.mxu1 %vm172_vm1, %v4044_v45  ;;  %542 = vmatpush.msrb.mxu3 %v4074_v52  ;;  %5992 = vst [vmem:[#allocation40_spill] sm:$0xff] %v4143_v10 }
  0x3f   :  { %506 = vmatpush.msrb.mxu1 %v4072_v51  ;;  %484 = vmatpush.msrb.mxu0 %v4080_v54 }
  0x40   :  { %543 = vmatpush.msrb.mxu3 %v4087_v56  ;;  %520 = vmatpush.msra.mxu2 %v4093_v58 }
  0x41   :  { %507 = vmatpush.msrb.mxu1 %v4084_v55  ;;  %485 = vmatpush.msrb.mxu0 %v4091_v57 }
  0x42   :  { %544 = vmatpush.msrb.mxu3 %v4103_v61  ;;  %521 = vmatpush.msra.mxu2 %v4118_v0 }
  0x43   :  { %3147 = vmatmul.msk.f32.gmra.mxu0 %vm172_vm1, %v3906_v7  ;;  %508 = vmatpush.msrb.mxu1 %v4095_v59 }
  0x44   :  { %3161 = vmatmul.msk.f32.vlgmr.msrb.gmra.mxu2 %vm172_vm1, %v3901_v6  ;;  %3174 = vmatmul.msk.f32.gmra.mxu3 %vm172_vm1, %v3906_v7  ;;  %v4135_v6 = vld [vmem:[#allocation6 + $0x58] sm:$0xff] }
  0x45   :  { %509 = vmatpush.msrb.mxu1 %v4101_v60  ;;  %486 = vmatpush.msrb.mxu0 %v4110_v62  ;;  %5990 = vst [vmem:[#allocation38_spill] sm:$0xff] %v4135_v6 }
  0x46   :  { %510 = vmatmul.f32.vlgmr.msrb.gmra.mxu1 %v5835_v2  ;;  %545 = vmatpush.msrb.mxu3 %v4116_v63  ;;  %v4149_v2 = vld [vmem:[#allocation6 + $0xd0] sm:$0xff] }
  0x47   :  { %487 = vmatpush.msrb.mxu0 %v4122_v1  ;;  %646 = vmatpush.msra.mxu1 %v3915_v9  ;;  %v4155_v9 = vld [vmem:[#allocation6 + $0x18] sm:$0xff] }
  0x48   :  { %546 = vmatpush.msrb.mxu3 %v4126_v3  ;;  %522 = vmatpush.msra.mxu2 %v4128_v4  ;;  %5993 = vst [vmem:[#allocation41_spill] sm:$0xff] %v4155_v9 }
  0x49   :  { %488 = vmatpush.msrb.mxu0 %v4132_v5  ;;  %647 = vmatpush.msra.mxu1 %v3922_v12  ;;  %v4159_v12 = vld [vmem:[#allocation6 + $0xb0] sm:$0xff] }
  0x4a   :  { %547 = vmatpush.msrb.mxu3 %v4135_v6  ;;  %5994 = vst [vmem:[#allocation42_spill] sm:$0xff] %v4159_v12  ;;  %523 = vmatpush.msra.mxu2 %v4149_v2  ;;  %v4164_v5 = vld [vmem:[#allocation6 + $0x90] sm:$0xff] }
  0x4b   :  { %3148 = vmatmul.msk.f32.gmra.mxu0 %vm172_vm1, %v3944_v18  ;;  %5995 = vst [vmem:[#allocation43_spill] sm:$0xff] %v4164_v5  ;;  %648 = vmatpush.msra.mxu1 %v3935_v16  ;;  %v4182_v16 = vld [vmem:[#allocation6 + $0x50] sm:$0xff] }
  0x4c   :  { %3162 = vmatmul.msk.f32.gmra.mxu2 %vm172_vm1, %v3933_v15  ;;  %3175 = vmatmul.msk.f32.gmra.mxu3 %vm172_vm1, %v3944_v18  ;;  %v4180_v15 = vld [vmem:[#allocation6 + $0x70] sm:$0xff]  ;;  %5997 = vst [vmem:[#allocation45_spill] sm:$0xff] %v4182_v16 }
  0x4d   :  { %548 = vmatpush.msrb.mxu3 %v4141_v8  ;;  %489 = vmatpush.msrb.mxu0 %v4143_v10  ;;  %5996 = vst [vmem:[#allocation44_spill] sm:$0xff] %v4180_v15 }
  0x4e   :  { %524 = vmatpush.msra.mxu2 %v4159_v12  ;;  %649 = vmatpush.msra.mxu1 %v3949_v20 }
  0x4f   :  { %626 = vmatpush.msra.mxu0 %v3918_v11  ;;  %549 = vmatpush.msrb.mxu3 %v4155_v9 }
  0x50   :  { %525 = vmatpush.msra.mxu2 %v4164_v5  ;;  %650 = vmatpush.msra.mxu1 %v3964_v23 }
  0x51   :  { %686 = vmatpush.msra.mxu3 %v3928_v14  ;;  %627 = vmatpush.msra.mxu0 %v3925_v13 }
  0x52   :  { %526 = vmatpush.msra.mxu2 %v4180_v15  ;;  %651 = vmatpush.msra.mxu1 %v3976_v27  ;;  %v4203_v27 = vld [vmem:[#allocation6 + $0x10] sm:$0xff] }
  0x53   :  { %687 = vmatpush.msra.mxu3 %v3947_v19  ;;  %3149 = vmatmul.msk.f32.gmra.mxu0 %vm172_vm1, %v3999_v33  ;;  %5999 = vst [vmem:[#allocation47_spill] sm:$0xff] %v4203_v27 }
  0x54   :  { %3163 = vmatmul.msk.f32.gmra.mxu2 %vm172_vm1, %v3990_v31  ;;  %3176 = vmatmul.msk.f32.gmra.mxu3 %vm172_vm1, %v3999_v33  ;;  %v4201_v31 = vld [vmem:[#allocation6 + $0x30] sm:$0xff] }
  0x55   :  { %628 = vmatpush.msra.mxu0 %v3939_v17  ;;  %688 = vmatpush.msra.mxu3 %v3958_v22  ;;  %5998 = vst [vmem:[#allocation46_spill] sm:$0xff] %v4201_v31 }
  0x56   :  { %527 = vmatpush.msra.mxu2 %v4182_v16  ;;  %652 = vmatpush.msra.mxu1 %v3992_v32 }
  0x57   :  { %629 = vmatpush.msra.mxu0 %v3953_v21  ;;  %689 = vmatpush.msra.mxu3 %v3972_v26 }
  0x58   :  { %653 = vmatpush.msra.mxu1 %v4003_v34  ;;  %528 = vmatpush.msra.mxu2 %v4201_v31 }
  0x59   :  { %630 = vmatpush.msra.mxu0 %v3970_v25  ;;  %690 = vmatpush.msra.mxu3 %v3985_v30 }
  0x5a   :  { %654 = vmatpush.msra.mxu1 %v4018_v37  ;;  %529 = vmatpush.msra.mxu2 %v4203_v27 }
  0x5b   :  { %3150 = vmatmul.msk.f32.gmra.mxu0 %vm172_vm1, %v4053_v47  ;;  %691 = vmatpush.msra.mxu3 %v4020_v38 }
  0x5c   :  { %3164 = vmatmul.msk.f32.gmra.mxu2 %vm172_vm1, %v4044_v45  ;;  %3177 = vmatmul.msk.f32.gmra.mxu3 %vm172_vm1, %v4053_v47  ;;  %v6000_v45 = vmov 0.0  }
  0x5d   :  { %631 = vmatpush.msra.mxu0 %v3983_v29  ;;  %666 = vmatpush.msrb.mxu2 %v3966_v24 }
  0x5e   :  { %692 = vmatpush.msra.mxu3 %v4033_v42  ;;  %655 = vmatpush.msra.mxu1 %v4030_v41 }
  0x5f   :  { %632 = vmatpush.msra.mxu0 %v4012_v36  ;;  %667 = vmatpush.msrb.mxu2 %v3979_v28 }
  0x60   :  { %693 = vmatpush.msra.mxu3 %v4059_v49  ;;  %656 = vmatpush.msra.mxu1 %v4046_v46 }
  0x61   :  { %633 = vmatpush.msra.mxu0 %v4026_v40  ;;  %668 = vmatpush.msrb.mxu2 %v4007_v35 }
  0x62   :  { %694 = vmatpush.msra.mxu3 %v4074_v52  ;;  %657 = vmatpush.msra.mxu1 %v4057_v48 }
  0x63   :  { %490 = vmatmul.f32.vlgmr.msrb.gmra.mxu0 %v6000_v45  ;;  %669 = vmatpush.msrb.mxu2 %v4024_v39 }
  0x64   :  { %3165 = vmatmul.msk.f32.gmra.mxu2 %vm172_vm1, %v3906_v7  ;;  %550 = vmatmul.f32.vlgmr.msrb.gmra.mxu3 %v6000_v45  ;;  %v6001_v7 = vld [vmem:[#allocation37_spill] sm:$0xff] }
  0x65   :  { %634 = vmatpush.msra.mxu0 %v4039_v44  ;;  %695 = vmatpush.msra.mxu3 %v4087_v56 }
  0x66   :  { %658 = vmatpush.msra.mxu1 %v4072_v51  ;;  %670 = vmatpush.msrb.mxu2 %v4037_v43 }
  0x67   :  { %635 = vmatpush.msra.mxu0 %v4066_v50  ;;  %696 = vmatpush.msra.mxu3 %v4103_v61 }
  0x68   :  { %659 = vmatpush.msra.mxu1 %v4084_v55  ;;  %671 = vmatpush.msrb.mxu2 %v4078_v53 }
  0x69   :  { %636 = vmatpush.msra.mxu0 %v4080_v54  ;;  %697 = vmatpush.msra.mxu3 %v4116_v63 }
  0x6a   :  { %672 = vmatpush.msrb.mxu2 %v4093_v58  ;;  %660 = vmatpush.msra.mxu1 %v4095_v59 }
  0x6b   :  { %637 = vmatpush.msra.mxu0 %v4091_v57  ;;  %698 = vmatpush.msra.mxu3 %v4126_v3 }
  0x6c   :  { %3166 = vmatmul.msk.f32.gmra.mxu2 %vm172_vm1, %v3944_v18  ;;  %661 = vmatpush.msra.mxu1 %v4101_v60  ;;  %v6002_v18 = vld [vmem:[#allocation19_spill] sm:$0xff] }
  0x6d   :  { %638 = vmatpush.msra.mxu0 %v4110_v62  ;;  %673 = vmatpush.msrb.mxu2 %v4118_v0 }
  0x6e   :  { %699 = vmatpush.msra.mxu3 %v4135_v6  ;;  %798 = vmatpush.msrb.mxu1 %v6002_v18  ;;  %v6004_v18 = vld [vmem:[#allocation21_spill] sm:$0xff] }
  0x6f   :  { %639 = vmatpush.msra.mxu0 %v4122_v1  ;;  %674 = vmatpush.msrb.mxu2 %v4128_v4  ;;  %v6003_v4 = vld [vmem:[#allocation20_spill] sm:$0xff] }
  0x70   :  { %700 = vmatpush.msra.mxu3 %v4141_v8  ;;  %799 = vmatpush.msrb.mxu1 %v6003_v4 }
  0x71   :  { %640 = vmatpush.msra.mxu0 %v6001_v7  ;;  %675 = vmatpush.msrb.mxu2 %v4149_v2 }
  0x72   :  { %701 = vmatpush.msra.mxu3 %v4155_v9  ;;  %800 = vmatpush.msrb.mxu1 %v6004_v18 }
  0x73   :  { %641 = vmatpush.msra.mxu0 %v4143_v10  ;;  %676 = vmatpush.msrb.mxu2 %v4159_v12 }
  0x74   :  { %3167 = vmatmul.msk.f32.gmra.mxu2 %vm172_vm1, %v3999_v33  ;;  %838 = vmatpush.msrb.mxu3 %v3928_v14  ;;  %v6005_v33 = vld [vmem:[#allocation22_spill] sm:$0xff] }
  0x75   :  { %778 = vmatpush.msrb.mxu0 %v3918_v11  ;;  %677 = vmatpush.msrb.mxu2 %v4164_v5 }
  0x76   :  { %839 = vmatpush.msrb.mxu3 %v3947_v19  ;;  %801 = vmatpush.msrb.mxu1 %v3949_v20 }
  0x77   :  { %779 = vmatpush.msrb.mxu0 %v3925_v13  ;;  %678 = vmatpush.msrb.mxu2 %v4180_v15 }
  0x78   :  { %840 = vmatpush.msrb.mxu3 %v3958_v22  ;;  %802 = vmatpush.msrb.mxu1 %v3964_v23 }
  0x79   :  { %780 = vmatpush.msrb.mxu0 %v3939_v17  ;;  %679 = vmatpush.msrb.mxu2 %v4182_v16 }
  0x7a   :  { %841 = vmatpush.msrb.mxu3 %v3972_v26  ;;  %803 = vmatpush.msrb.mxu1 %v6005_v33 }
  0x7b   :  { %781 = vmatpush.msrb.mxu0 %v3953_v21  ;;  %680 = vmatpush.msrb.mxu2 %v4201_v31 }
  0x7c   :  { %3168 = vmatmul.msk.f32.gmra.mxu2 %vm172_vm1, %v4053_v47  ;;  %842 = vmatpush.msrb.mxu3 %v3985_v30  ;;  %v6006_v47 = vld [vmem:[#allocation36_spill] sm:$0xff] }
  0x7d   :  { %782 = vmatpush.msrb.mxu0 %v3970_v25  ;;  %681 = vmatpush.msrb.mxu2 %v4203_v27 }
  0x7e   :  { %843 = vmatpush.msrb.mxu3 %v4020_v38  ;;  %804 = vmatpush.msrb.mxu1 %v3992_v32 }
  0x7f   :  { %783 = vmatpush.msrb.mxu0 %v3983_v29 }
  0x80   :  { %844 = vmatpush.msrb.mxu3 %v4033_v42  ;;  %805 = vmatpush.msrb.mxu1 %v4003_v34 }
  0x81   :  { %784 = vmatpush.msrb.mxu0 %v4012_v36 }
  0x82   :  { %845 = vmatpush.msrb.mxu3 %v4059_v49  ;;  %806 = vmatpush.msrb.mxu1 %v4018_v37 }
  0x83   :  { %785 = vmatpush.msrb.mxu0 %v4026_v40 }
  0x84   :  { %530 = vmatmul.f32.vlgmr.msra.gmra.mxu2 %v6000_v45  ;;  %846 = vmatpush.msrb.mxu3 %v4074_v52 }
  0x85   :  { %818 = vmatpush.msra.mxu2 %v3966_v24  ;;  %786 = vmatpush.msrb.mxu0 %v4039_v44 }
  0x86   :  { %807 = vmatpush.msrb.mxu1 %v4030_v41  ;;  %847 = vmatpush.msrb.mxu3 %v4087_v56 }
  0x87   :  { %819 = vmatpush.msra.mxu2 %v3979_v28  ;;  %787 = vmatpush.msrb.mxu0 %v4066_v50 }
  0x88   :  { %808 = vmatpush.msrb.mxu1 %v4046_v46  ;;  %848 = vmatpush.msrb.mxu3 %v4103_v61 }
  0x89   :  { %820 = vmatpush.msra.mxu2 %v4007_v35  ;;  %788 = vmatpush.msrb.mxu0 %v4080_v54 }
  0x8a   :  { %809 = vmatpush.msrb.mxu1 %v4057_v48  ;;  %849 = vmatpush.msrb.mxu3 %v4116_v63 }
  0x8b   :  { %821 = vmatpush.msra.mxu2 %v4024_v39  ;;  %789 = vmatpush.msrb.mxu0 %v4091_v57 }
  0x8c   :  { %810 = vmatpush.msrb.mxu1 %v4072_v51  ;;  %850 = vmatpush.msrb.mxu3 %v4126_v3 }
  0x8d   :  { %822 = vmatpush.msra.mxu2 %v4037_v43  ;;  %790 = vmatpush.msrb.mxu0 %v4110_v62 }
  0x8e   :  { %811 = vmatpush.msrb.mxu1 %v4084_v55  ;;  %851 = vmatpush.msrb.mxu3 %v4135_v6 }
  0x8f   :  { %823 = vmatpush.msra.mxu2 %v4078_v53  ;;  %791 = vmatpush.msrb.mxu0 %v4122_v1 }
  0x90   :  { %812 = vmatpush.msrb.mxu1 %v4095_v59  ;;  %852 = vmatpush.msrb.mxu3 %v4141_v8 }
  0x91   :  { %824 = vmatpush.msra.mxu2 %v4093_v58  ;;  %792 = vmatpush.msrb.mxu0 %v6001_v7 }
  0x92   :  { %813 = vmatpush.msrb.mxu1 %v4101_v60  ;;  %853 = vmatpush.msrb.mxu3 %v4155_v9  ;;  %v162_v9 = vld [vmem:[%s5825_s3] sm:$0xf] }
  0x93   :  { %825 = vmatpush.msra.mxu2 %v4118_v0  ;;  %793 = vmatpush.msrb.mxu0 %v4143_v10  ;;  %v164_v60 = vperm.slane %v162_v9, 0  ;;  %v166_v48 = vperm.slane %v162_v9, 2 }
  0x95   :  { %826 = vmatpush.msra.mxu2 %v6006_v47 }
  0x97   :  { %827 = vmatpush.msra.mxu2 %v4149_v2 }
  0x99   :  { %828 = vmatpush.msra.mxu2 %v4159_v12 }
  0x9b   :  { %829 = vmatpush.msra.mxu2 %v4164_v5 }
  0x9d   :  { %830 = vmatpush.msra.mxu2 %v4180_v15 }
  0x9f   :  { %831 = vmatpush.msra.mxu2 %v4182_v16  ;;  %v167_v16 = vperm.slane %v162_v9, 3 }
  0xa0   :  { %v227_v45 = vpop.f32.mrf.mxu0 }
  0xa1   :  { %832 = vmatpush.msra.mxu2 %v4201_v31 }
  0xa3   :  { %v268_v10 = vpop.f32.mrf.mxu1  ;;  %833 = vmatpush.msra.mxu2 %v4203_v27 }
  0xa6   :  { %v4331_v8 = vpop.f32.mrf.mxu2 }
  0xa7   :  { %6007 = vst [vmem:[#allocation20_spill] sm:$0xff] %v4331_v8  ;;  %v350_v59 = vpop.f32.mrf.mxu3 }
  0xa8   :  { %v230_v7 = vpop.f32.mrf.mxu0 }
  0xa9   :  { %v4333_v6 = vadd.f32 %v230_v7, %v164_v60 }
  0xab   :  { %6008 = vst [vmem:[#allocation21_spill] sm:$0xff] %v4333_v6  ;;  %v4335_v55 = vpop.f32.mrf.mxu1 }
  0xac   :  { %6009 = vst [vmem:[#allocation22_spill] sm:$0xff] %v4335_v55  ;;  %v4351_v55 = vperm.slane %v162_v9, 1 }
  0xae   :  { %6017 = vst [vmem:[#allocation54_spill] sm:$0xff] %v4351_v55  ;;  %v269_v61 = vadd.f32 %v268_v10, %v4351_v55 }
  0xaf   :  { %v4337_v1 = vpop.f32.mrf.mxu2  ;;  %v353_v31 = vpop.f32.mrf.mxu3 }
  0xb0   :  { %6010 = vst [vmem:[#allocation36_spill] sm:$0xff] %v4337_v1  ;;  %v4339_v3 = vadd.f32 %v353_v31, %v167_v16  ;;  %v233_v27 = vpop.f32.mrf.mxu0 }
  0xb1   :  { %v4341_v15 = vadd.f32 %v233_v27, %v164_v60 }
  0xb2   :  { %6011 = vst [vmem:[#allocation48_spill] sm:$0xff] %v4339_v3 }
  0xb3   :  { %6012 = vst [vmem:[#allocation49_spill] sm:$0xff] %v4341_v15  ;;  %v4343_v51 = vpop.f32.mrf.mxu1 }
  0xb4   :  { %6013 = vst [vmem:[#allocation50_spill] sm:$0xff] %v4343_v51 }
  0xb7   :  { %v4345_v62 = vpop.f32.mrf.mxu2  ;;  %v356_v8 = vpop.f32.mrf.mxu3 }
  0xb8   :  { %6014 = vst [vmem:[#allocation51_spill] sm:$0xff] %v4345_v62  ;;  %v4347_v63 = vadd.f32 %v356_v8, %v167_v16  ;;  %v236_v7 = vpop.f32.mrf.mxu0 }
  0xb9   :  { %v4349_v6 = vadd.f32 %v236_v7, %v164_v60 }
  0xba   :  { %6015 = vst [vmem:[#allocation52_spill] sm:$0xff] %v4347_v63 }
  0xbb   :  { %6016 = vst [vmem:[#allocation53_spill] sm:$0xff] %v4349_v6  ;;  %v277_v5 = vpop.f32.mrf.mxu1 }
  0xbc   :  { %v4354_v1 = vadd.f32 %v277_v5, %v4351_v55 }
  0xbe   :  { %6018 = vst [vmem:[#allocation55_spill] sm:$0xff] %v4354_v1 }
  0xbf   :  { %v4356_v31 = vpop.f32.mrf.mxu2  ;;  %v359_v27 = vpop.f32.mrf.mxu3 }
  0xc0   :  { %6019 = vst [vmem:[#allocation56_spill] sm:$0xff] %v4356_v31  ;;  %v4358_v15 = vadd.f32 %v359_v27, %v167_v16  ;;  %v239_v51 = vpop.f32.mrf.mxu0 }
  0xc1   :  { %v4360_v3 = vadd.f32 %v239_v51, %v164_v60 }
  0xc2   :  { %6020 = vst [vmem:[#allocation57_spill] sm:$0xff] %v4358_v15 }
  0xc3   :  { %6021 = vst [vmem:[#allocation58_spill] sm:$0xff] %v4360_v3 }
  0xc7   :  { %v4362_v62 = vpop.f32.mrf.mxu2  ;;  %v362_v8 = vpop.f32.mrf.mxu3 }
  0xc8   :  { %v4364_v63 = vadd.f32 %v362_v8, %v167_v16  ;;  %v242_v7 = vpop.f32.mrf.mxu0 }
  0xc9   :  { %v4366_v6 = vadd.f32 %v242_v7, %v164_v60 }
  0xca   :  { %6022 = vst [vmem:[#allocation59_spill] sm:$0xff] %v4364_v63 }
  0xcb   :  { %6023 = vst [vmem:[#allocation60_spill] sm:$0xff] %v4366_v6  ;;  %v511_v6 = vpop.f32.mrf.mxu1 }
  0xcc   :  { %v555_v63 = vadd.f32 %v511_v6, %v269_v61 }
  0xcf   :  { %v312_v57 = vpop.f32.mrf.mxu2  ;;  %v365_v5 = vpop.f32.mrf.mxu3 }
  0xd0   :  { %v4368_v1 = vadd.f32 %v312_v57, %v166_v48  ;;  %v4370_v31 = vadd.f32 %v365_v5, %v167_v16  ;;  %v245_v27 = vpop.f32.mrf.mxu0  ;;  %v228_v57 = vadd.f32 %v227_v45, %v164_v60 }
  0xd1   :  { %v4372_v15 = vadd.f32 %v245_v27, %v164_v60 }
  0xd2   :  { %6024 = vst [vmem:[#allocation61_spill] sm:$0xff] %v4368_v1 }
  0xd3   :  { %6025 = vst [vmem:[#allocation62_spill] sm:$0xff] %v4370_v31  ;;  %v3179_v31 = vmul.f32 -1.442695, %v555_v63 }
  0xd4   :  { %6026 = vst [vmem:[#allocation63_spill] sm:$0xff] %v4372_v15 }
  0xd5   :  { %3242 = vpow2.f32 %v3179_v31 }
  0xd7   :  { %v315_v51 = vpop.f32.mrf.mxu2  ;;  %v368_v3 = vpop.f32.mrf.mxu3 }
  0xd8   :  { %v4375_v12 = vadd.f32 %v315_v51, %v166_v48  ;;  %v4377_v8 = vadd.f32 %v368_v3, %v167_v16  ;;  %v248_v7 = vpop.f32.mrf.mxu0 }
  0xd9   :  { %v4379_v9 = vadd.f32 %v248_v7, %v164_v60 }
  0xda   :  { %6027 = vst [vmem:[#allocation64_spill] sm:$0xff] %v4375_v12 }
  0xdb   :  { %6028 = vst [vmem:[#allocation65_spill] sm:$0xff] %v4377_v8  ;;  %v351_v8 = vadd.f32 %v350_v59, %v167_v16  ;;  %v3243_v7 = vpop.eup %3242 }
  0xdc   :  { %6029 = vst [vmem:[#allocation66_spill] sm:$0xff] %v4379_v9  ;;  %v580_v6 = vadd.f32 1.0, %v3243_v7 }
  0xde   :  { %vm586_vm2 = vweird.f32 %v580_v6 }
  0xdf   :  { %v318_v1 = vpop.f32.mrf.mxu2  ;;  %v371_v5 = vpop.f32.mrf.mxu3 }
  0xe0   :  { %v4381_v46 = vadd.f32 %v318_v1, %v166_v48  ;;  %v4383_v27 = vadd.f32 %v371_v5, %v167_v16  ;;  %v491_v15 = vpop.f32.mrf.mxu0 }
  0xe1   :  { %v554_v54 = vadd.f32 %v491_v15, %v228_v57 }
  0xe2   :  { %6030 = vst [vmem:[#allocation67_spill] sm:$0xff] %v4381_v46 }
  0xe3   :  { %6031 = vst [vmem:[#allocation68_spill] sm:$0xff] %v4383_v27  ;;  %v3178_v10 = vmul.f32 -1.442695, %v554_v54  ;;  %v592_v27 = vand.u32 2147483648, %v580_v6 }
  0xe5   :  { %3244 = vpow2.f32 %v3178_v10  ;;  %v593_v46 = vor.u32 1.1754944e-38, %v592_v27 }
  0xe6   :  { %3246 = vrcp.f32 %v580_v6 }
  0xe7   :  { %v321_v3 = vpop.f32.mrf.mxu2  ;;  %v551_v51 = vpop.f32.mrf.mxu3 }
  0xe8   :  { %v4385_v12 = vadd.f32 %v321_v3, %v166_v48  ;;  %v557_v61 = vadd.f32 %v551_v51, %v351_v8 }
  0xea   :  { %6032 = vst [vmem:[#allocation69_spill] sm:$0xff] %v4385_v12  ;;  %v3180_v45 = vmul.f32 -1.442695, %v557_v61 }
  0xeb   :  { %v3245_v60 = vpop.eup %3244 }
  0xec   :  { %v561_v1 = vadd.f32 1.0, %v3245_v60  ;;  %3248 = vpow2.f32 %v3180_v45  ;;  %v3247_v54 = vpop.eup %3246 }
  0xed   :  { %v582_v59 = vmul.f32 %v3247_v54, %v580_v6  ;;  %vm587_vm3 = vweird.f32 %v3247_v54 }
  0xee   :  { %3250 = vrcp.f32 %v561_v1  ;;  %vm588_vm4 = vmor %vm586_vm2, %vm587_vm3  ;;  %vm567_vm6 = vweird.f32 %v561_v1 }
  0xef   :  { %v324_v63 = vpop.f32.mrf.mxu2  ;;  %v583_v8 = vsub.f32 1.0, %v582_v59 }
  0xf0   :  { %v4387_v9 = vadd.f32 %v324_v63, %v166_v48  ;;  %v310_v63 = vadd.f32 %v4362_v62, %v166_v48 }
  0xf1   :  { %v584_v61 = vmul.f32 %v3247_v54, %v583_v8 }
  0xf2   :  { %6033 = vst [vmem:[#allocation70_spill] sm:$0xff] %v4387_v9  ;;  %v3249_v31 = vpop.eup %3248  ;;  %v590_v9 = vand.u32 2147483647, %v580_v6 }
  0xf3   :  { %v600_v5 = vadd.f32 1.0, %v3249_v31 }
  0xf4   :  { %v3251_v16 = vpop.eup %3250  ;;  %vm591_vm7 = vcmp.eq.f32.partialorder %v590_v9, 8.507059e+37 }
  0xf5   :  { %v563_v10 = vmul.f32 %v3251_v16, %v561_v1  ;;  %3252 = vrcp.f32 %v600_v5  ;;  %vm568_vm5 = vweird.f32 %v3251_v16  ;;  %vm606_vm11 = vweird.f32 %v600_v5 }
  0xf6   :  { %vm569_vm8 = vmor %vm567_vm6, %vm568_vm5  ;;  %v610_v9 = vand.u32 2147483647, %v600_v5 }
  0xf7   :  { %v327_v15 = vpop.f32.mrf.mxu2  ;;  %v564_v7 = vsub.f32 1.0, %v563_v10  ;;  %v571_v10 = vand.u32 2147483647, %v561_v1 }
  0xf8   :  { %v4389_v57 = vadd.f32 %v327_v15, %v166_v48  ;;  %vm611_vm13 = vcmp.eq.f32.partialorder %v610_v9, 8.507059e+37 }
  0xf9   :  { %v565_v45 = vmul.f32 %v3251_v16, %v564_v7  ;;  %vm572_vm9 = vcmp.eq.f32.partialorder %v571_v10, 8.507059e+37 }
  0xfa   :  { %6034 = vst [vmem:[#allocation71_spill] sm:$0xff] %v4389_v57  ;;  %v585_v57 = vadd.f32 %v3247_v54, %v584_v61 }
  0xfb   :  { %v3253_v60 = vpop.eup %3252  ;;  %v566_v59 = vadd.f32 %v3251_v16, %v565_v45 }
  0xfc   :  { %v602_v12 = vmul.f32 %v3253_v60, %v600_v5  ;;  %v589_v8 = vsel %vm588_vm4, %v3247_v54, %v585_v57  ;;  %vm607_vm10 = vweird.f32 %v3253_v60 }
  0xfd   :  { %v594_v62 = vsel %vm591_vm7, %v593_v46, %v589_v8  ;;  %vm608_vm12 = vmor %vm606_vm11, %vm607_vm10 }
  0xfe   :  { %v603_v7 = vsub.f32 1.0, %v602_v12 }
  0xff   :  { %v330_v3 = vpop.f32.mrf.mxu2 }
 0x100   :  { %v4391_v51 = vadd.f32 %v330_v3, %v166_v48  ;;  %v573_v3 = vand.u32 2147483648, %v561_v1  ;;  %v604_v55 = vmul.f32 %v3253_v60, %v603_v7  ;;  %v612_v1 = vand.u32 2147483648, %v600_v5 }
 0x102   :  { %6035 = vst [vmem:[#allocation72_spill] sm:$0xff] %v4391_v51  ;;  %v570_v51 = vsel %vm569_vm8, %v3251_v16, %v566_v59  ;;  %v574_v48 = vor.u32 1.1754944e-38, %v573_v3  ;;  %v605_v27 = vadd.f32 %v3253_v60, %v604_v55  ;;  %v613_v54 = vor.u32 1.1754944e-38, %v612_v1  ;;  %v6036_v55 = vld [vmem:[#allocation19_spill] sm:$0xff] }
 0x104   :  { %v575_v6 = vsel %vm572_vm9, %v574_v48, %v570_v51  ;;  %v609_v12 = vsel %vm608_vm12, %v3253_v60, %v605_v27  ;;  %v6064_v51 = vld [vmem:[#allocation48_spill] sm:$0xff] }
 0x105   :  { %v614_v57 = vsel %vm611_vm13, %v613_v54, %v609_v12 }
 0x107   :  { %v531_v15 = vpop.f32.mrf.mxu2 }
 0x108   :  { %v556_v31 = vadd.f32 %v531_v15, %v310_v63  ;;  %v616_v63 = vmul.f32 0.0, %v594_v62 }
 0x10a   :  { %3254 = vtanh.f32 %v556_v31 }
 0x110   :  { %v3255_v61 = vpop.eup %3254 }
 0x111   :  { %v617_v15 = vmul.f32 %v3255_v61, %v575_v6  ;;  %v6065_v6 = vld [vmem:[#allocation61_spill] sm:$0xff] }
 0x113   :  { %v4394_v45 = vadd.f32 %v617_v15, %v616_v63 }
 0x115   :  { %3256 = vtanh.f32 %v4394_v45 }
 0x11b   :  { %v3257_v46 = vpop.eup %3256 }
 0x11c   :  { %v620_v16 = vmul.f32 %v3257_v46, %v614_v57 }
 0x11e   :  { %642 = vmatmul.f32.vlgmr.msra.gmra.mxu0 %v620_v16  ;;  %662 = vmatmul.f32.vlgmr.msra.gmra.mxu1 %v620_v16 }
 0x11f   :  { %682 = vmatmul.f32.vlgmr.msrb.gmra.mxu2 %v620_v16  ;;  %702 = vmatmul.f32.vlgmr.msra.gmra.mxu3 %v620_v16 }
 0x120   :  { %930 = vmatpush.msra.mxu0 %v3918_v11  ;;  %950 = vmatpush.msra.mxu1 %v6036_v55  ;;  %v6037_v11 = vld [vmem:[#allocation26_spill] sm:$0xff] }
 0x121   :  { %970 = vmatpush.msrb.mxu2 %v3966_v24  ;;  %990 = vmatpush.msra.mxu3 %v3928_v14  ;;  %v6039_v14 = vld [vmem:[#allocation42_spill] sm:$0xff]  ;;  %v6046_v24 = vld [vmem:[#allocation25_spill] sm:$0xff] }
 0x122   :  { %931 = vmatpush.msra.mxu0 %v3925_v13  ;;  %951 = vmatpush.msra.mxu1 %v6003_v4  ;;  %v6038_v13 = vld [vmem:[#allocation23_spill] sm:$0xff] }
 0x123   :  { %971 = vmatpush.msrb.mxu2 %v3979_v28  ;;  %991 = vmatpush.msra.mxu3 %v3947_v19  ;;  %v6041_v19 = vld [vmem:[#allocation28_spill] sm:$0xff]  ;;  %v6049_v28 = vld [vmem:[#allocation34_spill] sm:$0xff] }
 0x124   :  { %932 = vmatpush.msra.mxu0 %v3939_v17  ;;  %952 = vmatpush.msra.mxu1 %v6004_v18  ;;  %v6040_v17 = vld [vmem:[#allocation31_spill] sm:$0xff] }
 0x125   :  { %972 = vmatpush.msrb.mxu2 %v4007_v35  ;;  %992 = vmatpush.msra.mxu3 %v3958_v22  ;;  %v6044_v22 = vld [vmem:[#allocation33_spill] sm:$0xff] }
 0x126   :  { %933 = vmatpush.msra.mxu0 %v3953_v21  ;;  %953 = vmatpush.msra.mxu1 %v3949_v20  ;;  %v6042_v20 = vld [vmem:[#allocation24_spill] sm:$0xff]  ;;  %v6043_v21 = vld [vmem:[#allocation43_spill] sm:$0xff]  ;;  %v6054_v35 = vld [vmem:[#allocation29_spill] sm:$0xff] }
 0x127   :  { %973 = vmatpush.msrb.mxu2 %v4024_v39  ;;  %993 = vmatpush.msra.mxu3 %v3972_v26  ;;  %v6048_v26 = vld [vmem:[#allocation35_spill] sm:$0xff]  ;;  %v6058_v39 = vld [vmem:[#allocation30_spill] sm:$0xff] }
 0x128   :  { %934 = vmatpush.msra.mxu0 %v3970_v25  ;;  %954 = vmatpush.msra.mxu1 %v3964_v23  ;;  %v6045_v23 = vld [vmem:[#allocation32_spill] sm:$0xff] }
 0x129   :  { %974 = vmatpush.msrb.mxu2 %v4037_v43  ;;  %994 = vmatpush.msra.mxu3 %v3985_v30  ;;  %v6047_v25 = vld [vmem:[#allocation44_spill] sm:$0xff]  ;;  %v6051_v30 = vld [vmem:[#allocation45_spill] sm:$0xff]  ;;  %v6062_v43 = vld [vmem:[#allocation22_spill] sm:$0xff] }
 0x12a   :  { %935 = vmatpush.msra.mxu0 %v3983_v29  ;;  %955 = vmatpush.msra.mxu1 %v6005_v33  ;;  %v6050_v29 = vld [vmem:[#allocation27_spill] sm:$0xff] }
 0x12b   :  { %975 = vmatpush.msrb.mxu2 %v4078_v53  ;;  %995 = vmatpush.msra.mxu3 %v4020_v38  ;;  %v6057_v38 = vld [vmem:[#allocation40_spill] sm:$0xff] }
 0x12c   :  { %936 = vmatpush.msra.mxu0 %v4012_v36  ;;  %956 = vmatpush.msra.mxu1 %v3992_v32  ;;  %v6052_v32 = vld [vmem:[#allocation38_spill] sm:$0xff] }
 0x12d   :  { %976 = vmatpush.msrb.mxu2 %v4093_v58  ;;  %996 = vmatpush.msra.mxu3 %v4033_v42  ;;  %v6055_v36 = vld [vmem:[#allocation46_spill] sm:$0xff] }
 0x12e   :  { %937 = vmatpush.msra.mxu0 %v4026_v40  ;;  %957 = vmatpush.msra.mxu1 %v4003_v34  ;;  %v6053_v34 = vld [vmem:[#allocation37_spill] sm:$0xff]  ;;  %v6059_v40 = vld [vmem:[#allocation47_spill] sm:$0xff]  ;;  %v6061_v42 = vld [vmem:[#allocation54_spill] sm:$0xff] }
 0x12f   :  { %977 = vmatpush.msrb.mxu2 %v4118_v0  ;;  %997 = vmatpush.msra.mxu3 %v4059_v49 }
 0x130   :  { %938 = vmatpush.msra.mxu0 %v4039_v44  ;;  %958 = vmatpush.msra.mxu1 %v4018_v37  ;;  %v6056_v37 = vld [vmem:[#allocation39_spill] sm:$0xff]  ;;  %v272_v44 = vadd.f32 %v6062_v43, %v6061_v42 }
 0x131   :  { %978 = vmatpush.msrb.mxu2 %v6006_v47  ;;  %998 = vmatpush.msra.mxu3 %v4074_v52  ;;  %v6063_v52 = vld [vmem:[#allocation21_spill] sm:$0xff] }
 0x132   :  { %939 = vmatpush.msra.mxu0 %v4066_v50  ;;  %959 = vmatpush.msra.mxu1 %v4030_v41  ;;  %v6060_v41 = vld [vmem:[#allocation41_spill] sm:$0xff] }
 0x133   :  { %979 = vmatpush.msrb.mxu2 %v4149_v2  ;;  %999 = vmatpush.msra.mxu3 %v4087_v56 }
 0x134   :  { %940 = vmatpush.msra.mxu0 %v6037_v11  ;;  %960 = vmatpush.msra.mxu1 %v6038_v13 }
 0x135   :  { %980 = vmatpush.msrb.mxu2 %v6039_v14  ;;  %1000 = vmatpush.msra.mxu3 %v6040_v17 }
 0x136   :  { %941 = vmatpush.msra.mxu0 %v6041_v19  ;;  %961 = vmatpush.msra.mxu1 %v6042_v20 }
 0x137   :  { %981 = vmatpush.msrb.mxu2 %v6043_v21  ;;  %1001 = vmatpush.msra.mxu3 %v6044_v22 }
 0x138   :  { %942 = vmatpush.msra.mxu0 %v6045_v23  ;;  %962 = vmatpush.msra.mxu1 %v6046_v24 }
 0x139   :  { %982 = vmatpush.msrb.mxu2 %v6047_v25  ;;  %1002 = vmatpush.msra.mxu3 %v6048_v26 }
 0x13a   :  { %943 = vmatpush.msra.mxu0 %v6049_v28  ;;  %963 = vmatpush.msra.mxu1 %v6050_v29 }
 0x13b   :  { %983 = vmatpush.msrb.mxu2 %v6051_v30  ;;  %1003 = vmatpush.msra.mxu3 %v6052_v32 }
 0x13c   :  { %944 = vmatpush.msra.mxu0 %v6053_v34  ;;  %964 = vmatpush.msra.mxu1 %v6054_v35 }
 0x13d   :  { %984 = vmatpush.msrb.mxu2 %v6055_v36  ;;  %1004 = vmatpush.msra.mxu3 %v6056_v37 }
 0x13e   :  { %945 = vmatpush.msra.mxu0 %v6057_v38  ;;  %965 = vmatpush.msra.mxu1 %v6058_v39 }
 0x13f   :  { %985 = vmatpush.msrb.mxu2 %v6059_v40  ;;  %1005 = vmatpush.msra.mxu3 %v6060_v41 }
 0x19b   :  { %v643_v49 = vpop.f32.mrf.mxu0  ;;  %v663_v50 = vpop.f32.mrf.mxu1 }
 0x19c   :  { %v706_v56 = vadd.f32 %v643_v49, %v6063_v52  ;;  %v707_v4 = vadd.f32 %v663_v50, %v272_v44 }
 0x19e   :  { %v3181_v18 = vmul.f32 -1.442695, %v706_v56  ;;  %v3182_v33 = vmul.f32 -1.442695, %v707_v4 }
 0x1a0   :  { %3258 = vpow2.f32 %v3181_v18 }
 0x1a1   :  { %3260 = vpow2.f32 %v3182_v33 }
 0x1a2   :  { %v703_v5 = vpop.f32.mrf.mxu3  ;;  %v683_v7 = vpop.f32.mrf.mxu2 }
 0x1a3   :  { %v709_v60 = vadd.f32 %v703_v5, %v6064_v51  ;;  %v708_v63 = vadd.f32 %v683_v7, %v6065_v6  ;;  %v4482_v7 = vld [vmem:[#allocation6 + $0x1c0] sm:$0xff] }
 0x1a4   :  { %v4494_v6 = vld [vmem:[#allocation6 + $0x1a0] sm:$0xff] }
 0x1a5   :  { %v3183_v31 = vmul.f32 -1.442695, %v709_v60 }
 0x1a6   :  { %v3259_v59 = vpop.eup %3258 }
 0x1a7   :  { %v3261_v3 = vpop.eup %3260  ;;  %v713_v10 = vadd.f32 1.0, %v3259_v59  ;;  %3262 = vpow2.f32 %v3183_v31 }
 0x1a8   :  { %v732_v8 = vadd.f32 1.0, %v3261_v3  ;;  %v4473_v3 = vld [vmem:[#allocation6 + $0x1e8] sm:$0xff] }
 0x1a9   :  { %3264 = vrcp.f32 %v713_v10  ;;  %v725_v54 = vand.u32 2147483648, %v713_v10  ;;  %v723_v16 = vand.u32 2147483647, %v713_v10  ;;  %vm719_vm2 = vweird.f32 %v713_v10 }
 0x1aa   :  { %3266 = vrcp.f32 %v732_v8  ;;  %v744_v46 = vand.u32 2147483648, %v732_v8  ;;  %v742_v11 = vand.u32 2147483647, %v732_v8  ;;  %vm738_vm3 = vweird.f32 %v732_v8 }
 0x1ab   :  { %v726_v19 = vor.u32 1.1754944e-38, %v725_v54  ;;  %vm724_vm6 = vcmp.eq.f32.partialorder %v723_v16, 8.507059e+37  ;;  %v4515_v54 = vld [vmem:[#allocation6 + $0x198] sm:$0xff]  ;;  %v4524_v16 = vld [vmem:[#allocation6 + $0x170] sm:$0xff] }
 0x1ac   :  { %v745_v24 = vor.u32 1.1754944e-38, %v744_v46  ;;  %vm743_vm7 = vcmp.eq.f32.partialorder %v742_v11, 8.507059e+37  ;;  %v4518_v46 = vld [vmem:[#allocation6 + $0x160] sm:$0xff] }
 0x1ad   :  { %v3263_v48 = vpop.eup %3262  ;;  %v4530_v11 = vld [vmem:[#allocation6 + $0x140] sm:$0xff] }
 0x1ae   :  { %v752_v62 = vadd.f32 1.0, %v3263_v48  ;;  %v4485_v48 = vld [vmem:[#allocation6 + $0x1c8] sm:$0xff] }
 0x1af   :  { %v3265_v61 = vpop.eup %3264 }
 0x1b0   :  { %v3267_v15 = vpop.eup %3266  ;;  %v715_v27 = vmul.f32 %v3265_v61, %v713_v10  ;;  %3268 = vrcp.f32 %v752_v62  ;;  %vm720_vm14 = vweird.f32 %v3265_v61  ;;  %v764_v18 = vand.u32 2147483648, %v752_v62  ;;  %v4476_v10 = vld [vmem:[#allocation6 + $0x1f0] sm:$0xff] }
 0x1b1   :  { %v734_v1 = vmul.f32 %v3267_v15, %v732_v8  ;;  %3270 = vtanh.f32 %v708_v63  ;;  %vm739_vm15 = vweird.f32 %v3267_v15  ;;  %vm721_vm4 = vmor %vm719_vm2, %vm720_vm14  ;;  %vm758_vm9 = vweird.f32 %v752_v62  ;;  %v4479_v8 = vld [vmem:[#allocation6 + $0x1f8] sm:$0xff]  ;;  %v4497_v63 = vld [vmem:[#allocation6 + $0x1a8] sm:$0xff] }
 0x1b2   :  { %v716_v9 = vsub.f32 1.0, %v715_v27  ;;  %vm740_vm5 = vmor %vm738_vm3, %vm739_vm15  ;;  %v762_v33 = vand.u32 2147483647, %v752_v62  ;;  %v765_v51 = vor.u32 1.1754944e-38, %v764_v18  ;;  %v4503_v27 = vld [vmem:[#allocation6 + $0x1b8] sm:$0xff]  ;;  %v4609_v18 = vld [vmem:[#allocation6 + $0x48] sm:$0xff] }
 0x1b3   :  { %v735_v12 = vsub.f32 1.0, %v734_v1  ;;  %v4506_v1 = vld [vmem:[#allocation6 + $0x180] sm:$0xff]  ;;  %6075 = vst [vmem:[#allocation32_spill] sm:$0xff] %v4609_v18 }
 0x1b4   :  { %v717_v57 = vmul.f32 %v3265_v61, %v716_v9  ;;  %vm763_vm11 = vcmp.eq.f32.partialorder %v762_v33, 8.507059e+37  ;;  %v4509_v9 = vld [vmem:[#allocation6 + $0x188] sm:$0xff] }
 0x1b5   :  { %v736_v55 = vmul.f32 %v3267_v15, %v735_v12  ;;  %v4512_v12 = vld [vmem:[#allocation6 + $0x190] sm:$0xff] }
 0x1b6   :  { %v3269_v13 = vpop.eup %3268  ;;  %v718_v17 = vadd.f32 %v3265_v61, %v717_v57  ;;  %v4521_v57 = vld [vmem:[#allocation6 + $0x168] sm:$0xff] }
 0x1b7   :  { %v737_v20 = vadd.f32 %v3267_v15, %v736_v55  ;;  %v754_v23 = vmul.f32 %v3269_v13, %v752_v62  ;;  %v3271_v29 = vpop.eup %3270  ;;  %vm759_vm8 = vweird.f32 %v3269_v13  ;;  %v4488_v62 = vld [vmem:[#allocation6 + $0x1d0] sm:$0xff]  ;;  %v4527_v55 = vld [vmem:[#allocation6 + $0x178] sm:$0xff] }
 0x1b8   :  { %v722_v28 = vsel %vm721_vm4, %v3265_v61, %v718_v17  ;;  %vm760_vm10 = vmor %vm758_vm9, %vm759_vm8  ;;  %v4491_v61 = vld [vmem:[#allocation6 + $0x1d8] sm:$0xff] }
 0x1b9   :  { %v727_v35 = vsel %vm724_vm6, %v726_v19, %v722_v28  ;;  %v741_v39 = vsel %vm740_vm5, %v3267_v15, %v737_v20  ;;  %v755_v43 = vsub.f32 1.0, %v754_v23  ;;  %v4500_v15 = vld [vmem:[#allocation6 + $0x1b0] sm:$0xff]  ;;  %v4537_v17 = vld [vmem:[#allocation6 + $0x158] sm:$0xff]  ;;  %v4540_v19 = vld [vmem:[#allocation6 + $0x120] sm:$0xff] }
 0x1ba   :  { %v746_v44 = vsel %vm743_vm7, %v745_v24, %v741_v39  ;;  %v769_v49 = vmul.f32 %v3271_v29, %v727_v35  ;;  %v4543_v20 = vld [vmem:[#allocation6 + $0x128] sm:$0xff]  ;;  %v4547_v23 = vld [vmem:[#allocation6 + $0x138] sm:$0xff]  ;;  %v4550_v24 = vld [vmem:[#allocation6 + $0x100] sm:$0xff] }
 0x1bb   :  { %v768_v50 = vmul.f32 %v746_v44, %v4394_v45  ;;  %v756_v52 = vmul.f32 %v3269_v13, %v755_v43  ;;  %v4470_v45 = vld [vmem:[#allocation6 + $0x1e0] sm:$0xff]  ;;  %v4557_v28 = vld [vmem:[#allocation6 + $0x118] sm:$0xff] }
 0x1bc   :  { %v4560_v29 = vld [vmem:[#allocation6 + $0xe0] sm:$0xff]  ;;  %v4567_v35 = vld [vmem:[#allocation6 + $0xf8] sm:$0xff] }
 0x1bd   :  { %v4467_v56 = vadd.f32 %v769_v49, %v768_v50  ;;  %v757_v4 = vadd.f32 %v3269_v13, %v756_v52  ;;  %v4570_v39 = vld [vmem:[#allocation6 + $0xc0] sm:$0xff]  ;;  %v4577_v43 = vld [vmem:[#allocation6 + $0xd8] sm:$0xff] }
 0x1be   :  { %6066 = vst [vmem:[#allocation19_spill] sm:$0xff] %v4577_v43  ;;  %v4580_v44 = vld [vmem:[#allocation6 + $0xa0] sm:$0xff]  ;;  %v4587_v49 = vld [vmem:[#allocation6 + $0xb8] sm:$0xff] }
 0x1bf   :  { %3272 = vtanh.f32 %v4467_v56  ;;  %v761_v5 = vsel %vm760_vm10, %v3269_v13, %v757_v4  ;;  %v4533_v13 = vld [vmem:[#allocation6 + $0x148] sm:$0xff]  ;;  %6067 = vst [vmem:[#allocation26_spill] sm:$0xff] %v4580_v44  ;;  %v4590_v50 = vld [vmem:[#allocation6 + $0x80] sm:$0xff] }
 0x1c0   :  { %v766_v31 = vsel %vm763_vm11, %v765_v51, %v761_v5  ;;  %6069 = vst [vmem:[#allocation42_spill] sm:$0xff] %v4587_v49  ;;  %v4598_v52 = vld [vmem:[#allocation6 + $0x60] sm:$0xff]  ;;  %v6080_v51 = vld [vmem:[#allocation52_spill] sm:$0xff] }
 0x1c1   :  { %6070 = vst [vmem:[#allocation31_spill] sm:$0xff] %v4590_v50  ;;  %v4606_v4 = vld [vmem:[#allocation6 + $0x40] sm:$0xff] }
 0x1c2   :  { %6072 = vst [vmem:[#allocation24_spill] sm:$0xff] %v4598_v52 }
 0x1c3   :  { %6074 = vst [vmem:[#allocation33_spill] sm:$0xff] %v4606_v4 }
 0x1c5   :  { %v3273_v60 = vpop.eup %3272 }
 0x1c6   :  { %v772_v59 = vmul.f32 %v3273_v60, %v766_v31 }
 0x1c8   :  { %794 = vmatmul.f32.vlgmr.msrb.gmra.mxu0 %v772_v59  ;;  %814 = vmatmul.f32.vlgmr.msrb.gmra.mxu1 %v772_v59 }
 0x1c9   :  { %834 = vmatmul.f32.vlgmr.msra.gmra.mxu2 %v772_v59  ;;  %854 = vmatmul.f32.vlgmr.msrb.gmra.mxu3 %v772_v59 }
 0x1ca   :  { %1082 = vmatpush.msrb.mxu0 %v4470_v45  ;;  %1102 = vmatpush.msrb.mxu1 %v4473_v3 }
 0x1cb   :  { %1122 = vmatpush.msra.mxu2 %v4476_v10  ;;  %1142 = vmatpush.msrb.mxu3 %v4479_v8 }
 0x1cc   :  { %1083 = vmatpush.msrb.mxu0 %v4482_v7  ;;  %1103 = vmatpush.msrb.mxu1 %v4485_v48 }
 0x1cd   :  { %1123 = vmatpush.msra.mxu2 %v4488_v62  ;;  %1143 = vmatpush.msrb.mxu3 %v4491_v61 }
 0x1ce   :  { %1084 = vmatpush.msrb.mxu0 %v4494_v6  ;;  %1104 = vmatpush.msrb.mxu1 %v4497_v63 }
 0x1cf   :  { %1124 = vmatpush.msra.mxu2 %v4500_v15  ;;  %1144 = vmatpush.msrb.mxu3 %v4503_v27 }
 0x1d0   :  { %1085 = vmatpush.msrb.mxu0 %v4506_v1  ;;  %1105 = vmatpush.msrb.mxu1 %v4509_v9 }
 0x1d1   :  { %1125 = vmatpush.msra.mxu2 %v4512_v12  ;;  %1145 = vmatpush.msrb.mxu3 %v4515_v54 }
 0x1d2   :  { %1086 = vmatpush.msrb.mxu0 %v4518_v46  ;;  %1106 = vmatpush.msrb.mxu1 %v4521_v57 }
 0x1d3   :  { %1126 = vmatpush.msra.mxu2 %v4524_v16  ;;  %1146 = vmatpush.msrb.mxu3 %v4527_v55 }
 0x1d4   :  { %1087 = vmatpush.msrb.mxu0 %v4530_v11  ;;  %1107 = vmatpush.msrb.mxu1 %v4533_v13 }
 0x1d5   :  { %1127 = vmatpush.msra.mxu2 %v4078_v53  ;;  %1147 = vmatpush.msrb.mxu3 %v4537_v17  ;;  %v4553_v53 = vld [vmem:[#allocation6 + $0x108] sm:$0xff] }
 0x1d6   :  { %1088 = vmatpush.msrb.mxu0 %v4540_v19  ;;  %1108 = vmatpush.msrb.mxu1 %v4543_v20 }
 0x1d7   :  { %1128 = vmatpush.msra.mxu2 %v4093_v58  ;;  %1148 = vmatpush.msrb.mxu3 %v4547_v23  ;;  %v4563_v58 = vld [vmem:[#allocation6 + $0xe8] sm:$0xff] }
 0x1d8   :  { %1089 = vmatpush.msrb.mxu0 %v4550_v24  ;;  %1109 = vmatpush.msrb.mxu1 %v4553_v53 }
 0x1d9   :  { %1129 = vmatpush.msra.mxu2 %v4118_v0  ;;  %1149 = vmatpush.msrb.mxu3 %v4557_v28  ;;  %v4573_v0 = vld [vmem:[#allocation6 + $0xc8] sm:$0xff] }
 0x1da   :  { %1090 = vmatpush.msrb.mxu0 %v4560_v29  ;;  %1110 = vmatpush.msrb.mxu1 %v4563_v58 }
 0x1db   :  { %1130 = vmatpush.msra.mxu2 %v6006_v47  ;;  %1150 = vmatpush.msrb.mxu3 %v4567_v35  ;;  %v4583_v47 = vld [vmem:[#allocation6 + $0xa8] sm:$0xff] }
 0x1dc   :  { %1091 = vmatpush.msrb.mxu0 %v4570_v39  ;;  %1111 = vmatpush.msrb.mxu1 %v4573_v0  ;;  %6068 = vst [vmem:[#allocation23_spill] sm:$0xff] %v4583_v47 }
 0x1dd   :  { %1131 = vmatpush.msra.mxu2 %v4149_v2  ;;  %1151 = vmatpush.msrb.mxu3 %v4577_v43  ;;  %v4593_v2 = vld [vmem:[#allocation6 + $0x88] sm:$0xff] }
 0x1de   :  { %1092 = vmatpush.msrb.mxu0 %v4580_v44  ;;  %1112 = vmatpush.msrb.mxu1 %v4583_v47  ;;  %6071 = vst [vmem:[#allocation28_spill] sm:$0xff] %v4593_v2 }
 0x1df   :  { %1132 = vmatpush.msra.mxu2 %v6039_v14  ;;  %1152 = vmatpush.msrb.mxu3 %v4587_v49  ;;  %v4601_v14 = vld [vmem:[#allocation6 + $0x68] sm:$0xff] }
 0x1e0   :  { %1093 = vmatpush.msrb.mxu0 %v4590_v50  ;;  %1113 = vmatpush.msrb.mxu1 %v4593_v2  ;;  %6073 = vst [vmem:[#allocation43_spill] sm:$0xff] %v4601_v14 }
 0x1e1   :  { %1133 = vmatpush.msra.mxu2 %v6043_v21  ;;  %1153 = vmatpush.msrb.mxu3 %v6044_v22  ;;  %v4615_v21 = vld [vmem:[#allocation6 + $0x28] sm:$0xff] }
 0x1e2   :  { %1094 = vmatpush.msrb.mxu0 %v4598_v52  ;;  %1114 = vmatpush.msrb.mxu1 %v4601_v14  ;;  %6076 = vst [vmem:[#allocation25_spill] sm:$0xff] %v4615_v21  ;;  %v4621_v22 = vld [vmem:[#allocation6 + $0x8] sm:$0xff] }
 0x1e3   :  { %1134 = vmatpush.msra.mxu2 %v6047_v25  ;;  %1154 = vmatpush.msrb.mxu3 %v6048_v26  ;;  %6077 = vst [vmem:[#allocation44_spill] sm:$0xff] %v4621_v22  ;;  %v6078_v25 = vld [vmem:[#allocation50_spill] sm:$0xff] }
 0x1e4   :  { %1095 = vmatpush.msrb.mxu0 %v4606_v4  ;;  %1115 = vmatpush.msrb.mxu1 %v4609_v18  ;;  %v275_v26 = vadd.f32 %v6078_v25, %v6061_v42 }
 0x1e5   :  { %1135 = vmatpush.msra.mxu2 %v6051_v30  ;;  %1155 = vmatpush.msrb.mxu3 %v6052_v32 }
 0x1e6   :  { %1096 = vmatpush.msrb.mxu0 %v6053_v34  ;;  %1116 = vmatpush.msrb.mxu1 %v4615_v21  ;;  %v6079_v34 = vld [vmem:[#allocation49_spill] sm:$0xff] }
 0x1e7   :  { %1136 = vmatpush.msra.mxu2 %v6055_v36  ;;  %1156 = vmatpush.msrb.mxu3 %v6056_v37 }
 0x1e8   :  { %1097 = vmatpush.msrb.mxu0 %v6057_v38  ;;  %1117 = vmatpush.msrb.mxu1 %v4621_v22 }
 0x1e9   :  { %1137 = vmatpush.msra.mxu2 %v6059_v40  ;;  %1157 = vmatpush.msrb.mxu3 %v6060_v41 }
 0x245   :  { %v795_v30 = vpop.f32.mrf.mxu0  ;;  %v815_v32 = vpop.f32.mrf.mxu1 }
 0x246   :  { %v858_v33 = vadd.f32 %v795_v30, %v6079_v34  ;;  %v859_v36 = vadd.f32 %v815_v32, %v275_v26  ;;  %v6081_v26 = vld [vmem:[#allocation64_spill] sm:$0xff] }
 0x248   :  { %v3184_v5 = vmul.f32 -1.442695, %v858_v33  ;;  %v3185_v37 = vmul.f32 -1.442695, %v859_v36 }
 0x24a   :  { %3274 = vpow2.f32 %v3184_v5 }
 0x24b   :  { %3276 = vpow2.f32 %v3185_v37 }
 0x24c   :  { %v855_v38 = vpop.f32.mrf.mxu3  ;;  %v835_v25 = vpop.f32.mrf.mxu2 }
 0x24d   :  { %v861_v60 = vadd.f32 %v855_v38, %v6080_v51  ;;  %v860_v32 = vadd.f32 %v835_v25, %v6081_v26 }
 0x24f   :  { %v3186_v31 = vmul.f32 -1.442695, %v861_v60 }
 0x250   :  { %v3275_v59 = vpop.eup %3274 }
 0x251   :  { %v3277_v40 = vpop.eup %3276  ;;  %v865_v22 = vadd.f32 1.0, %v3275_v59  ;;  %3278 = vpow2.f32 %v3186_v31 }
 0x252   :  { %v884_v41 = vadd.f32 1.0, %v3277_v40 }
 0x253   :  { %3280 = vrcp.f32 %v865_v22  ;;  %v877_v38 = vand.u32 2147483648, %v865_v22  ;;  %v875_v31 = vand.u32 2147483647, %v865_v22  ;;  %vm871_vm14 = vweird.f32 %v865_v22 }
 0x254   :  { %3282 = vrcp.f32 %v884_v41  ;;  %v896_v51 = vand.u32 2147483648, %v884_v41  ;;  %v894_v40 = vand.u32 2147483647, %v884_v41  ;;  %vm890_vm15 = vweird.f32 %v884_v41 }
 0x255   :  { %v878_v25 = vor.u32 1.1754944e-38, %v877_v38  ;;  %vm876_vm4 = vcmp.eq.f32.partialorder %v875_v31, 8.507059e+37 }
 0x256   :  { %vm895_vm5 = vcmp.eq.f32.partialorder %v894_v40, 8.507059e+37  ;;  %v6085_v40 = vld [vmem:[#allocation28_spill] sm:$0xff] }
 0x257   :  { %v3279_v42 = vpop.eup %3278 }
 0x258   :  { %v904_v21 = vadd.f32 1.0, %v3279_v42 }
 0x259   :  { %v3281_v30 = vpop.eup %3280 }
 0x25a   :  { %v3283_v34 = vpop.eup %3282  ;;  %v867_v33 = vmul.f32 %v3281_v30, %v865_v22  ;;  %3284 = vrcp.f32 %v904_v21  ;;  %vm872_vm12 = vweird.f32 %v3281_v30  ;;  %v916_v38 = vand.u32 2147483648, %v904_v21 }
 0x25b   :  { %v886_v36 = vmul.f32 %v3283_v34, %v884_v41  ;;  %3286 = vtanh.f32 %v860_v32  ;;  %vm891_vm13 = vweird.f32 %v3283_v34  ;;  %vm873_vm2 = vmor %vm871_vm14, %vm872_vm12  ;;  %vm910_vm7 = vweird.f32 %v904_v21 }
 0x25c   :  { %v868_v5 = vsub.f32 1.0, %v867_v33  ;;  %vm892_vm3 = vmor %vm890_vm15, %vm891_vm13  ;;  %v897_v33 = vor.u32 1.1754944e-38, %v896_v51  ;;  %v917_v31 = vor.u32 1.1754944e-38, %v916_v38  ;;  %v4715_v38 = vld [vmem:[#allocation6 + $0x20] sm:$0xff] }
 0x25d   :  { %v887_v37 = vsub.f32 1.0, %v886_v36  ;;  %6096 = vst [vmem:[#allocation39_spill] sm:$0xff] %v4715_v38 }
 0x25e   :  { %v869_v60 = vmul.f32 %v3281_v30, %v868_v5 }
 0x25f   :  { %v888_v59 = vmul.f32 %v3283_v34, %v887_v37 }
 0x260   :  { %v3285_v18 = vpop.eup %3284  ;;  %v870_v42 = vadd.f32 %v3281_v30, %v869_v60 }
 0x261   :  { %v889_v26 = vadd.f32 %v3283_v34, %v888_v59  ;;  %v906_v4 = vmul.f32 %v3285_v18, %v904_v21  ;;  %v3287_v32 = vpop.eup %3286  ;;  %vm911_vm6 = vweird.f32 %v3285_v18 }
 0x262   :  { %v874_v36 = vsel %vm873_vm2, %v3281_v30, %v870_v42  ;;  %v914_v30 = vand.u32 2147483647, %v904_v21  ;;  %vm912_vm8 = vmor %vm910_vm7, %vm911_vm6  ;;  %v6084_v21 = vld [vmem:[#allocation31_spill] sm:$0xff]  ;;  %v4693_v42 = vld [vmem:[#allocation6 + $0x90] sm:$0xff] }
 0x263   :  { %v879_v14 = vsel %vm876_vm4, %v878_v25, %v874_v36  ;;  %v893_v5 = vsel %vm892_vm3, %v3283_v34, %v889_v26  ;;  %v907_v52 = vsub.f32 1.0, %v906_v4  ;;  %6086 = vst [vmem:[#allocation27_spill] sm:$0xff] %v4693_v42  ;;  %v4696_v25 = vld [vmem:[#allocation6 + $0x98] sm:$0xff]  ;;  %v6088_v26 = vld [vmem:[#allocation24_spill] sm:$0xff] }
 0x264   :  { %v898_v37 = vsel %vm895_vm5, %v897_v33, %v893_v5  ;;  %v921_v2 = vmul.f32 %v3287_v32, %v879_v14  ;;  %vm915_vm9 = vcmp.eq.f32.partialorder %v914_v30, 8.507059e+37  ;;  %v4681_v14 = vld [vmem:[#allocation6 + $0xd0] sm:$0xff]  ;;  %6087 = vst [vmem:[#allocation45_spill] sm:$0xff] %v4696_v25  ;;  %v6089_v33 = vld [vmem:[#allocation43_spill] sm:$0xff]  ;;  %v4704_v32 = vld [vmem:[#allocation6 + $0x78] sm:$0xff] }
 0x265   :  { %v920_v50 = vmul.f32 %v898_v37, %v4467_v56  ;;  %v908_v60 = vmul.f32 %v3285_v18, %v907_v52  ;;  %v4657_v56 = vld [vmem:[#allocation6 + $0x150] sm:$0xff]  ;;  %6082 = vst [vmem:[#allocation35_spill] sm:$0xff] %v4681_v14  ;;  %v6092_v5 = vld [vmem:[#allocation33_spill] sm:$0xff] }
 0x266   :  { %v4675_v52 = vld [vmem:[#allocation6 + $0xf0] sm:$0xff]  ;;  %6091 = vst [vmem:[#allocation37_spill] sm:$0xff] %v4704_v32  ;;  %v6097_v30 = vld [vmem:[#allocation25_spill] sm:$0xff] }
 0x267   :  { %v4632_v22 = vadd.f32 %v921_v2, %v920_v50  ;;  %v909_v41 = vadd.f32 %v3285_v18, %v908_v60  ;;  %v4663_v50 = vld [vmem:[#allocation6 + $0x130] sm:$0xff] }
 0x268   :  { %v4669_v2 = vld [vmem:[#allocation6 + $0x110] sm:$0xff] }
 0x269   :  { %3288 = vtanh.f32 %v4632_v22  ;;  %v913_v51 = vsel %vm912_vm8, %v3285_v18, %v909_v41  ;;  %v4687_v18 = vld [vmem:[#allocation6 + $0xb0] sm:$0xff]  ;;  %v4712_v41 = vld [vmem:[#allocation6 + $0x58] sm:$0xff] }
 0x26a   :  { %v918_v4 = vsel %vm915_vm9, %v917_v31, %v913_v51  ;;  %6083 = vst [vmem:[#allocation34_spill] sm:$0xff] %v4687_v18  ;;  %v4701_v36 = vld [vmem:[#allocation6 + $0x70] sm:$0xff]  ;;  %v4722_v31 = vld [vmem:[#allocation6 + $0x38] sm:$0xff] }
 0x26b   :  { %6090 = vst [vmem:[#allocation38_spill] sm:$0xff] %v4701_v36  ;;  %v6093_v37 = vld [vmem:[#allocation32_spill] sm:$0xff] }
 0x26c   :  { %v4709_v60 = vld [vmem:[#allocation6 + $0x50] sm:$0xff]  ;;  %6095 = vst [vmem:[#allocation46_spill] sm:$0xff] %v4712_v41 }
 0x26d   :  { %6094 = vst [vmem:[#allocation29_spill] sm:$0xff] %v4709_v60  ;;  %v4719_v51 = vld [vmem:[#allocation6 + $0x30] sm:$0xff] }
 0x26e   :  { %6098 = vst [vmem:[#allocation40_spill] sm:$0xff] %v4719_v51 }
 0x26f   :  { %v3289_v34 = vpop.eup %3288  ;;  %6099 = vst [vmem:[#allocation30_spill] sm:$0xff] %v4722_v31 }
 0x270   :  { %v924_v59 = vmul.f32 %v3289_v34, %v918_v4  ;;  %v4725_v34 = vld [vmem:[#allocation6] sm:$0xff]  ;;  %v6101_v4 = vld [vmem:[#allocation44_spill] sm:$0xff] }
 0x271   :  { %6100 = vst [vmem:[#allocation47_spill] sm:$0xff] %v4725_v34 }
 0x272   :  { %946 = vmatmul.f32.vlgmr.msra.gmra.mxu0 %v924_v59  ;;  %966 = vmatmul.f32.vlgmr.msra.gmra.mxu1 %v924_v59 }
 0x273   :  { %986 = vmatmul.f32.vlgmr.msrb.gmra.mxu2 %v924_v59  ;;  %1006 = vmatmul.f32.vlgmr.msra.gmra.mxu3 %v924_v59  ;;  %v4729_v59 = vld [vmem:[#allocation6 + $0x10] sm:$0xff] }
 0x274   :  { %1234 = vmatpush.msra.mxu0 %v4470_v45  ;;  %1254 = vmatpush.msra.mxu1 %v4473_v3  ;;  %6102 = vst [vmem:[#allocation41_spill] sm:$0xff] %v4729_v59 }
 0x275   :  { %1274 = vmatpush.msrb.mxu2 %v4476_v10  ;;  %1294 = vmatpush.msra.mxu3 %v4479_v8 }
 0x276   :  { %1235 = vmatpush.msra.mxu0 %v4482_v7  ;;  %1255 = vmatpush.msra.mxu1 %v4485_v48 }
 0x277   :  { %1275 = vmatpush.msrb.mxu2 %v4488_v62  ;;  %1295 = vmatpush.msra.mxu3 %v4491_v61 }
 0x278   :  { %1236 = vmatpush.msra.mxu0 %v4494_v6  ;;  %1256 = vmatpush.msra.mxu1 %v4497_v63 }
 0x279   :  { %1276 = vmatpush.msrb.mxu2 %v4500_v15  ;;  %1296 = vmatpush.msra.mxu3 %v4503_v27 }
 0x27a   :  { %1237 = vmatpush.msra.mxu0 %v4506_v1  ;;  %1257 = vmatpush.msra.mxu1 %v4509_v9 }
 0x27b   :  { %1277 = vmatpush.msrb.mxu2 %v4512_v12  ;;  %1297 = vmatpush.msra.mxu3 %v4515_v54 }
 0x27c   :  { %1238 = vmatpush.msra.mxu0 %v4518_v46  ;;  %1258 = vmatpush.msra.mxu1 %v4521_v57 }
 0x27d   :  { %1278 = vmatpush.msrb.mxu2 %v4524_v16  ;;  %1298 = vmatpush.msra.mxu3 %v4527_v55 }
 0x27e   :  { %1239 = vmatpush.msra.mxu0 %v4530_v11  ;;  %1259 = vmatpush.msra.mxu1 %v4533_v13 }
 0x27f   :  { %1279 = vmatpush.msrb.mxu2 %v4657_v56  ;;  %1299 = vmatpush.msra.mxu3 %v4537_v17 }
 0x280   :  { %1240 = vmatpush.msra.mxu0 %v4540_v19  ;;  %1260 = vmatpush.msra.mxu1 %v4543_v20 }
 0x281   :  { %1280 = vmatpush.msrb.mxu2 %v4663_v50  ;;  %1300 = vmatpush.msra.mxu3 %v4547_v23 }
 0x282   :  { %1241 = vmatpush.msra.mxu0 %v4550_v24  ;;  %1261 = vmatpush.msra.mxu1 %v4553_v53 }
 0x283   :  { %1281 = vmatpush.msrb.mxu2 %v4669_v2  ;;  %1301 = vmatpush.msra.mxu3 %v4557_v28 }
 0x284   :  { %1242 = vmatpush.msra.mxu0 %v4560_v29  ;;  %1262 = vmatpush.msra.mxu1 %v4563_v58 }
 0x285   :  { %1282 = vmatpush.msrb.mxu2 %v4675_v52  ;;  %1302 = vmatpush.msra.mxu3 %v4567_v35 }
 0x286   :  { %1243 = vmatpush.msra.mxu0 %v4570_v39  ;;  %1263 = vmatpush.msra.mxu1 %v4573_v0 }
 0x287   :  { %1283 = vmatpush.msrb.mxu2 %v4681_v14  ;;  %1303 = vmatpush.msra.mxu3 %v4577_v43 }
 0x288   :  { %1244 = vmatpush.msra.mxu0 %v4580_v44  ;;  %1264 = vmatpush.msra.mxu1 %v4583_v47 }
 0x289   :  { %1284 = vmatpush.msrb.mxu2 %v4687_v18  ;;  %1304 = vmatpush.msra.mxu3 %v4587_v49 }
 0x28a   :  { %1245 = vmatpush.msra.mxu0 %v6084_v21  ;;  %1265 = vmatpush.msra.mxu1 %v6085_v40 }
 0x28b   :  { %1285 = vmatpush.msrb.mxu2 %v4693_v42  ;;  %1305 = vmatpush.msra.mxu3 %v4696_v25 }
 0x28c   :  { %1246 = vmatpush.msra.mxu0 %v6088_v26  ;;  %1266 = vmatpush.msra.mxu1 %v6089_v33 }
 0x28d   :  { %1286 = vmatpush.msrb.mxu2 %v4701_v36  ;;  %1306 = vmatpush.msra.mxu3 %v4704_v32 }
 0x28e   :  { %1247 = vmatpush.msra.mxu0 %v6092_v5  ;;  %1267 = vmatpush.msra.mxu1 %v6093_v37  ;;  %v6105_v37 = vld [vmem:[#allocation55_spill] sm:$0xff] }
 0x28f   :  { %1287 = vmatpush.msrb.mxu2 %v4709_v60  ;;  %1307 = vmatpush.msra.mxu3 %v4712_v41  ;;  %v6104_v41 = vld [vmem:[#allocation53_spill] sm:$0xff] }
 0x290   :  { %1248 = vmatpush.msra.mxu0 %v4715_v38  ;;  %1268 = vmatpush.msra.mxu1 %v6097_v30  ;;  %v4732_v38 = vld [vmem:[#allocation6 + $0x18] sm:$0xff] }
 0x291   :  { %1288 = vmatpush.msrb.mxu2 %v4719_v51  ;;  %1308 = vmatpush.msra.mxu3 %v4722_v31  ;;  %6103 = vst [vmem:[#allocation22_spill] sm:$0xff] %v4732_v38 }
 0x292   :  { %1249 = vmatpush.msra.mxu0 %v4725_v34  ;;  %1269 = vmatpush.msra.mxu1 %v6101_v4  ;;  %v6106_v4 = vld [vmem:[#allocation57_spill] sm:$0xff] }
 0x293   :  { %1289 = vmatpush.msrb.mxu2 %v4729_v59  ;;  %1309 = vmatpush.msra.mxu3 %v4732_v38 }
 0x2ef   :  { %v947_v30 = vpop.f32.mrf.mxu0  ;;  %v967_v51 = vpop.f32.mrf.mxu1 }
 0x2f0   :  { %v1010_v60 = vadd.f32 %v947_v30, %v6104_v41  ;;  %v1011_v31 = vadd.f32 %v967_v51, %v6105_v37  ;;  %v6107_v37 = vld [vmem:[#allocation67_spill] sm:$0xff] }
 0x2f2   :  { %v3187_v5 = vmul.f32 -1.442695, %v1010_v60  ;;  %v3188_v32 = vmul.f32 -1.442695, %v1011_v31 }
 0x2f4   :  { %3290 = vpow2.f32 %v3187_v5 }
 0x2f5   :  { %3292 = vpow2.f32 %v3188_v32 }
 0x2f6   :  { %v1007_v34 = vpop.f32.mrf.mxu3  ;;  %v987_v38 = vpop.f32.mrf.mxu2 }
 0x2f7   :  { %v1013_v36 = vadd.f32 %v1007_v34, %v6106_v4  ;;  %v1012_v60 = vadd.f32 %v987_v38, %v6107_v37 }
 0x2f9   :  { %v3189_v33 = vmul.f32 -1.442695, %v1013_v36 }
 0x2fa   :  { %v3291_v26 = vpop.eup %3290 }
 0x2fb   :  { %v3293_v59 = vpop.eup %3292  ;;  %v1017_v25 = vadd.f32 1.0, %v3291_v26  ;;  %3294 = vpow2.f32 %v3189_v33 }
 0x2fc   :  { %v1036_v42 = vadd.f32 1.0, %v3293_v59 }
 0x2fd   :  { %3296 = vrcp.f32 %v1017_v25  ;;  %v1029_v36 = vand.u32 2147483648, %v1017_v25  ;;  %v1027_v33 = vand.u32 2147483647, %v1017_v25  ;;  %vm1023_vm12 = vweird.f32 %v1017_v25 }
 0x2fe   :  { %3298 = vrcp.f32 %v1036_v42  ;;  %v1048_v4 = vand.u32 2147483648, %v1036_v42  ;;  %v1046_v21 = vand.u32 2147483647, %v1036_v42  ;;  %vm1042_vm13 = vweird.f32 %v1036_v42 }
 0x2ff   :  { %v1030_v38 = vor.u32 1.1754944e-38, %v1029_v36  ;;  %vm1028_vm2 = vcmp.eq.f32.partialorder %v1027_v33, 8.507059e+37 }
 0x300   :  { %vm1047_vm3 = vcmp.eq.f32.partialorder %v1046_v21, 8.507059e+37 }
 0x301   :  { %v3295_v40 = vpop.eup %3294 }
 0x302   :  { %v1056_v41 = vadd.f32 1.0, %v3295_v40 }
 0x303   :  { %v3297_v30 = vpop.eup %3296 }
 0x304   :  { %v3299_v51 = vpop.eup %3298  ;;  %v1019_v5 = vmul.f32 %v3297_v30, %v1017_v25  ;;  %3300 = vrcp.f32 %v1056_v41  ;;  %vm1024_vm10 = vweird.f32 %v3297_v30  ;;  %v1068_v36 = vand.u32 2147483648, %v1056_v41 }
 0x305   :  { %v1038_v32 = vmul.f32 %v3299_v51, %v1036_v42  ;;  %3302 = vtanh.f32 %v1012_v60  ;;  %vm1043_vm11 = vweird.f32 %v3299_v51  ;;  %vm1025_vm14 = vmor %vm1023_vm12, %vm1024_vm10  ;;  %vm1062_vm5 = vweird.f32 %v1056_v41 }
 0x306   :  { %v1020_v31 = vsub.f32 1.0, %v1019_v5  ;;  %vm1044_vm15 = vmor %vm1042_vm13, %vm1043_vm11  ;;  %v1049_v5 = vor.u32 1.1754944e-38, %v1048_v4  ;;  %v1069_v33 = vor.u32 1.1754944e-38, %v1068_v36  ;;  %v6126_v36 = vld [vmem:[#allocation39_spill] sm:$0xff] }
 0x307   :  { %v1039_v34 = vsub.f32 1.0, %v1038_v32 }
 0x308   :  { %v1021_v26 = vmul.f32 %v3297_v30, %v1020_v31 }
 0x309   :  { %v1040_v59 = vmul.f32 %v3299_v51, %v1039_v34 }
 0x30a   :  { %v3301_v49 = vpop.eup %3300  ;;  %v1022_v40 = vadd.f32 %v3297_v30, %v1021_v26 }
 0x30b   :  { %v1041_v37 = vadd.f32 %v3299_v51, %v1040_v59  ;;  %v1058_v18 = vmul.f32 %v3301_v49, %v1056_v41  ;;  %v3303_v60 = vpop.eup %3302  ;;  %vm1063_vm4 = vweird.f32 %v3301_v49  ;;  %v6115_v59 = vld [vmem:[#allocation28_spill] sm:$0xff] }
 0x30c   :  { %v1026_v32 = vsel %vm1025_vm14, %v3297_v30, %v1022_v40  ;;  %v1066_v30 = vand.u32 2147483647, %v1056_v41  ;;  %vm1064_vm6 = vmor %vm1062_vm5, %vm1063_vm4  ;;  %v6114_v41 = vld [vmem:[#allocation31_spill] sm:$0xff] }
 0x30d   :  { %v1031_v47 = vsel %vm1028_vm2, %v1030_v38, %v1026_v32  ;;  %v1045_v31 = vsel %vm1044_vm15, %v3299_v51, %v1041_v37  ;;  %v1059_v44 = vsub.f32 1.0, %v1058_v18  ;;  %v6116_v40 = vld [vmem:[#allocation27_spill] sm:$0xff]  ;;  %v6117_v38 = vld [vmem:[#allocation45_spill] sm:$0xff]  ;;  %v6118_v37 = vld [vmem:[#allocation24_spill] sm:$0xff] }
 0x30e   :  { %v1050_v34 = vsel %vm1047_vm3, %v1049_v5, %v1045_v31  ;;  %v1073_v43 = vmul.f32 %v3303_v60, %v1031_v47  ;;  %vm1067_vm7 = vcmp.eq.f32.partialorder %v1066_v30, 8.507059e+37  ;;  %v6110_v47 = vld [vmem:[#allocation26_spill] sm:$0xff]  ;;  %v6119_v5 = vld [vmem:[#allocation43_spill] sm:$0xff]  ;;  %v6121_v60 = vld [vmem:[#allocation37_spill] sm:$0xff] }
 0x30f   :  { %v1072_v14 = vmul.f32 %v1050_v34, %v4632_v22  ;;  %v1060_v26 = vmul.f32 %v3301_v49, %v1059_v44  ;;  %v6109_v44 = vld [vmem:[#allocation19_spill] sm:$0xff]  ;;  %v6112_v22 = vld [vmem:[#allocation34_spill] sm:$0xff]  ;;  %v6122_v31 = vld [vmem:[#allocation33_spill] sm:$0xff] }
 0x310   :  { %v6120_v32 = vld [vmem:[#allocation38_spill] sm:$0xff]  ;;  %v6123_v34 = vld [vmem:[#allocation32_spill] sm:$0xff]  ;;  %v6127_v30 = vld [vmem:[#allocation25_spill] sm:$0xff] }
 0x311   :  { %v4740_v25 = vadd.f32 %v1073_v43, %v1072_v14  ;;  %v1061_v42 = vadd.f32 %v3301_v49, %v1060_v26  ;;  %v6108_v43 = vld [vmem:[#allocation35_spill] sm:$0xff]  ;;  %v6113_v14 = vld [vmem:[#allocation42_spill] sm:$0xff]  ;;  %v6124_v26 = vld [vmem:[#allocation29_spill] sm:$0xff] }
 0x313   :  { %3304 = vtanh.f32 %v4740_v25  ;;  %v1065_v4 = vsel %vm1064_vm6, %v3301_v49, %v1061_v42  ;;  %v6111_v49 = vld [vmem:[#allocation23_spill] sm:$0xff]  ;;  %v6125_v42 = vld [vmem:[#allocation46_spill] sm:$0xff] }
 0x314   :  { %v1070_v18 = vsel %vm1067_vm7, %v1069_v33, %v1065_v4  ;;  %v6128_v4 = vld [vmem:[#allocation40_spill] sm:$0xff]  ;;  %v6129_v33 = vld [vmem:[#allocation30_spill] sm:$0xff] }
 0x319   :  { %v3305_v21 = vpop.eup %3304 }
 0x31a   :  { %v1076_v51 = vmul.f32 %v3305_v21, %v1070_v18  ;;  %v6130_v21 = vld [vmem:[#allocation47_spill] sm:$0xff]  ;;  %v6131_v18 = vld [vmem:[#allocation44_spill] sm:$0xff] }
 0x31c   :  { %1098 = vmatmul.f32.vlgmr.msrb.gmra.mxu0 %v1076_v51  ;;  %1118 = vmatmul.f32.vlgmr.msrb.gmra.mxu1 %v1076_v51 }
 0x31d   :  { %1138 = vmatmul.f32.vlgmr.msra.gmra.mxu2 %v1076_v51  ;;  %1158 = vmatmul.f32.vlgmr.msrb.gmra.mxu3 %v1076_v51  ;;  %v6132_v51 = vld [vmem:[#allocation41_spill] sm:$0xff] }
 0x31e   :  { %1386 = vmatpush.msrb.mxu0 %v4470_v45  ;;  %1406 = vmatpush.msrb.mxu1 %v4473_v3 }
 0x31f   :  { %1426 = vmatpush.msra.mxu2 %v4476_v10  ;;  %1446 = vmatpush.msrb.mxu3 %v4479_v8 }
 0x320   :  { %1387 = vmatpush.msrb.mxu0 %v4482_v7  ;;  %1407 = vmatpush.msrb.mxu1 %v4485_v48 }
 0x321   :  { %1427 = vmatpush.msra.mxu2 %v4488_v62  ;;  %1447 = vmatpush.msrb.mxu3 %v4491_v61 }
 0x322   :  { %1388 = vmatpush.msrb.mxu0 %v4494_v6  ;;  %1408 = vmatpush.msrb.mxu1 %v4497_v63 }
 0x323   :  { %1428 = vmatpush.msra.mxu2 %v4500_v15  ;;  %1448 = vmatpush.msrb.mxu3 %v4503_v27 }
 0x324   :  { %1389 = vmatpush.msrb.mxu0 %v4506_v1  ;;  %1409 = vmatpush.msrb.mxu1 %v4509_v9 }
 0x325   :  { %1429 = vmatpush.msra.mxu2 %v4512_v12  ;;  %1449 = vmatpush.msrb.mxu3 %v4515_v54 }
 0x326   :  { %1390 = vmatpush.msrb.mxu0 %v4518_v46  ;;  %1410 = vmatpush.msrb.mxu1 %v4521_v57 }
 0x327   :  { %1430 = vmatpush.msra.mxu2 %v4524_v16  ;;  %1450 = vmatpush.msrb.mxu3 %v4527_v55 }
 0x328   :  { %1391 = vmatpush.msrb.mxu0 %v4530_v11  ;;  %1411 = vmatpush.msrb.mxu1 %v4533_v13 }
 0x329   :  { %1431 = vmatpush.msra.mxu2 %v4657_v56  ;;  %1451 = vmatpush.msrb.mxu3 %v4537_v17 }
 0x32a   :  { %1392 = vmatpush.msrb.mxu0 %v4540_v19  ;;  %1412 = vmatpush.msrb.mxu1 %v4543_v20 }
 0x32b   :  { %1432 = vmatpush.msra.mxu2 %v4663_v50  ;;  %1452 = vmatpush.msrb.mxu3 %v4547_v23 }
 0x32c   :  { %1393 = vmatpush.msrb.mxu0 %v4550_v24  ;;  %1413 = vmatpush.msrb.mxu1 %v4553_v53 }
 0x32d   :  { %1433 = vmatpush.msra.mxu2 %v4669_v2  ;;  %1453 = vmatpush.msrb.mxu3 %v4557_v28 }
 0x32e   :  { %1394 = vmatpush.msrb.mxu0 %v4560_v29  ;;  %1414 = vmatpush.msrb.mxu1 %v4563_v58 }
 0x32f   :  { %1434 = vmatpush.msra.mxu2 %v4675_v52  ;;  %1454 = vmatpush.msrb.mxu3 %v4567_v35 }
 0x330   :  { %1395 = vmatpush.msrb.mxu0 %v4570_v39  ;;  %1415 = vmatpush.msrb.mxu1 %v4573_v0 }
 0x331   :  { %1435 = vmatpush.msra.mxu2 %v6108_v43  ;;  %1455 = vmatpush.msrb.mxu3 %v6109_v44 }
 0x332   :  { %1396 = vmatpush.msrb.mxu0 %v6110_v47  ;;  %1416 = vmatpush.msrb.mxu1 %v6111_v49 }
 0x333   :  { %1436 = vmatpush.msra.mxu2 %v6112_v22  ;;  %1456 = vmatpush.msrb.mxu3 %v6113_v14 }
 0x334   :  { %1397 = vmatpush.msrb.mxu0 %v6114_v41  ;;  %1417 = vmatpush.msrb.mxu1 %v6115_v59 }
 0x335   :  { %1437 = vmatpush.msra.mxu2 %v6116_v40  ;;  %1457 = vmatpush.msrb.mxu3 %v6117_v38 }
 0x336   :  { %1398 = vmatpush.msrb.mxu0 %v6118_v37  ;;  %1418 = vmatpush.msrb.mxu1 %v6119_v5 }
 0x337   :  { %1438 = vmatpush.msra.mxu2 %v6120_v32  ;;  %1458 = vmatpush.msrb.mxu3 %v6121_v60 }
 0x338   :  { %1399 = vmatpush.msrb.mxu0 %v6122_v31  ;;  %1419 = vmatpush.msrb.mxu1 %v6123_v34  ;;  %v6133_v31 = vld [vmem:[#allocation22_spill] sm:$0xff] }
 0x339   :  { %1439 = vmatpush.msra.mxu2 %v6124_v26  ;;  %1459 = vmatpush.msrb.mxu3 %v6125_v42  ;;  %v6134_v34 = vld [vmem:[#allocation54_spill] sm:$0xff]  ;;  %v6135_v26 = vld [vmem:[#allocation20_spill] sm:$0xff] }
 0x33a   :  { %1400 = vmatpush.msrb.mxu0 %v6126_v36  ;;  %1420 = vmatpush.msrb.mxu1 %v6127_v30  ;;  %v281_v60 = vadd.f32 %v6135_v26, %v6134_v34  ;;  %v6136_v36 = vld [vmem:[#allocation58_spill] sm:$0xff] }
 0x33b   :  { %1440 = vmatpush.msra.mxu2 %v6128_v4  ;;  %1460 = vmatpush.msrb.mxu3 %v6129_v33 }
 0x33c   :  { %1401 = vmatpush.msrb.mxu0 %v6130_v21  ;;  %1421 = vmatpush.msrb.mxu1 %v6131_v18  ;;  %v6137_v21 = vld [vmem:[#allocation59_spill] sm:$0xff] }
 0x33d   :  { %1441 = vmatpush.msra.mxu2 %v6132_v51  ;;  %1461 = vmatpush.msrb.mxu3 %v6133_v31 }
 0x399   :  { %v1099_v42 = vpop.f32.mrf.mxu0  ;;  %v1119_v32 = vpop.f32.mrf.mxu1 }
 0x39a   :  { %v1162_v5 = vadd.f32 %v1099_v42, %v6136_v36  ;;  %v1163_v30 = vadd.f32 %v1119_v32, %v281_v60  ;;  %v6138_v32 = vld [vmem:[#allocation69_spill] sm:$0xff] }
 0x39c   :  { %v3190_v37 = vmul.f32 -1.442695, %v1162_v5  ;;  %v3191_v4 = vmul.f32 -1.442695, %v1163_v30 }
 0x39e   :  { %3306 = vpow2.f32 %v3190_v37 }
 0x39f   :  { %3308 = vpow2.f32 %v3191_v4 }
 0x3a0   :  { %v1159_v33 = vpop.f32.mrf.mxu3  ;;  %v1139_v26 = vpop.f32.mrf.mxu2 }
 0x3a1   :  { %v1165_v38 = vadd.f32 %v1159_v33, %v6137_v21  ;;  %v1164_v5 = vadd.f32 %v1139_v26, %v6138_v32 }
 0x3a3   :  { %v3192_v18 = vmul.f32 -1.442695, %v1165_v38 }
 0x3a4   :  { %v3307_v40 = vpop.eup %3306 }
 0x3a5   :  { %v3309_v51 = vpop.eup %3308  ;;  %v1169_v59 = vadd.f32 1.0, %v3307_v40  ;;  %3310 = vpow2.f32 %v3192_v18 }
 0x3a6   :  { %v1188_v31 = vadd.f32 1.0, %v3309_v51 }
 0x3a7   :  { %3312 = vrcp.f32 %v1169_v59  ;;  %v1181_v38 = vand.u32 2147483648, %v1169_v59  ;;  %v1179_v21 = vand.u32 2147483647, %v1169_v59  ;;  %vm1175_vm10 = vweird.f32 %v1169_v59 }
 0x3a8   :  { %3314 = vrcp.f32 %v1188_v31  ;;  %v1200_v33 = vand.u32 2147483648, %v1188_v31  ;;  %v1198_v51 = vand.u32 2147483647, %v1188_v31  ;;  %vm1194_vm11 = vweird.f32 %v1188_v31 }
 0x3a9   :  { %v1182_v26 = vor.u32 1.1754944e-38, %v1181_v38  ;;  %vm1180_vm14 = vcmp.eq.f32.partialorder %v1179_v21, 8.507059e+37 }
 0x3aa   :  { %vm1199_vm15 = vcmp.eq.f32.partialorder %v1198_v51, 8.507059e+37 }
 0x3ab   :  { %v3311_v34 = vpop.eup %3310 }
 0x3ac   :  { %v1208_v41 = vadd.f32 1.0, %v3311_v34 }
 0x3ad   :  { %v3313_v42 = vpop.eup %3312 }
 0x3ae   :  { %v3315_v60 = vpop.eup %3314  ;;  %v1171_v37 = vmul.f32 %v3313_v42, %v1169_v59  ;;  %3316 = vrcp.f32 %v1208_v41  ;;  %vm1176_vm8 = vweird.f32 %v3313_v42  ;;  %v1220_v38 = vand.u32 2147483648, %v1208_v41 }
 0x3af   :  { %v1190_v36 = vmul.f32 %v3315_v60, %v1188_v31  ;;  %3318 = vtanh.f32 %v1164_v5  ;;  %vm1195_vm9 = vweird.f32 %v3315_v60  ;;  %vm1177_vm12 = vmor %vm1175_vm10, %vm1176_vm8  ;;  %vm1214_vm3 = vweird.f32 %v1208_v41 }
 0x3b0   :  { %v1172_v30 = vsub.f32 1.0, %v1171_v37  ;;  %vm1196_vm13 = vmor %vm1194_vm11, %vm1195_vm9  ;;  %v1201_v37 = vor.u32 1.1754944e-38, %v1200_v33  ;;  %v1221_v21 = vor.u32 1.1754944e-38, %v1220_v38 }
 0x3b1   :  { %v1191_v4 = vsub.f32 1.0, %v1190_v36 }
 0x3b2   :  { %v1173_v40 = vmul.f32 %v3313_v42, %v1172_v30 }
 0x3b3   :  { %v1192_v18 = vmul.f32 %v3315_v60, %v1191_v4 }
 0x3b4   :  { %v3317_v14 = vpop.eup %3316  ;;  %v1174_v34 = vadd.f32 %v3313_v42, %v1173_v40 }
 0x3b5   :  { %v1193_v32 = vadd.f32 %v3315_v60, %v1192_v18  ;;  %v1210_v22 = vmul.f32 %v3317_v14, %v1208_v41  ;;  %v3319_v5 = vpop.eup %3318  ;;  %vm1215_vm2 = vweird.f32 %v3317_v14 }
 0x3b6   :  { %v1178_v36 = vsel %vm1177_vm12, %v3313_v42, %v1174_v34  ;;  %v1218_v42 = vand.u32 2147483647, %v1208_v41  ;;  %vm1216_vm4 = vmor %vm1214_vm3, %vm1215_vm2 }
 0x3b7   :  { %v1183_v49 = vsel %vm1180_vm14, %v1182_v26, %v1178_v36  ;;  %v1197_v30 = vsel %vm1196_vm13, %v3315_v60, %v1193_v32  ;;  %v1211_v47 = vsub.f32 1.0, %v1210_v22  ;;  %v6169_v32 = vld [vmem:[#allocation70_spill] sm:$0xff] }
 0x3b8   :  { %v1202_v4 = vsel %vm1199_vm15, %v1201_v37, %v1197_v30  ;;  %v1225_v44 = vmul.f32 %v3319_v5, %v1183_v49  ;;  %vm1219_vm5 = vcmp.eq.f32.partialorder %v1218_v42, 8.507059e+37 }
 0x3b9   :  { %v1224_v43 = vmul.f32 %v1202_v4, %v4740_v25  ;;  %v1212_v40 = vmul.f32 %v3317_v14, %v1211_v47 }
 0x3bb   :  { %v4813_v59 = vadd.f32 %v1225_v44, %v1224_v43  ;;  %v1213_v31 = vadd.f32 %v3317_v14, %v1212_v40 }
 0x3bd   :  { %3320 = vtanh.f32 %v4813_v59  ;;  %v1217_v33 = vsel %vm1216_vm4, %v3317_v14, %v1213_v31 }
 0x3be   :  { %v1222_v22 = vsel %vm1219_vm5, %v1221_v21, %v1217_v33 }
 0x3c3   :  { %v3321_v60 = vpop.eup %3320 }
 0x3c4   :  { %v1228_v18 = vmul.f32 %v3321_v60, %v1222_v22 }
 0x3c6   :  { %1250 = vmatmul.f32.vlgmr.msra.gmra.mxu0 %v1228_v18  ;;  %1270 = vmatmul.f32.vlgmr.msra.gmra.mxu1 %v1228_v18 }
 0x3c7   :  { %1290 = vmatmul.f32.vlgmr.msrb.gmra.mxu2 %v1228_v18  ;;  %1310 = vmatmul.f32.vlgmr.msra.gmra.mxu3 %v1228_v18 }
 0x3c8   :  { %1538 = vmatpush.msra.mxu0 %v4470_v45  ;;  %1558 = vmatpush.msra.mxu1 %v4473_v3  ;;  %v6139_v45 = vld [vmem:[#allocation35_spill] sm:$0xff] }
 0x3c9   :  { %1578 = vmatpush.msrb.mxu2 %v4476_v10  ;;  %1598 = vmatpush.msra.mxu3 %v4479_v8  ;;  %v6140_v3 = vld [vmem:[#allocation19_spill] sm:$0xff]  ;;  %v6141_v10 = vld [vmem:[#allocation26_spill] sm:$0xff] }
 0x3ca   :  { %1539 = vmatpush.msra.mxu0 %v4482_v7  ;;  %1559 = vmatpush.msra.mxu1 %v4485_v48  ;;  %v6142_v8 = vld [vmem:[#allocation23_spill] sm:$0xff]  ;;  %v6143_v7 = vld [vmem:[#allocation34_spill] sm:$0xff] }
 0x3cb   :  { %1579 = vmatpush.msrb.mxu2 %v4488_v62  ;;  %1599 = vmatpush.msra.mxu3 %v4491_v61  ;;  %v6144_v48 = vld [vmem:[#allocation42_spill] sm:$0xff]  ;;  %v6145_v62 = vld [vmem:[#allocation31_spill] sm:$0xff]  ;;  %v6146_v61 = vld [vmem:[#allocation28_spill] sm:$0xff] }
 0x3cc   :  { %1540 = vmatpush.msra.mxu0 %v4494_v6  ;;  %1560 = vmatpush.msra.mxu1 %v4497_v63  ;;  %v6147_v6 = vld [vmem:[#allocation27_spill] sm:$0xff]  ;;  %v6148_v63 = vld [vmem:[#allocation45_spill] sm:$0xff] }
 0x3cd   :  { %1580 = vmatpush.msrb.mxu2 %v4500_v15  ;;  %1600 = vmatpush.msra.mxu3 %v4503_v27  ;;  %v6149_v15 = vld [vmem:[#allocation24_spill] sm:$0xff]  ;;  %v6150_v27 = vld [vmem:[#allocation43_spill] sm:$0xff] }
 0x3ce   :  { %1541 = vmatpush.msra.mxu0 %v4506_v1  ;;  %1561 = vmatpush.msra.mxu1 %v4509_v9  ;;  %v6151_v1 = vld [vmem:[#allocation38_spill] sm:$0xff]  ;;  %v6152_v9 = vld [vmem:[#allocation37_spill] sm:$0xff] }
 0x3cf   :  { %1581 = vmatpush.msrb.mxu2 %v4512_v12  ;;  %1601 = vmatpush.msra.mxu3 %v4515_v54  ;;  %v6153_v12 = vld [vmem:[#allocation33_spill] sm:$0xff]  ;;  %v6154_v54 = vld [vmem:[#allocation32_spill] sm:$0xff] }
 0x3d0   :  { %1542 = vmatpush.msra.mxu0 %v4518_v46  ;;  %1562 = vmatpush.msra.mxu1 %v4521_v57  ;;  %v6155_v46 = vld [vmem:[#allocation29_spill] sm:$0xff]  ;;  %v6156_v57 = vld [vmem:[#allocation46_spill] sm:$0xff] }
 0x3d1   :  { %1582 = vmatpush.msrb.mxu2 %v4524_v16  ;;  %1602 = vmatpush.msra.mxu3 %v4527_v55  ;;  %v6157_v16 = vld [vmem:[#allocation39_spill] sm:$0xff]  ;;  %v6158_v55 = vld [vmem:[#allocation25_spill] sm:$0xff] }
 0x3d2   :  { %1543 = vmatpush.msra.mxu0 %v4530_v11  ;;  %1563 = vmatpush.msra.mxu1 %v4533_v13  ;;  %v6159_v11 = vld [vmem:[#allocation40_spill] sm:$0xff]  ;;  %v6160_v13 = vld [vmem:[#allocation30_spill] sm:$0xff] }
 0x3d3   :  { %1583 = vmatpush.msrb.mxu2 %v4657_v56  ;;  %1603 = vmatpush.msra.mxu3 %v4537_v17  ;;  %v6161_v17 = vld [vmem:[#allocation47_spill] sm:$0xff] }
 0x3d4   :  { %1544 = vmatpush.msra.mxu0 %v4540_v19  ;;  %1564 = vmatpush.msra.mxu1 %v4543_v20  ;;  %v6162_v19 = vld [vmem:[#allocation44_spill] sm:$0xff]  ;;  %v6163_v20 = vld [vmem:[#allocation41_spill] sm:$0xff] }
 0x3d5   :  { %1584 = vmatpush.msrb.mxu2 %v4663_v50  ;;  %1604 = vmatpush.msra.mxu3 %v4547_v23  ;;  %v6164_v23 = vld [vmem:[#allocation22_spill] sm:$0xff] }
 0x3d6   :  { %1545 = vmatpush.msra.mxu0 %v4550_v24  ;;  %1565 = vmatpush.msra.mxu1 %v4553_v53  ;;  %v6165_v24 = vld [vmem:[#allocation54_spill] sm:$0xff]  ;;  %v6166_v53 = vld [vmem:[#allocation36_spill] sm:$0xff] }
 0x3d7   :  { %1585 = vmatpush.msrb.mxu2 %v4669_v2  ;;  %1605 = vmatpush.msra.mxu3 %v4557_v28  ;;  %v284_v28 = vadd.f32 %v6166_v53, %v6165_v24 }
 0x3d8   :  { %1546 = vmatpush.msra.mxu0 %v4560_v29  ;;  %1566 = vmatpush.msra.mxu1 %v4563_v58 }
 0x3d9   :  { %1586 = vmatpush.msrb.mxu2 %v4675_v52  ;;  %1606 = vmatpush.msra.mxu3 %v4567_v35  ;;  %v6167_v35 = vld [vmem:[#allocation60_spill] sm:$0xff]  ;;  %v6168_v52 = vld [vmem:[#allocation62_spill] sm:$0xff] }
 0x3da   :  { %1547 = vmatpush.msra.mxu0 %v4570_v39  ;;  %1567 = vmatpush.msra.mxu1 %v4573_v0 }
 0x3db   :  { %1587 = vmatpush.msrb.mxu2 %v6139_v45  ;;  %1607 = vmatpush.msra.mxu3 %v6140_v3 }
 0x3dc   :  { %1548 = vmatpush.msra.mxu0 %v6141_v10  ;;  %1568 = vmatpush.msra.mxu1 %v6142_v8 }
 0x3dd   :  { %1588 = vmatpush.msrb.mxu2 %v6143_v7  ;;  %1608 = vmatpush.msra.mxu3 %v6144_v48 }
 0x3de   :  { %1549 = vmatpush.msra.mxu0 %v6145_v62  ;;  %1569 = vmatpush.msra.mxu1 %v6146_v61 }
 0x3df   :  { %1589 = vmatpush.msrb.mxu2 %v6147_v6  ;;  %1609 = vmatpush.msra.mxu3 %v6148_v63 }
 0x3e0   :  { %1550 = vmatpush.msra.mxu0 %v6149_v15  ;;  %1570 = vmatpush.msra.mxu1 %v6150_v27 }
 0x3e1   :  { %1590 = vmatpush.msrb.mxu2 %v6151_v1  ;;  %1610 = vmatpush.msra.mxu3 %v6152_v9 }
 0x3e2   :  { %1551 = vmatpush.msra.mxu0 %v6153_v12  ;;  %1571 = vmatpush.msra.mxu1 %v6154_v54 }
 0x3e3   :  { %1591 = vmatpush.msrb.mxu2 %v6155_v46  ;;  %1611 = vmatpush.msra.mxu3 %v6156_v57 }
 0x3e4   :  { %1552 = vmatpush.msra.mxu0 %v6157_v16  ;;  %1572 = vmatpush.msra.mxu1 %v6158_v55 }
 0x3e5   :  { %1592 = vmatpush.msrb.mxu2 %v6159_v11  ;;  %1612 = vmatpush.msra.mxu3 %v6160_v13 }
 0x3e6   :  { %1553 = vmatpush.msra.mxu0 %v6161_v17  ;;  %1573 = vmatpush.msra.mxu1 %v6162_v19 }
 0x3e7   :  { %1593 = vmatpush.msrb.mxu2 %v6163_v20  ;;  %1613 = vmatpush.msra.mxu3 %v6164_v23  ;;  %v6171_v23 = vld [vmem:[#allocation63_spill] sm:$0xff] }
 0x443   :  { %v1251_v29 = vpop.f32.mrf.mxu0  ;;  %v1271_v58 = vpop.f32.mrf.mxu1 }
 0x444   :  { %v1314_v39 = vadd.f32 %v1251_v29, %v6167_v35  ;;  %v1315_v0 = vadd.f32 %v1271_v58, %v284_v28 }
 0x446   :  { %v3193_v56 = vmul.f32 -1.442695, %v1314_v39  ;;  %v3194_v50 = vmul.f32 -1.442695, %v1315_v0  ;;  %v6172_v39 = vld [vmem:[#allocation65_spill] sm:$0xff] }
 0x448   :  { %3322 = vpow2.f32 %v3193_v56 }
 0x449   :  { %3324 = vpow2.f32 %v3194_v50 }
 0x44a   :  { %v1311_v2 = vpop.f32.mrf.mxu3  ;;  %v1291_v41 = vpop.f32.mrf.mxu2 }
 0x44b   :  { %v1317_v25 = vadd.f32 %v1311_v2, %v6168_v52  ;;  %v1316_v37 = vadd.f32 %v1291_v41, %v6169_v32 }
 0x44d   :  { %v3195_v43 = vmul.f32 -1.442695, %v1317_v25 }
 0x44e   :  { %v3323_v44 = vpop.eup %3322 }
 0x44f   :  { %v3325_v47 = vpop.eup %3324  ;;  %v1321_v49 = vadd.f32 1.0, %v3323_v44  ;;  %3326 = vpow2.f32 %v3195_v43  ;;  %v1690_v43 = vld [vmem:[#allocation8 + $0x20] sm:$0x3] }
 0x450   :  { %v1340_v14 = vadd.f32 1.0, %v3325_v47  ;;  %v1687_v44 = vld [vmem:[#allocation8] sm:$0xff]  ;;  %v1692_v47 = vld [vmem:[#allocation8 + $0x38] sm:$0x3] }
 0x451   :  { %3328 = vrcp.f32 %v1321_v49  ;;  %v1333_v31 = vand.u32 2147483648, %v1321_v49  ;;  %v1331_v33 = vand.u32 2147483647, %v1321_v49  ;;  %vm1327_vm8 = vweird.f32 %v1321_v49 }
 0x452   :  { %3330 = vrcp.f32 %v1340_v14  ;;  %v1352_v38 = vand.u32 2147483648, %v1340_v14  ;;  %v1350_v60 = vand.u32 2147483647, %v1340_v14  ;;  %vm1346_vm9 = vweird.f32 %v1340_v14 }
 0x453   :  { %v1334_v45 = vor.u32 1.1754944e-38, %v1333_v31  ;;  %vm1332_vm12 = vcmp.eq.f32.partialorder %v1331_v33, 8.507059e+37 }
 0x454   :  { %v1353_v8 = vor.u32 1.1754944e-38, %v1352_v38  ;;  %vm1351_vm13 = vcmp.eq.f32.partialorder %v1350_v60, 8.507059e+37  ;;  %v1910_v60 = vld [vmem:[#allocation9 + $0x2f8] sm:$0xff] }
 0x455   :  { %v3327_v51 = vpop.eup %3326 }
 0x456   :  { %v1360_v34 = vadd.f32 1.0, %v3327_v51 }
 0x457   :  { %v3329_v26 = vpop.eup %3328 }
 0x458   :  { %v3331_v36 = vpop.eup %3330  ;;  %v1323_v5 = vmul.f32 %v3329_v26, %v1321_v49  ;;  %3332 = vrcp.f32 %v1360_v34  ;;  %vm1328_vm6 = vweird.f32 %v3329_v26  ;;  %v1372_v54 = vand.u32 2147483648, %v1360_v34  ;;  %v1689_v49 = vld [vmem:[#allocation8 + $0x18] sm:$0xff] }
 0x459   :  { %v1342_v30 = vmul.f32 %v3331_v36, %v1340_v14  ;;  %3334 = vtanh.f32 %v1316_v37  ;;  %vm1347_vm7 = vweird.f32 %v3331_v36  ;;  %vm1329_vm10 = vmor %vm1327_vm8, %vm1328_vm6  ;;  %vm1366_vm15 = vweird.f32 %v1360_v34 }
 0x45a   :  { %v1324_v4 = vsub.f32 1.0, %v1323_v5  ;;  %vm1348_vm11 = vmor %vm1346_vm9, %vm1347_vm7  ;;  %v1370_v46 = vand.u32 2147483647, %v1360_v34  ;;  %v1373_v16 = vor.u32 1.1754944e-38, %v1372_v54 }
 0x45b   :  { %v1343_v40 = vsub.f32 1.0, %v1342_v30  ;;  %v1691_v30 = vld [vmem:[#allocation8 + $0x30] sm:$0x3] }
 0x45c   :  { %v1325_v42 = vmul.f32 %v3329_v26, %v1324_v4  ;;  %vm1371_vm3 = vcmp.eq.f32.partialorder %v1370_v46, 8.507059e+37  ;;  %v1688_v4 = vld [vmem:[#allocation8 + $0x10] sm:$0xff] }
 0x45d   :  { %v1344_v21 = vmul.f32 %v3331_v36, %v1343_v40 }
 0x45e   :  { %v3333_v22 = vpop.eup %3332  ;;  %v1326_v18 = vadd.f32 %v3329_v26, %v1325_v42 }
 0x45f   :  { %v1345_v3 = vadd.f32 %v3331_v36, %v1344_v21  ;;  %v1362_v10 = vmul.f32 %v3333_v22, %v1360_v34  ;;  %v3335_v48 = vpop.eup %3334  ;;  %vm1367_vm14 = vweird.f32 %v3333_v22 }
 0x460   :  { %v1330_v7 = vsel %vm1329_vm10, %v3329_v26, %v1326_v18  ;;  %vm1368_vm2 = vmor %vm1366_vm15, %vm1367_vm14  ;;  %v6173_v26 = vld [vmem:[#allocation71_spill] sm:$0xff] }
 0x461   :  { %v1335_v62 = vsel %vm1332_vm12, %v1334_v45, %v1330_v7  ;;  %v1349_v61 = vsel %vm1348_vm11, %v3331_v36, %v1345_v3  ;;  %v1363_v6 = vsub.f32 1.0, %v1362_v10  ;;  %v1907_v45 = vld [vmem:[#allocation9 + $0x2e0] sm:$0xff] }
 0x462   :  { %v1354_v63 = vsel %vm1351_vm13, %v1353_v8, %v1349_v61  ;;  %v1377_v15 = vmul.f32 %v3335_v48, %v1335_v62 }
 0x463   :  { %v1376_v27 = vmul.f32 %v1354_v63, %v4813_v59  ;;  %v1364_v1 = vmul.f32 %v3333_v22, %v1363_v6  ;;  %v6170_v59 = vld [vmem:[#allocation51_spill] sm:$0xff] }
 0x464   :  { %v287_v17 = vadd.f32 %v6170_v59, %v6165_v24 }
 0x465   :  { %v4886_v9 = vadd.f32 %v1377_v15, %v1376_v27  ;;  %v1365_v12 = vadd.f32 %v3333_v22, %v1364_v1 }
 0x467   :  { %3336 = vtanh.f32 %v4886_v9  ;;  %v1369_v57 = vsel %vm1368_vm2, %v3333_v22, %v1365_v12 }
 0x468   :  { %v1374_v11 = vsel %vm1371_vm3, %v1373_v16, %v1369_v57 }
 0x46d   :  { %v3337_v55 = vpop.eup %3336 }
 0x46e   :  { %v1380_v13 = vmul.f32 %v3337_v55, %v1374_v11 }
 0x470   :  { %1402 = vmatmul.f32.vlgmr.msrb.gmra.mxu0 %v1380_v13  ;;  %1422 = vmatmul.f32.vlgmr.msrb.gmra.mxu1 %v1380_v13 }
 0x471   :  { %1442 = vmatmul.f32.vlgmr.msra.gmra.mxu2 %v1380_v13  ;;  %1462 = vmatmul.f32.vlgmr.msrb.gmra.mxu3 %v1380_v13 }
 0x472   :  { %3203 = vmatpush.msk.msrb.mxu0 %vm197_vm0, %v1690_v43  ;;  %3207 = vmatpush.msk.msra.mxu2 %vm197_vm0, %v1692_v47  ;;  %v1900_v43 = vld [vmem:[#allocation9 + $0x2a8] sm:$0xff]  ;;  %v1854_v47 = vld [vmem:[#allocation9 + $0x138] sm:$0xff] }
 0x473   :  { %3205 = vmatpush.msk.msrb.mxu3 %vm197_vm0, %v1691_v30  ;;  %1951 = vmatpush.msrb.mxu1 %v1910_v60  ;;  %v1892_v30 = vld [vmem:[#allocation9 + $0x268] sm:$0xff]  ;;  %v1886_v60 = vld [vmem:[#allocation9 + $0x238] sm:$0xff] }
 0x474   :  { %1728 = vmatpush.msrb.mxu0 %v1687_v44  ;;  %1768 = vmatpush.msra.mxu2 %v1689_v49  ;;  %v1901_v44 = vld [vmem:[#allocation9 + $0x2b0] sm:$0xff]  ;;  %v1887_v49 = vld [vmem:[#allocation9 + $0x240] sm:$0xff] }
 0x475   :  { %1748 = vmatpush.msrb.mxu3 %v1688_v4  ;;  %1952 = vmatpush.msrb.mxu1 %v1907_v45  ;;  %v1845_v4 = vld [vmem:[#allocation9 + $0xf0] sm:$0xff]  ;;  %v1882_v45 = vld [vmem:[#allocation9 + $0x218] sm:$0xff] }
 0x4ed   :  { %v1403_v19 = vpop.f32.mrf.mxu0  ;;  %v1423_v20 = vpop.f32.mrf.mxu1 }
 0x4ee   :  { %v1466_v53 = vadd.f32 %v1403_v19, %v6171_v23  ;;  %v1467_v28 = vadd.f32 %v1423_v20, %v287_v17  ;;  %v1908_v23 = vld [vmem:[#allocation9 + $0x2e8] sm:$0xff] }
 0x4f0   :  { %v3196_v29 = vmul.f32 -1.442695, %v1466_v53  ;;  %v3197_v58 = vmul.f32 -1.442695, %v1467_v28  ;;  %v1909_v53 = vld [vmem:[#allocation9 + $0x2f0] sm:$0xff] }
 0x4f1   :  { %v1905_v28 = vld [vmem:[#allocation9 + $0x2d0] sm:$0xff] }
 0x4f2   :  { %3338 = vpow2.f32 %v3196_v29  ;;  %v1906_v29 = vld [vmem:[#allocation9 + $0x2d8] sm:$0xff] }
 0x4f3   :  { %3340 = vpow2.f32 %v3197_v58  ;;  %v1902_v58 = vld [vmem:[#allocation9 + $0x2b8] sm:$0xff] }
 0x4f4   :  { %v1463_v35 = vpop.f32.mrf.mxu3  ;;  %v1443_v14 = vpop.f32.mrf.mxu2 }
 0x4f5   :  { %v1469_v0 = vadd.f32 %v1463_v35, %v6172_v39  ;;  %v1468_v32 = vadd.f32 %v1443_v14, %v6173_v26  ;;  %v3202_v35 = vld [vmem:[%s5822_s0 + $0x38] sm:$0xff]  ;;  %v1899_v39 = vld [vmem:[#allocation9 + $0x2a0] sm:$0xff]  ;;  %v1897_v14 = vld [vmem:[#allocation9 + $0x290] sm:$0xff] }
 0x4f6   :  { %v1894_v26 = vld [vmem:[#allocation9 + $0x278] sm:$0xff] }
 0x4f7   :  { %v3198_v56 = vmul.f32 -1.442695, %v1469_v0  ;;  %v1896_v0 = vld [vmem:[#allocation9 + $0x288] sm:$0xff] }
 0x4f8   :  { %v3339_v50 = vpop.eup %3338 }
 0x4f9   :  { %v3341_v2 = vpop.eup %3340  ;;  %v1473_v52 = vadd.f32 1.0, %v3339_v50  ;;  %3342 = vpow2.f32 %v3198_v56  ;;  %v1893_v56 = vld [vmem:[#allocation9 + $0x270] sm:$0xff]  ;;  %v1903_v50 = vld [vmem:[#allocation9 + $0x2c0] sm:$0xff] }
 0x4fa   :  { %v1492_v25 = vadd.f32 1.0, %v3341_v2  ;;  %v1904_v2 = vld [vmem:[#allocation9 + $0x2c8] sm:$0xff] }
 0x4fb   :  { %3344 = vrcp.f32 %v1473_v52  ;;  %v1485_v38 = vand.u32 2147483648, %v1473_v52  ;;  %v1483_v21 = vand.u32 2147483647, %v1473_v52  ;;  %vm1479_vm6 = vweird.f32 %v1473_v52  ;;  %1953 = vmatpush.msrb.mxu1 %v1904_v2  ;;  %v1846_v2 = vld [vmem:[#allocation9 + $0xf8] sm:$0xff] }
 0x4fc   :  { %3346 = vrcp.f32 %v1492_v25  ;;  %v1504_v42 = vand.u32 2147483648, %v1492_v25  ;;  %v1502_v18 = vand.u32 2147483647, %v1492_v25  ;;  %vm1498_vm7 = vweird.f32 %v1492_v25 }
 0x4fd   :  { %v1486_v8 = vor.u32 1.1754944e-38, %v1485_v38  ;;  %vm1484_vm9 = vcmp.eq.f32.partialorder %v1483_v21, 8.507059e+37  ;;  %1954 = vmatpush.msrb.mxu1 %v1901_v44  ;;  %v1889_v38 = vld [vmem:[#allocation9 + $0x250] sm:$0xff]  ;;  %v4917_v44 = vld [vmem:[#allocation11 + $0x138] sm:$0xff] }
 0x4fe   :  { %v1505_v62 = vor.u32 1.1754944e-38, %v1504_v42  ;;  %vm1503_vm10 = vcmp.eq.f32.partialorder %v1502_v18, 8.507059e+37  ;;  %v1842_v42 = vld [vmem:[#allocation9 + $0xd8] sm:$0xff]  ;;  %v1885_v21 = vld [vmem:[#allocation9 + $0x230] sm:$0xff]  ;;  %v1872_v18 = vld [vmem:[#allocation9 + $0x1c8] sm:$0xff] }
 0x4ff   :  { %v3343_v41 = vpop.eup %3342 }
 0x500   :  { %v1512_v51 = vadd.f32 1.0, %v3343_v41  ;;  %v1898_v41 = vld [vmem:[#allocation9 + $0x298] sm:$0xff] }
 0x501   :  { %v3345_v34 = vpop.eup %3344  ;;  %1955 = vmatpush.msrb.mxu1 %v1898_v41  ;;  %v1843_v41 = vld [vmem:[#allocation9 + $0xe0] sm:$0xff] }
 0x502   :  { %v3347_v37 = vpop.eup %3346  ;;  %v1475_v36 = vmul.f32 %v3345_v34, %v1473_v52  ;;  %3348 = vrcp.f32 %v1512_v51  ;;  %vm1480_vm4 = vweird.f32 %v3345_v34  ;;  %v1524_v55 = vand.u32 2147483648, %v1512_v51  ;;  %v1857_v52 = vld [vmem:[#allocation9 + $0x150] sm:$0xff] }
 0x503   :  { %v1494_v5 = vmul.f32 %v3347_v37, %v1492_v25  ;;  %3350 = vtanh.f32 %v1468_v32  ;;  %vm1499_vm5 = vweird.f32 %v3347_v37  ;;  %vm1481_vm8 = vmor %vm1479_vm6, %vm1480_vm4  ;;  %vm1518_vm12 = vweird.f32 %v1512_v51  ;;  %v1890_v25 = vld [vmem:[#allocation9 + $0x258] sm:$0xff]  ;;  %v1895_v32 = vld [vmem:[#allocation9 + $0x280] sm:$0xff] }
 0x504   :  { %v1476_v40 = vsub.f32 1.0, %v1475_v36  ;;  %vm1500_vm0 = vmor %vm1498_vm7, %vm1499_vm5  ;;  %v1522_v11 = vand.u32 2147483647, %v1512_v51  ;;  %v1525_v59 = vor.u32 1.1754944e-38, %v1524_v55  ;;  %1956 = vmatpush.msrb.mxu1 %v1895_v32  ;;  %v1881_v36 = vld [vmem:[#allocation9 + $0x210] sm:$0xff]  ;;  %v1871_v55 = vld [vmem:[#allocation9 + $0x1c0] sm:$0xff] }
 0x505   :  { %v1495_v31 = vsub.f32 1.0, %v1494_v5  ;;  %v1891_v5 = vld [vmem:[#allocation9 + $0x260] sm:$0xff] }
 0x506   :  { %v1477_v33 = vmul.f32 %v3345_v34, %v1476_v40  ;;  %vm1523_vm14 = vcmp.eq.f32.partialorder %v1522_v11, 8.507059e+37  ;;  %1957 = vmatpush.msrb.mxu1 %v1892_v30  ;;  %v1878_v40 = vld [vmem:[#allocation9 + $0x1f8] sm:$0xff]  ;;  %v1824_v11 = vld [vmem:[#allocation9 + $0x48] sm:$0xff]  ;;  %v4924_v32 = vld [vmem:[#allocation11 + $0x120] sm:$0xff] }
 0x507   :  { %v1496_v22 = vmul.f32 %v3347_v37, %v1495_v31  ;;  %v1888_v31 = vld [vmem:[#allocation9 + $0x248] sm:$0xff] }
 0x508   :  { %v3349_v3 = vpop.eup %3348  ;;  %v1478_v10 = vadd.f32 %v3345_v34, %v1477_v33  ;;  %1958 = vmatpush.msrb.mxu1 %v1889_v38  ;;  %v1875_v33 = vld [vmem:[#allocation9 + $0x1e0] sm:$0xff]  ;;  %v4938_v38 = vld [vmem:[#allocation11 + $0x128] sm:$0xff] }
 0x509   :  { %v1497_v7 = vadd.f32 %v3347_v37, %v1496_v22  ;;  %v1514_v48 = vmul.f32 %v3349_v3, %v1512_v51  ;;  %v3351_v6 = vpop.eup %3350  ;;  %vm1519_vm11 = vweird.f32 %v3349_v3  ;;  %v1851_v51 = vld [vmem:[#allocation9 + $0x120] sm:$0xff] }
 0x50a   :  { %v1482_v61 = vsel %vm1481_vm8, %v3345_v34, %v1478_v10  ;;  %vm1520_vm13 = vmor %vm1518_vm12, %vm1519_vm11  ;;  %v1884_v34 = vld [vmem:[#allocation9 + $0x228] sm:$0xff]  ;;  %v1839_v22 = vld [vmem:[#allocation9 + $0xc0] sm:$0xff]  ;;  %1959 = vmatpush.msrb.mxu1 %v1886_v60 }
 0x50b   :  { %v1487_v63 = vsel %vm1484_vm9, %v1486_v8, %v1482_v61  ;;  %v1501_v15 = vsel %vm1500_vm0, %v3347_v37, %v1497_v7  ;;  %v1515_v27 = vsub.f32 1.0, %v1514_v48  ;;  %v1848_v37 = vld [vmem:[#allocation9 + $0x108] sm:$0xff]  ;;  %v1869_v8 = vld [vmem:[#allocation9 + $0x1b0] sm:$0xff]  ;;  %v1879_v7 = vld [vmem:[#allocation9 + $0x200] sm:$0xff] }
 0x50c   :  { %v1506_v1 = vsel %vm1503_vm10, %v1505_v62, %v1501_v15  ;;  %v1529_v12 = vmul.f32 %v3351_v6, %v1487_v63  ;;  %v1836_v10 = vld [vmem:[#allocation9 + $0xa8] sm:$0xff]  ;;  %v1833_v62 = vld [vmem:[#allocation9 + $0x90] sm:$0xff]  ;;  %v1866_v61 = vld [vmem:[#allocation9 + $0x198] sm:$0xff] }
 0x50d   :  { %v1528_v54 = vmul.f32 %v1506_v1, %v4886_v9  ;;  %v1516_v46 = vmul.f32 %v3349_v3, %v1515_v27  ;;  %v1860_v9 = vld [vmem:[#allocation9 + $0x168] sm:$0xff]  ;;  %v1877_v63 = vld [vmem:[#allocation9 + $0x1f0] sm:$0xff]  ;;  %v1830_v15 = vld [vmem:[#allocation9 + $0x78] sm:$0xff] }
 0x50e   :  { %v1880_v48 = vld [vmem:[#allocation9 + $0x208] sm:$0xff]  ;;  %v1863_v27 = vld [vmem:[#allocation9 + $0x180] sm:$0xff]  ;;  %v1873_v1 = vld [vmem:[#allocation9 + $0x1d0] sm:$0xff] }
 0x50f   :  { %v4898_v57 = vadd.f32 %v1529_v12, %v1528_v54  ;;  %v1517_v16 = vadd.f32 %v3349_v3, %v1516_v46  ;;  %v1876_v6 = vld [vmem:[#allocation9 + $0x1e8] sm:$0xff]  ;;  %v1874_v12 = vld [vmem:[#allocation9 + $0x1d8] sm:$0xff]  ;;  %v1827_v54 = vld [vmem:[#allocation9 + $0x60] sm:$0xff] }
 0x510   :  { %v1861_v46 = vld [vmem:[#allocation9 + $0x170] sm:$0xff] }
 0x511   :  { %3352 = vtanh.f32 %v4898_v57  ;;  %v1521_v13 = vsel %vm1520_vm13, %v3349_v3, %v1517_v16  ;;  %v1883_v3 = vld [vmem:[#allocation9 + $0x220] sm:$0xff]  ;;  %v1870_v16 = vld [vmem:[#allocation9 + $0x1b8] sm:$0xff]  ;;  %v4942_v60 = vld [vmem:[#allocation11 + $0xf0] sm:$0xff] }
 0x512   :  { %v1526_v19 = vsel %vm1523_vm14, %v1525_v59, %v1521_v13  ;;  %1960 = vmatpush.msrb.mxu1 %v1883_v3  ;;  %v1858_v13 = vld [vmem:[#allocation9 + $0x158] sm:$0xff]  ;;  %v1867_v59 = vld [vmem:[#allocation9 + $0x1a0] sm:$0xff] }
 0x514   :  { %1961 = vmatpush.msrb.mxu1 %v1880_v48  ;;  %v6176_v48 = vld [vmem:[#allocation68_spill] sm:$0xff] }
 0x516   :  { %1962 = vmatpush.msrb.mxu1 %v1877_v63 }
 0x517   :  { %v3353_v17 = vpop.eup %3352 }
 0x518   :  { %v1532_v20 = vmul.f32 %v3353_v17, %v1526_v19  ;;  %1963 = vmatpush.msrb.mxu1 %v1874_v12  ;;  %v1868_v17 = vld [vmem:[#allocation9 + $0x1a8] sm:$0xff]  ;;  %v1821_v19 = vld [vmem:[#allocation9 + $0x30] sm:$0xff] }
 0x51a   :  { %1554 = vmatmul.f32.vlgmr.msra.gmra.mxu0 %v1532_v20  ;;  %1574 = vmatmul.f32.vlgmr.msra.gmra.mxu1 %v1532_v20 }
 0x51b   :  { %1594 = vmatmul.f32.vlgmr.msrb.gmra.mxu2 %v1532_v20  ;;  %1614 = vmatmul.f32.vlgmr.msra.gmra.mxu3 %v1532_v20  ;;  %v1855_v20 = vld [vmem:[#allocation9 + $0x140] sm:$0xff] }
 0x51c   :  { %1911 = vmatpush.msra.mxu3 %v1908_v23  ;;  %1931 = vmatpush.msra.mxu0 %v1909_v53  ;;  %v1864_v23 = vld [vmem:[#allocation9 + $0x188] sm:$0xff]  ;;  %v1865_v53 = vld [vmem:[#allocation9 + $0x190] sm:$0xff] }
 0x51d   :  { %1971 = vmatpush.msrb.mxu2 %v1860_v9  ;;  %1964 = vmatpush.msrb.mxu1 %v1871_v55  ;;  %v1818_v9 = vld [vmem:[#allocation9 + $0x18] sm:$0xff] }
 0x51e   :  { %1912 = vmatpush.msra.mxu3 %v1905_v28  ;;  %1932 = vmatpush.msra.mxu0 %v1906_v29  ;;  %v1852_v28 = vld [vmem:[#allocation9 + $0x128] sm:$0xff]  ;;  %v1862_v29 = vld [vmem:[#allocation9 + $0x178] sm:$0xff] }
 0x51f   :  { %1972 = vmatpush.msrb.mxu2 %v1857_v52  ;;  %1965 = vmatpush.msrb.mxu1 %v1868_v17  ;;  %v6174_v52 = vld [vmem:[#allocation56_spill] sm:$0xff] }
 0x520   :  { %1913 = vmatpush.msra.mxu3 %v1902_v58  ;;  %1933 = vmatpush.msra.mxu0 %v1903_v50  ;;  %v4907_v58 = vld [vmem:[#allocation11 + $0x168] sm:$0xff]  ;;  %v4912_v50 = vld [vmem:[#allocation11 + $0x170] sm:$0xff] }
 0x521   :  { %1973 = vmatpush.msrb.mxu2 %v1854_v47  ;;  %1966 = vmatpush.msrb.mxu1 %v1865_v53  ;;  %v4919_v47 = vld [vmem:[#allocation11 + $0x158] sm:$0xff]  ;;  %v1835_v53 = vld [vmem:[#allocation9 + $0xa0] sm:$0xff] }
 0x522   :  { %3204 = vmatmul.msk.f32.vlgmr.msrb.gmra.mxu0 %vm172_vm1, %v3202_v35  ;;  %1914 = vmatpush.msra.mxu3 %v1899_v39  ;;  %v1849_v39 = vld [vmem:[#allocation9 + $0x110] sm:$0xff] }
 0x523   :  { %3208 = vmatmul.msk.f32.vlgmr.msra.gmra.mxu2 %vm172_vm1, %v3202_v35  ;;  %3206 = vmatmul.msk.f32.vlgmr.msrb.gmra.mxu3 %vm172_vm1, %v3202_v35  ;;  %v1815_v35 = vld [vmem:[#allocation9] sm:$0xff] }
 0x524   :  { %1915 = vmatpush.msra.mxu3 %v1896_v0  ;;  %1934 = vmatpush.msra.mxu0 %v1900_v43  ;;  %v1859_v0 = vld [vmem:[#allocation9 + $0x160] sm:$0xff]  ;;  %v1856_v43 = vld [vmem:[#allocation9 + $0x148] sm:$0xff] }
 0x525   :  { %1974 = vmatpush.msrb.mxu2 %v1851_v51  ;;  %2098 = vmatpush.msra.mxu1 %v4907_v58  ;;  %v6175_v51 = vld [vmem:[#allocation66_spill] sm:$0xff] }
 0x526   :  { %1916 = vmatpush.msra.mxu3 %v1893_v56  ;;  %1935 = vmatpush.msra.mxu0 %v1897_v14  ;;  %v4910_v56 = vld [vmem:[#allocation11 + $0x150] sm:$0xff] }
 0x527   :  { %1975 = vmatpush.msrb.mxu2 %v1848_v37  ;;  %2099 = vmatpush.msra.mxu1 %v4910_v56  ;;  %v4926_v37 = vld [vmem:[#allocation11 + $0x140] sm:$0xff] }
 0x528   :  { %1917 = vmatpush.msra.mxu3 %v1890_v25  ;;  %1936 = vmatpush.msra.mxu0 %v1894_v26  ;;  %v290_v25 = vadd.f32 %v6174_v52, %v6165_v24  ;;  %v1853_v24 = vld [vmem:[#allocation9 + $0x130] sm:$0xff]  ;;  %v1819_v52 = vld [vmem:[#allocation9 + $0x20] sm:$0xff] }
 0x529   :  { %1976 = vmatpush.msrb.mxu2 %v1845_v4  ;;  %2100 = vmatpush.msra.mxu1 %v4917_v44 }
 0x52a   :  { %1918 = vmatpush.msra.mxu3 %v1887_v49  ;;  %1937 = vmatpush.msra.mxu0 %v1891_v5  ;;  %v1840_v5 = vld [vmem:[#allocation9 + $0xc8] sm:$0xff] }
 0x52b   :  { %1977 = vmatpush.msrb.mxu2 %v1842_v42  ;;  %2101 = vmatpush.msra.mxu1 %v4924_v32  ;;  %v1837_v42 = vld [vmem:[#allocation9 + $0xb0] sm:$0xff] }
 0x52c   :  { %1919 = vmatpush.msra.mxu3 %v1884_v34  ;;  %1938 = vmatpush.msra.mxu0 %v1888_v31  ;;  %v4935_v31 = vld [vmem:[#allocation11 + $0x108] sm:$0xff] }
 0x52d   :  { %1978 = vmatpush.msrb.mxu2 %v1839_v22  ;;  %2102 = vmatpush.msra.mxu1 %v4935_v31  ;;  %v4944_v22 = vld [vmem:[#allocation11 + $0x110] sm:$0xff] }
 0x52e   :  { %1920 = vmatpush.msra.mxu3 %v1881_v36  ;;  %1939 = vmatpush.msra.mxu0 %v1885_v21  ;;  %v4931_v36 = vld [vmem:[%s5827_s5] sm:$0xf] }
 0x52f   :  { %1979 = vmatpush.msrb.mxu2 %v1836_v10  ;;  %v1847_v21 = vld [vmem:[#allocation9 + $0x100] sm:$0xff]  ;;  %2103 = vmatpush.msra.mxu1 %v4942_v60  ;;  %v1844_v10 = vld [vmem:[#allocation9 + $0xe8] sm:$0xff] }
 0x530   :  { %1921 = vmatpush.msra.mxu3 %v1878_v40  ;;  %1940 = vmatpush.msra.mxu0 %v1882_v45  ;;  %v1850_v40 = vld [vmem:[#allocation9 + $0x118] sm:$0xff] }
 0x531   :  { %1980 = vmatpush.msrb.mxu2 %v1833_v62 }
 0x532   :  { %1922 = vmatpush.msra.mxu3 %v1875_v33  ;;  %1941 = vmatpush.msra.mxu0 %v1879_v7  ;;  %v1695_v33 = vperm.slane %v4931_v36, 0  ;;  %v4952_v7 = vld [vmem:[#allocation11 + $0xf8] sm:$0xff] }
 0x533   :  { %1981 = vmatpush.msrb.mxu2 %v1830_v15  ;;  %v1841_v15 = vld [vmem:[#allocation9 + $0xd0] sm:$0xff] }
 0x534   :  { %1923 = vmatpush.msra.mxu3 %v1872_v18  ;;  %1942 = vmatpush.msra.mxu0 %v1876_v6  ;;  %v1834_v18 = vld [vmem:[#allocation9 + $0x98] sm:$0xff]  ;;  %v1831_v6 = vld [vmem:[#allocation9 + $0x80] sm:$0xff] }
 0x535   :  { %1982 = vmatpush.msrb.mxu2 %v1827_v54  ;;  %v1828_v54 = vld [vmem:[#allocation9 + $0x68] sm:$0xff] }
 0x536   :  { %1924 = vmatpush.msra.mxu3 %v1869_v8  ;;  %1943 = vmatpush.msra.mxu0 %v1873_v1  ;;  %v4950_v8 = vld [vmem:[#allocation11 + $0xd8] sm:$0xff]  ;;  %v4959_v1 = vld [vmem:[#allocation11 + $0xe0] sm:$0xff] }
 0x537   :  { %1983 = vmatpush.msrb.mxu2 %v1824_v11  ;;  %2104 = vmatpush.msra.mxu1 %v4950_v8 }
 0x538   :  { %1925 = vmatpush.msra.mxu3 %v1866_v61  ;;  %1944 = vmatpush.msra.mxu0 %v1870_v16  ;;  %v4962_v16 = vld [vmem:[#allocation11 + $0xa8] sm:$0xff] }
 0x539   :  { %1984 = vmatpush.msrb.mxu2 %v1821_v19  ;;  %v1697_v19 = vperm.slane %v4931_v36, 3 }
 0x53a   :  { %1926 = vmatpush.msra.mxu3 %v1863_v27  ;;  %1945 = vmatpush.msra.mxu0 %v1867_v59  ;;  %v4957_v27 = vld [vmem:[#allocation11 + $0xc0] sm:$0xff] }
 0x53b   :  { %1985 = vmatpush.msrb.mxu2 %v1818_v9  ;;  %2105 = vmatpush.msra.mxu1 %v4957_v27  ;;  %v4974_v9 = vld [vmem:[#allocation11 + $0x90] sm:$0xff] }
 0x53c   :  { %1991 = vmatpush.msrb.mxu3 %v1861_v46  ;;  %1946 = vmatpush.msra.mxu0 %v1864_v23  ;;  %v1838_v46 = vld [vmem:[#allocation9 + $0xb8] sm:$0xff]  ;;  %v1825_v23 = vld [vmem:[#allocation9 + $0x50] sm:$0xff] }
 0x53d   :  { %1986 = vmatpush.msrb.mxu2 %v1815_v35  ;;  %2106 = vmatpush.msra.mxu1 %v4962_v16  ;;  %v1832_v35 = vld [vmem:[#allocation9 + $0x88] sm:$0xff] }
 0x53e   :  { %1992 = vmatpush.msrb.mxu3 %v1858_v13  ;;  %2011 = vmatpush.msrb.mxu0 %v1862_v29  ;;  %v4965_v13 = vld [vmem:[#allocation11 + $0xc8] sm:$0xff]  ;;  %v1822_v29 = vld [vmem:[#allocation9 + $0x38] sm:$0xff] }
 0x53f   :  { %2118 = vmatpush.msra.mxu2 %v4912_v50  ;;  %2107 = vmatpush.msra.mxu1 %v4974_v9 }
 0x540   :  { %1993 = vmatpush.msrb.mxu3 %v1855_v20  ;;  %2012 = vmatpush.msrb.mxu0 %v1859_v0  ;;  %v4982_v0 = vld [vmem:[#allocation11 + $0x78] sm:$0xff] }
 0x541   :  { %2119 = vmatpush.msra.mxu2 %v4919_v47  ;;  %2108 = vmatpush.msra.mxu1 %v4982_v0 }
 0x542   :  { %1994 = vmatpush.msrb.mxu3 %v1852_v28  ;;  %2013 = vmatpush.msrb.mxu0 %v1856_v43  ;;  %v4978_v28 = vld [vmem:[#allocation11 + $0xb0] sm:$0xff] }
 0x543   :  { %2120 = vmatpush.msra.mxu2 %v4926_v37  ;;  %v1829_v43 = vld [vmem:[#allocation9 + $0x70] sm:$0xff] }
 0x544   :  { %1995 = vmatpush.msrb.mxu3 %v1849_v39  ;;  %2014 = vmatpush.msrb.mxu0 %v1853_v24  ;;  %v1816_v24 = vld [vmem:[#allocation9 + $0x8] sm:$0xff] }
 0x545   :  { %2121 = vmatpush.msra.mxu2 %v4938_v38 }
 0x546   :  { %1996 = vmatpush.msrb.mxu3 %v1846_v2  ;;  %2015 = vmatpush.msrb.mxu0 %v1850_v40  ;;  %v4984_v2 = vld [vmem:[#allocation11 + $0x98] sm:$0xff]  ;;  %v6177_v40 = vld [vmem:[#allocation72_spill] sm:$0xff] }
 0x547   :  { %2122 = vmatpush.msra.mxu2 %v4944_v22 }
 0x548   :  { %1997 = vmatpush.msrb.mxu3 %v1843_v41  ;;  %2016 = vmatpush.msrb.mxu0 %v1847_v21  ;;  %v5005_v21 = vld [vmem:[#allocation11 + $0x68] sm:$0xff] }
 0x549   :  { %2123 = vmatpush.msra.mxu2 %v4952_v7 }
 0x54a   :  { %1998 = vmatpush.msrb.mxu3 %v1840_v5  ;;  %2017 = vmatpush.msrb.mxu0 %v1844_v10  ;;  %v1826_v5 = vld [vmem:[#allocation9 + $0x58] sm:$0xff] }
 0x54b   :  { %2124 = vmatpush.msra.mxu2 %v4959_v1 }
 0x54c   :  { %1999 = vmatpush.msrb.mxu3 %v1837_v42  ;;  %2018 = vmatpush.msrb.mxu0 %v1841_v15 }
 0x54d   :  { %2125 = vmatpush.msra.mxu2 %v4965_v13 }
 0x54e   :  { %2000 = vmatpush.msrb.mxu3 %v1834_v18  ;;  %2019 = vmatpush.msrb.mxu0 %v1838_v46  ;;  %v1823_v18 = vld [vmem:[#allocation9 + $0x40] sm:$0xff] }
 0x54f   :  { %2126 = vmatpush.msra.mxu2 %v4978_v28 }
 0x550   :  { %2001 = vmatpush.msrb.mxu3 %v1831_v6  ;;  %2020 = vmatpush.msrb.mxu0 %v1835_v53  ;;  %v1820_v6 = vld [vmem:[#allocation9 + $0x28] sm:$0xff]  ;;  %v5035_v53 = vld [vmem:[#allocation11] sm:$0xff] }
 0x551   :  { %2127 = vmatpush.msra.mxu2 %v4984_v2  ;;  %6181 = vst [vmem:[#allocation50_spill] sm:$0xff] %v5035_v53 }
 0x552   :  { %2002 = vmatpush.msrb.mxu3 %v1828_v54  ;;  %2021 = vmatpush.msrb.mxu0 %v1832_v35 }
 0x554   :  { %2003 = vmatpush.msrb.mxu3 %v1825_v23  ;;  %2022 = vmatpush.msrb.mxu0 %v1829_v43 }
 0x556   :  { %2004 = vmatpush.msrb.mxu3 %v1822_v29  ;;  %2023 = vmatpush.msrb.mxu0 %v1826_v5  ;;  %v5037_v29 = vld [vmem:[#allocation11 + $0x20] sm:$0xff] }
 0x557   :  { %6182 = vst [vmem:[#allocation49_spill] sm:$0xff] %v5037_v29 }
 0x558   :  { %2005 = vmatpush.msrb.mxu3 %v1819_v52  ;;  %2024 = vmatpush.msrb.mxu0 %v1823_v18 }
 0x55a   :  { %2006 = vmatpush.msrb.mxu3 %v1816_v24  ;;  %2025 = vmatpush.msrb.mxu0 %v1820_v6 }
 0x597   :  { %v1555_v49 = vpop.f32.mrf.mxu0  ;;  %v1575_v14 = vpop.f32.mrf.mxu1 }
 0x598   :  { %v1618_v34 = vadd.f32 %v1555_v49, %v6175_v51  ;;  %v1619_v26 = vadd.f32 %v1575_v14, %v290_v25  ;;  %v4987_v49 = vld [vmem:[#allocation11 + $0x60] sm:$0xff] }
 0x599   :  { %v4990_v14 = vld [vmem:[#allocation11 + $0x80] sm:$0xff]  ;;  %2109 = vmatpush.msra.mxu1 %v4987_v49 }
 0x59a   :  { %v3199_v30 = vmul.f32 -1.442695, %v1618_v34  ;;  %v3200_v4 = vmul.f32 -1.442695, %v1619_v26  ;;  %2128 = vmatpush.msra.mxu2 %v4990_v14 }
 0x59c   :  { %3354 = vpow2.f32 %v3199_v30  ;;  %v4996_v30 = vld [vmem:[#allocation11 + $0x48] sm:$0xff]  ;;  %2129 = vmatpush.msra.mxu2 %v5005_v21 }
 0x59d   :  { %3356 = vpow2.f32 %v3200_v4  ;;  %2110 = vmatpush.msra.mxu1 %v4996_v30 }
 0x59e   :  { %v4947_v45 = vpop.f32.mrf.mxu2  ;;  %v1615_v3 = vpop.f32.mrf.mxu3 }
 0x59f   :  { %v1621_v62 = vadd.f32 %v1615_v3, %v6176_v48  ;;  %v1730_v61 = vpop.f32.mrf.mxu0  ;;  %v1620_v42 = vadd.f32 %v4947_v45, %v6177_v40  ;;  %v5013_v45 = vld [vmem:[#allocation11 + $0x30] sm:$0xff] }
 0x5a0   :  { %v1731_v63 = vadd.f32 %v1730_v61, %v1695_v33  ;;  %6178 = vst [vmem:[#allocation21_spill] sm:$0xff] %v5013_v45  ;;  %v5015_v48 = vld [vmem:[#allocation11 + $0x50] sm:$0xff]  ;;  %v1696_v61 = vperm.slane %v4931_v36, 2  ;;  %2111 = vmatpush.msra.mxu1 %v5013_v45  ;;  %v5029_v36 = vld [vmem:[#allocation11 + $0x38] sm:$0xff] }
 0x5a1   :  { %v3201_v12 = vmul.f32 -1.442695, %v1621_v62  ;;  %2130 = vmatpush.msra.mxu2 %v5015_v48  ;;  %6180 = vst [vmem:[#allocation61_spill] sm:$0xff] %v5029_v36 }
 0x5a2   :  { %v3355_v55 = vpop.eup %3354  ;;  %v3209_v11 = vmul.f32 -1.442695, %v1731_v63  ;;  %v5022_v63 = vld [vmem:[#allocation11 + $0x18] sm:$0xff] }
 0x5a3   :  { %v3357_v59 = vpop.eup %3356  ;;  %v4967_v17 = vadd.f32 1.0, %v3355_v55  ;;  %3358 = vpow2.f32 %v3201_v12  ;;  %6179 = vst [vmem:[#allocation48_spill] sm:$0xff] %v5022_v63  ;;  %2112 = vmatpush.msra.mxu1 %v5022_v63  ;;  %2131 = vmatpush.msra.mxu2 %v5029_v36 }
 0x5a4   :  { %v4971_v20 = vadd.f32 1.0, %v3357_v59  ;;  %3360 = vpow2.f32 %v3209_v11  ;;  %v1817_v59 = vld [vmem:[#allocation9 + $0x10] sm:$0xff] }
 0x5a5   :  { %3362 = vrcp.f32 %v4967_v17  ;;  %v1635_v12 = vand.u32 2147483647, %v4967_v17  ;;  %v1637_v11 = vand.u32 2147483648, %v4967_v17  ;;  %vm1631_vm2 = vweird.f32 %v4967_v17  ;;  %2026 = vmatpush.msrb.mxu0 %v1817_v59  ;;  %2113 = vmatpush.msra.mxu1 %v5035_v53 }
 0x5a6   :  { %3364 = vrcp.f32 %v4971_v20  ;;  %v1770_v39 = vpop.f32.mrf.mxu2  ;;  %v1750_v54 = vpop.f32.mrf.mxu3  ;;  %v1656_v55 = vand.u32 2147483648, %v4971_v20  ;;  %v1654_v23 = vand.u32 2147483647, %v4971_v20  ;;  %vm1650_vm3 = vweird.f32 %v4971_v20  ;;  %2132 = vmatpush.msra.mxu2 %v5037_v29 }
 0x5a7   :  { %v1771_v25 = vadd.f32 %v1770_v39, %v1697_v19  ;;  %v1751_v52 = vadd.f32 %v1750_v54, %v1696_v61  ;;  %vm5047_vm4 = vcmp.eq.f32.partialorder %v1635_v12, 8.507059e+37  ;;  %v1638_v5 = vor.u32 1.1754944e-38, %v1637_v11 }
 0x5a8   :  { %v1657_v24 = vor.u32 1.1754944e-38, %v1656_v55  ;;  %vm1655_vm7 = vcmp.eq.f32.partialorder %v1654_v23, 8.507059e+37 }
 0x5a9   :  { %v3359_v41 = vpop.eup %3358  ;;  %v3210_v51 = vmul.f32 -1.442695, %v1771_v25 }
 0x5aa   :  { %v3361_v34 = vpop.eup %3360  ;;  %v4993_v26 = vadd.f32 1.0, %v3359_v41 }
 0x5ab   :  { %v4998_v4 = vpop.eup %3362  ;;  %v5002_v33 = vadd.f32 1.0, %v3361_v34  ;;  %3366 = vpow2.f32 %v3210_v51  ;;  %v5054_v34 = vld [vmem:[#allocation11 + $0x8] sm:$0xff] }
 0x5ac   :  { %v5007_v3 = vpop.eup %3364  ;;  %v1627_v10 = vmul.f32 %v4998_v4, %v4967_v17  ;;  %3368 = vrcp.f32 %v4993_v26  ;;  %vm1632_vm1 = vweird.f32 %v4998_v4  ;;  %6185 = vst [vmem:[#allocation52_spill] sm:$0xff] %v5054_v34  ;;  %2133 = vmatpush.msra.mxu2 %v5054_v34  ;;  %vm1670_vm12 = vweird.f32 %v4993_v26 }
 0x5ad   :  { %v1646_v62 = vmul.f32 %v5007_v3, %v4971_v20  ;;  %3370 = vrcp.f32 %v5002_v33  ;;  %vm1651_vm15 = vweird.f32 %v5007_v3  ;;  %vm1633_vm5 = vmor %vm1631_vm2, %vm1632_vm1  ;;  %v1786_v59 = vand.u32 2147483647, %v5002_v33 }
 0x5ae   :  { %v1628_v15 = vsub.f32 1.0, %v1627_v10  ;;  %3372 = vtanh.f32 %v1620_v42  ;;  %vm1652_vm6 = vmor %vm1650_vm3, %vm1651_vm15  ;;  %vm1782_vm0 = vweird.f32 %v5002_v33 }
 0x5af   :  { %v1647_v46 = vsub.f32 1.0, %v1646_v62  ;;  %vm1787_vm11 = vcmp.eq.f32.partialorder %v1786_v59, 8.507059e+37  ;;  %v5099_v59 = vld [vmem:[#allocation11 + $0x130] sm:$0xff] }
 0x5b0   :  { %v1629_v19 = vmul.f32 %v4998_v4, %v1628_v15 }
 0x5b1   :  { %v3367_v35 = vpop.eup %3366  ;;  %v1648_v39 = vmul.f32 %v5007_v3, %v1647_v46  ;;  %v1788_v46 = vand.u32 2147483648, %v5002_v33 }
 0x5b2   :  { %v5043_v25 = vpop.eup %3368  ;;  %v1630_v43 = vadd.f32 %v4998_v4, %v1629_v19  ;;  %v5051_v51 = vadd.f32 1.0, %v3367_v35 }
 0x5b3   :  { %v3371_v17 = vpop.eup %3370  ;;  %v1649_v20 = vadd.f32 %v5007_v3, %v1648_v39  ;;  %v1666_v40 = vmul.f32 %v5043_v25, %v4993_v26  ;;  %vm1671_vm9 = vweird.f32 %v5043_v25 }
 0x5b4   :  { %v1634_v42 = vsel %vm1633_vm5, %v4998_v4, %v1630_v43  ;;  %v1778_v18 = vmul.f32 %v3371_v17, %v5002_v33  ;;  %3374 = vrcp.f32 %v5051_v51  ;;  %v3373_v10 = vpop.eup %3372  ;;  %vm1783_vm8 = vweird.f32 %v3371_v17  ;;  %vm1672_vm13 = vmor %vm1670_vm12, %vm1671_vm9 }
 0x5b5   :  { %v1639_v62 = vsel %vm5047_vm4, %v1638_v5, %v1634_v42  ;;  %v1653_v61 = vsel %vm1652_vm6, %v5007_v3, %v1649_v20  ;;  %v1667_v6 = vsub.f32 1.0, %v1666_v40  ;;  %3376 = vtanh.f32 %v1751_v52  ;;  %vm1784_vm10 = vmor %vm1782_vm0, %vm1783_vm8 }
 0x5b6   :  { %v1658_v15 = vsel %vm1655_vm7, %v1657_v24, %v1653_v61  ;;  %v1681_v12 = vmul.f32 %v3373_v10, %v1639_v62  ;;  %v1779_v54 = vsub.f32 1.0, %v1778_v18  ;;  %v1789_v52 = vor.u32 1.1754944e-38, %v1788_v46  ;;  %v5089_v46 = vld [vmem:[#allocation11 + $0x160] sm:$0xff] }
 0x5b7   :  { %v1680_v4 = vmul.f32 %v1658_v15, %v4898_v57  ;;  %v1668_v55 = vmul.f32 %v5043_v25, %v1667_v6  ;;  %v1676_v43 = vand.u32 2147483648, %v4993_v26  ;;  %v1674_v24 = vand.u32 2147483647, %v4993_v26 }
 0x5b8   :  { %v1780_v11 = vmul.f32 %v3371_v17, %v1779_v54  ;;  %v1808_v10 = vand.u32 2147483648, %v5051_v51  ;;  %vm1802_vm15 = vweird.f32 %v5051_v51  ;;  %v1806_v26 = vand.u32 2147483647, %v5051_v51 }
 0x5b9   :  { %v1682_v19 = vadd.f32 %v1681_v12, %v1680_v4  ;;  %v1669_v35 = vadd.f32 %v5043_v25, %v1668_v55  ;;  %v1677_v42 = vor.u32 1.1754944e-38, %v1676_v43  ;;  %vm1675_vm1 = vcmp.eq.f32.partialorder %v1674_v24, 8.507059e+37  ;;  %v5145_v43 = vld [vmem:[#allocation11 + $0x70] sm:$0xff]  ;;  %v5157_v24 = vld [vmem:[#allocation11 + $0x40] sm:$0xff] }
 0x5ba   :  { %v3375_v23 = vpop.eup %3374  ;;  %v1781_v3 = vadd.f32 %v3371_v17, %v1780_v11  ;;  %v1809_v12 = vor.u32 1.1754944e-38, %v1808_v10  ;;  %vm1807_vm3 = vcmp.eq.f32.partialorder %v1806_v26, 8.507059e+37  ;;  %v6186_v11 = vmov 0.0   ;;  %6187 = vst [vmem:[#allocation64_spill] sm:$0xff] %v5157_v24 }
 0x5bb   :  { %v3377_v39 = vpop.eup %3376  ;;  %3378 = vtanh.f32 %v1682_v19  ;;  %v1798_v57 = vmul.f32 %v3375_v23, %v5051_v51  ;;  %v1673_v40 = vsel %vm1672_vm13, %v5043_v25, %v1669_v35  ;;  %vm1803_vm14 = vweird.f32 %v3375_v23  ;;  %v5086_v25 = vld [vmem:[#allocation11 + $0x178] sm:$0xff]  ;;  %v5093_v51 = vld [vmem:[#allocation11 + $0x148] sm:$0xff]  ;;  %v5121_v35 = vld [vmem:[#allocation11 + $0xd0] sm:$0xff] }
 0x5bc   :  { %v1785_v41 = vsel %vm1784_vm10, %v3371_v17, %v1781_v3  ;;  %v1678_v17 = vsel %vm1675_vm1, %v1677_v42, %v1673_v40  ;;  %vm1804_vm2 = vmor %vm1802_vm15, %vm1803_vm14  ;;  %v5105_v19 = vld [vmem:[#allocation11 + $0x118] sm:$0xff]  ;;  %v5115_v3 = vld [vmem:[#allocation11 + $0xe8] sm:$0xff] }
 0x5bd   :  { %v1799_v5 = vsub.f32 1.0, %v1798_v57  ;;  %v1790_v33 = vsel %vm1787_vm11, %v1789_v52, %v1785_v41  ;;  %v5133_v57 = vld [vmem:[#allocation11 + $0xa0] sm:$0xff]  ;;  %v5139_v52 = vld [vmem:[#allocation11 + $0x88] sm:$0xff]  ;;  %v5151_v41 = vld [vmem:[#allocation11 + $0x58] sm:$0xff] }
 0x5be   :  { %v1812_v20 = vmul.f32 %v3377_v39, %v1790_v33  ;;  %v5127_v39 = vld [vmem:[#allocation11 + $0xb8] sm:$0xff]  ;;  %v5169_v33 = vld [vmem:[#allocation11 + $0x10] sm:$0xff]  ;;  %v2031_v40 = vld [vmem:[#allocation12] sm:$0x7] }
 0x5bf   :  { %v1800_v18 = vmul.f32 %v3375_v23, %v1799_v5  ;;  %v5163_v5 = vld [vmem:[#allocation11 + $0x28] sm:$0xff]  ;;  %6189 = vst [vmem:[#allocation55_spill] sm:$0xff] %v5169_v33  ;;  %v2090_v42 = vld [vmem:[#allocation14] sm:$0x7]  ;;  %v2033_v10 = vperm.slane %v2031_v40, 0 }
 0x5c0   :  { %3380 = vtanh.f32 %v1812_v20  ;;  %6188 = vst [vmem:[#allocation53_spill] sm:$0xff] %v5163_v5 }
 0x5c1   :  { %v3379_v62 = vpop.eup %3378  ;;  %v1801_v61 = vadd.f32 %v3375_v23, %v1800_v18 }
 0x5c2   :  { %v1684_v6 = vmul.f32 %v3379_v62, %v1678_v17  ;;  %v5265_v17 = vperm.slane %v2090_v42, 0 }
 0x5c3   :  { %v1805_v15 = vsel %vm1804_vm2, %v3375_v23, %v1801_v61  ;;  %v5111_v23 = vld [vmem:[#allocation11 + $0x100] sm:$0xff] }
 0x5c4   :  { %1987 = vmatmul.f32.vlgmr.msrb.gmra.mxu2 %v1684_v6  ;;  %v1810_v4 = vsel %vm1807_vm3, %v1809_v12, %v1805_v15  ;;  %6190 = vst [vmem:[#allocation57_spill] sm:$0xff] %v5265_v17  ;;  %v5270_v12 = vperm.slane %v2090_v42, 1 }
 0x5c5   :  { %2246 = vmatpush.msrb.mxu2 %v5086_v25 }
 0x5c6   :  { %v3381_v54 = vpop.eup %3380  ;;  %6192 = vst [vmem:[#allocation20_spill] sm:$0xff] %v5270_v12 }
 0x5c7   :  { %v1814_v55 = vmul.f32 %v3381_v54, %v1810_v4  ;;  %2247 = vmatpush.msrb.mxu2 %v5089_v46 }
 0x5c9   :  { %1927 = vmatmul.f32.vlgmr.msra.gmra.mxu3 %v1814_v55  ;;  %1947 = vmatmul.f32.vlgmr.msra.gmra.mxu0 %v1814_v55 }
 0x5ca   :  { %1967 = vmatmul.f32.vlgmr.msrb.gmra.mxu1 %v1814_v55  ;;  %2138 = vmatpush.msra.mxu3 %v5086_v25  ;;  %v2034_v55 = vperm.slane %v2031_v40, 1 }
 0x5cb   :  { %2206 = vmatpush.msra.mxu0 %v4907_v58  ;;  %2226 = vmatpush.msrb.mxu1 %v4912_v50 }
 0x5cc   :  { %2139 = vmatpush.msra.mxu3 %v5089_v46  ;;  %2134 = vmatmul.f32.vlgmr.msra.gmra.mxu2 %v6186_v11 }
 0x5cd   :  { %2207 = vmatpush.msra.mxu0 %v4910_v56  ;;  %2227 = vmatpush.msrb.mxu1 %v4919_v47 }
 0x5ce   :  { %2140 = vmatpush.msra.mxu3 %v5093_v51  ;;  %2248 = vmatpush.msrb.mxu2 %v5093_v51 }
 0x5cf   :  { %2208 = vmatpush.msra.mxu0 %v4917_v44  ;;  %2228 = vmatpush.msrb.mxu1 %v4926_v37 }
 0x5d0   :  { %2141 = vmatpush.msra.mxu3 %v5099_v59  ;;  %2249 = vmatpush.msrb.mxu2 %v5099_v59 }
 0x5d1   :  { %2007 = vmatmul.f32.vlgmr.msrb.gmra.mxu3 %v1684_v6  ;;  %2027 = vmatmul.f32.vlgmr.msrb.gmra.mxu0 %v1684_v6 }
 0x5d2   :  { %2114 = vmatmul.f32.vlgmr.msra.gmra.mxu1 %v6186_v11  ;;  %2142 = vmatpush.msra.mxu3 %v5105_v19 }
 0x5d3   :  { %2209 = vmatpush.msra.mxu0 %v4924_v32  ;;  %2229 = vmatpush.msrb.mxu1 %v4938_v38 }
 0x5d4   :  { %2143 = vmatpush.msra.mxu3 %v5111_v23  ;;  %2250 = vmatpush.msrb.mxu2 %v5105_v19 }
 0x5d5   :  { %2210 = vmatpush.msra.mxu0 %v4935_v31  ;;  %2230 = vmatpush.msrb.mxu1 %v4944_v22 }
 0x5d6   :  { %2144 = vmatpush.msra.mxu3 %v5115_v3  ;;  %2251 = vmatpush.msrb.mxu2 %v5111_v23 }
 0x5d7   :  { %2211 = vmatpush.msra.mxu0 %v4942_v60  ;;  %2231 = vmatpush.msrb.mxu1 %v4952_v7 }
 0x5d8   :  { %2145 = vmatpush.msra.mxu3 %v5121_v35  ;;  %2252 = vmatpush.msrb.mxu2 %v5115_v3 }
 0x5d9   :  { %2212 = vmatpush.msra.mxu0 %v4950_v8  ;;  %2232 = vmatpush.msrb.mxu1 %v4959_v1 }
 0x5da   :  { %2146 = vmatpush.msra.mxu3 %v5127_v39  ;;  %2253 = vmatpush.msrb.mxu2 %v5121_v35 }
 0x5db   :  { %2213 = vmatpush.msra.mxu0 %v4957_v27  ;;  %2233 = vmatpush.msrb.mxu1 %v4965_v13 }
 0x5dc   :  { %2147 = vmatpush.msra.mxu3 %v5133_v57  ;;  %2254 = vmatpush.msrb.mxu2 %v5127_v39 }
 0x5dd   :  { %2214 = vmatpush.msra.mxu0 %v4962_v16  ;;  %2234 = vmatpush.msrb.mxu1 %v4978_v28 }
 0x5de   :  { %2148 = vmatpush.msra.mxu3 %v5139_v52  ;;  %2255 = vmatpush.msrb.mxu2 %v5133_v57 }
 0x5df   :  { %2215 = vmatpush.msra.mxu0 %v4974_v9  ;;  %2235 = vmatpush.msrb.mxu1 %v4984_v2 }
 0x5e0   :  { %2149 = vmatpush.msra.mxu3 %v5145_v43  ;;  %2256 = vmatpush.msrb.mxu2 %v5139_v52 }
 0x5e1   :  { %2216 = vmatpush.msra.mxu0 %v4982_v0  ;;  %2236 = vmatpush.msrb.mxu1 %v4990_v14 }
 0x5e2   :  { %2150 = vmatpush.msra.mxu3 %v5151_v41  ;;  %2257 = vmatpush.msrb.mxu2 %v5145_v43 }
 0x5e3   :  { %2217 = vmatpush.msra.mxu0 %v4987_v49  ;;  %2237 = vmatpush.msrb.mxu1 %v5005_v21 }
 0x5e4   :  { %2151 = vmatpush.msra.mxu3 %v5157_v24  ;;  %2258 = vmatpush.msrb.mxu2 %v5151_v41 }
 0x5e5   :  { %2218 = vmatpush.msra.mxu0 %v4996_v30  ;;  %2238 = vmatpush.msrb.mxu1 %v5015_v48 }
 0x5e6   :  { %2152 = vmatpush.msra.mxu3 %v5163_v5  ;;  %2259 = vmatpush.msrb.mxu2 %v5157_v24 }
 0x5e7   :  { %2219 = vmatpush.msra.mxu0 %v5013_v45  ;;  %2239 = vmatpush.msrb.mxu1 %v5029_v36 }
 0x5e8   :  { %2153 = vmatpush.msra.mxu3 %v5169_v33  ;;  %2260 = vmatpush.msrb.mxu2 %v5163_v5 }
 0x5e9   :  { %2154 = vmatmul.f32.vlgmr.msra.gmra.mxu3 %v6186_v11  ;;  %2220 = vmatpush.msra.mxu0 %v5022_v63 }
 0x5ea   :  { %2240 = vmatpush.msrb.mxu1 %v5037_v29  ;;  %2261 = vmatpush.msrb.mxu2 %v5169_v33 }
 0x5eb   :  { %2221 = vmatpush.msra.mxu0 %v5035_v53  ;;  %2315 = vmatpush.msrb.mxu3 %v4907_v58 }
 0x5ec   :  { %2241 = vmatpush.msrb.mxu1 %v5054_v34  ;;  %2424 = vmatpush.msra.mxu2 %v4907_v58 }
 0x5ed   :  { %2335 = vmatpush.msrb.mxu0 %v4912_v50  ;;  %2316 = vmatpush.msrb.mxu3 %v4910_v56 }
 0x5ee   :  { %2355 = vmatpush.msra.mxu1 %v5086_v25  ;;  %2425 = vmatpush.msra.mxu2 %v4910_v56 }
 0x5ef   :  { %2336 = vmatpush.msrb.mxu0 %v4919_v47  ;;  %2317 = vmatpush.msrb.mxu3 %v4917_v44 }
 0x5f0   :  { %2356 = vmatpush.msra.mxu1 %v5089_v46  ;;  %2426 = vmatpush.msra.mxu2 %v4917_v44 }
 0x5f1   :  { %2337 = vmatpush.msrb.mxu0 %v4926_v37  ;;  %2318 = vmatpush.msrb.mxu3 %v4924_v32 }
 0x5f2   :  { %2357 = vmatpush.msra.mxu1 %v5093_v51  ;;  %2427 = vmatpush.msra.mxu2 %v4924_v32 }
 0x5f3   :  { %2338 = vmatpush.msrb.mxu0 %v4938_v38  ;;  %2319 = vmatpush.msrb.mxu3 %v4935_v31 }
 0x5f4   :  { %2358 = vmatpush.msra.mxu1 %v5099_v59  ;;  %2428 = vmatpush.msra.mxu2 %v4935_v31 }
 0x5f5   :  { %2339 = vmatpush.msrb.mxu0 %v4944_v22  ;;  %2320 = vmatpush.msrb.mxu3 %v4942_v60 }
 0x5f6   :  { %2359 = vmatpush.msra.mxu1 %v5105_v19  ;;  %2429 = vmatpush.msra.mxu2 %v4942_v60 }
 0x5f7   :  { %2340 = vmatpush.msrb.mxu0 %v4952_v7  ;;  %2321 = vmatpush.msrb.mxu3 %v4950_v8 }
 0x5f8   :  { %2360 = vmatpush.msra.mxu1 %v5111_v23  ;;  %2430 = vmatpush.msra.mxu2 %v4950_v8 }
 0x5f9   :  { %2341 = vmatpush.msrb.mxu0 %v4959_v1  ;;  %2322 = vmatpush.msrb.mxu3 %v4957_v27 }
 0x5fa   :  { %2361 = vmatpush.msra.mxu1 %v5115_v3  ;;  %2431 = vmatpush.msra.mxu2 %v4957_v27 }
 0x5fb   :  { %2342 = vmatpush.msrb.mxu0 %v4965_v13  ;;  %2323 = vmatpush.msrb.mxu3 %v4962_v16 }
 0x5fc   :  { %2362 = vmatpush.msra.mxu1 %v5121_v35  ;;  %2432 = vmatpush.msra.mxu2 %v4962_v16 }
 0x5fd   :  { %2343 = vmatpush.msrb.mxu0 %v4978_v28  ;;  %2324 = vmatpush.msrb.mxu3 %v4974_v9 }
 0x5fe   :  { %2363 = vmatpush.msra.mxu1 %v5127_v39  ;;  %2433 = vmatpush.msra.mxu2 %v4974_v9 }
 0x5ff   :  { %2344 = vmatpush.msrb.mxu0 %v4984_v2  ;;  %2325 = vmatpush.msrb.mxu3 %v4982_v0 }
 0x600   :  { %2364 = vmatpush.msra.mxu1 %v5133_v57  ;;  %2434 = vmatpush.msra.mxu2 %v4982_v0 }
 0x601   :  { %2345 = vmatpush.msrb.mxu0 %v4990_v14  ;;  %2326 = vmatpush.msrb.mxu3 %v4987_v49 }
 0x602   :  { %2365 = vmatpush.msra.mxu1 %v5139_v52  ;;  %2435 = vmatpush.msra.mxu2 %v4987_v49 }
 0x603   :  { %2346 = vmatpush.msrb.mxu0 %v5005_v21  ;;  %2327 = vmatpush.msrb.mxu3 %v4996_v30 }
 0x604   :  { %2366 = vmatpush.msra.mxu1 %v5145_v43  ;;  %2436 = vmatpush.msra.mxu2 %v4996_v30 }
 0x605   :  { %2347 = vmatpush.msrb.mxu0 %v5015_v48  ;;  %2328 = vmatpush.msrb.mxu3 %v5013_v45 }
 0x606   :  { %2367 = vmatpush.msra.mxu1 %v5151_v41  ;;  %2437 = vmatpush.msra.mxu2 %v5013_v45 }
 0x607   :  { %2348 = vmatpush.msrb.mxu0 %v5029_v36  ;;  %2329 = vmatpush.msrb.mxu3 %v5022_v63 }
 0x608   :  { %2368 = vmatpush.msra.mxu1 %v5157_v24  ;;  %2438 = vmatpush.msra.mxu2 %v5022_v63 }
 0x609   :  { %2349 = vmatpush.msrb.mxu0 %v5037_v29  ;;  %2330 = vmatpush.msrb.mxu3 %v5035_v53 }
 0x60a   :  { %2369 = vmatpush.msra.mxu1 %v5163_v5  ;;  %2439 = vmatpush.msra.mxu2 %v5035_v53 }
 0x60b   :  { %2350 = vmatpush.msrb.mxu0 %v5054_v34  ;;  %2444 = vmatpush.msra.mxu3 %v4912_v50 }
 0x60c   :  { %2370 = vmatpush.msra.mxu1 %v5169_v33 }
 0x60d   :  { %2445 = vmatpush.msra.mxu3 %v4919_v47 }
 0x60f   :  { %2446 = vmatpush.msra.mxu3 %v4926_v37 }
 0x611   :  { %2447 = vmatpush.msra.mxu3 %v4938_v38 }
 0x613   :  { %2448 = vmatpush.msra.mxu3 %v4944_v22 }
 0x615   :  { %2449 = vmatpush.msra.mxu3 %v4952_v7 }
 0x617   :  { %2450 = vmatpush.msra.mxu3 %v4959_v1 }
 0x619   :  { %2451 = vmatpush.msra.mxu3 %v4965_v13 }
 0x61b   :  { %2452 = vmatpush.msra.mxu3 %v4978_v28 }
 0x61d   :  { %2453 = vmatpush.msra.mxu3 %v4984_v2 }
 0x61f   :  { %2454 = vmatpush.msra.mxu3 %v4990_v14 }
 0x621   :  { %2455 = vmatpush.msra.mxu3 %v5005_v21 }
 0x623   :  { %2456 = vmatpush.msra.mxu3 %v5015_v48 }
 0x625   :  { %2457 = vmatpush.msra.mxu3 %v5029_v36 }
 0x627   :  { %2458 = vmatpush.msra.mxu3 %v5037_v29 }
 0x629   :  { %2459 = vmatpush.msra.mxu3 %v5054_v34 }
 0x646   :  { %v1948_v11 = vpop.f32.mrf.mxu0 }
 0x647   :  { %v1968_v20 = vpop.f32.mrf.mxu1  ;;  %v1988_v18 = vpop.f32.mrf.mxu2 }
 0x64c   :  { %v1928_v62 = vpop.f32.mrf.mxu3 }
 0x64d   :  { %v1989_v61 = vadd.f32 %v1988_v18, %v1928_v62 }
 0x64e   :  { %v2028_v5 = vpop.f32.mrf.mxu0 }
 0x64f   :  { %v5267_v26 = vadd.f32 %v2033_v10, %v1989_v61  ;;  %v2115_v6 = vpop.f32.mrf.mxu1  ;;  %v2135_v4 = vpop.f32.mrf.mxu2 }
 0x650   :  { %v2116_v15 = vadd.f32 %v2115_v6, %v5265_v17  ;;  %v2136_v29 = vadd.f32 %v2135_v4, %v5270_v12 }
 0x651   :  { %6191 = vst [vmem:[#allocation67_spill] sm:$0xff] %v5267_v26 }
 0x652   :  { %v2158_v54 = vadd.f32 %v2116_v15, %v5267_v26 }
 0x654   :  { %v3211_v34 = vmul.f32 -1.442695, %v2158_v54  ;;  %v2008_v53 = vpop.f32.mrf.mxu3 }
 0x655   :  { %v2009_v33 = vadd.f32 %v2008_v53, %v1948_v11  ;;  %v5277_v53 = vperm.slane %v2090_v42, 2  ;;  %v2035_v11 = vperm.slane %v2031_v40, 2 }
 0x656   :  { %3382 = vpow2.f32 %v3211_v34 }
 0x657   :  { %v5274_v63 = vadd.f32 %v2034_v55, %v2009_v33 }
 0x659   :  { %6193 = vst [vmem:[#allocation58_spill] sm:$0xff] %v5274_v63  ;;  %v2178_v18 = vadd.f32 %v2136_v29, %v5274_v63  ;;  %v2029_v29 = vadd.f32 %v2028_v5, %v1968_v20 }
 0x65b   :  { %v3212_v10 = vmul.f32 -1.442695, %v2178_v18  ;;  %v5280_v36 = vadd.f32 %v2035_v11, %v2029_v29 }
 0x65c   :  { %v3383_v62 = vpop.eup %3382 }
 0x65d   :  { %v2162_v61 = vadd.f32 1.0, %v3383_v62  ;;  %3384 = vpow2.f32 %v3212_v10 }
 0x65f   :  { %3386 = vrcp.f32 %v2162_v61  ;;  %v2174_v4 = vand.u32 2147483648, %v2162_v61  ;;  %v2172_v33 = vand.u32 2147483647, %v2162_v61  ;;  %vm2168_vm5 = vweird.f32 %v2162_v61 }
 0x661   :  { %v2175_v63 = vor.u32 1.1754944e-38, %v2174_v4  ;;  %vm2173_vm7 = vcmp.eq.f32.partialorder %v2172_v33, 8.507059e+37 }
 0x663   :  { %v3385_v6 = vpop.eup %3384 }
 0x664   :  { %v2182_v15 = vadd.f32 1.0, %v3385_v6 }
 0x665   :  { %v3387_v26 = vpop.eup %3386 }
 0x666   :  { %3388 = vrcp.f32 %v2182_v15  ;;  %v2164_v17 = vmul.f32 %v3387_v26, %v2162_v61  ;;  %vm2169_vm4 = vweird.f32 %v3387_v26  ;;  %v2192_v5 = vand.u32 2147483647, %v2182_v15 }
 0x667   :  { %vm2170_vm6 = vmor %vm2168_vm5, %vm2169_vm4  ;;  %vm2188_vm0 = vweird.f32 %v2182_v15 }
 0x668   :  { %v2165_v54 = vsub.f32 1.0, %v2164_v17  ;;  %vm2193_vm10 = vcmp.eq.f32.partialorder %v2192_v5, 8.507059e+37 }
 0x66a   :  { %v2166_v34 = vmul.f32 %v3387_v26, %v2165_v54  ;;  %v2194_v54 = vand.u32 2147483648, %v2182_v15 }
 0x66c   :  { %v3389_v55 = vpop.eup %3388  ;;  %v2155_v18 = vpop.f32.mrf.mxu3  ;;  %v2167_v62 = vadd.f32 %v3387_v26, %v2166_v34  ;;  %v2195_v61 = vor.u32 1.1754944e-38, %v2194_v54 }
 0x66d   :  { %v2184_v10 = vmul.f32 %v3389_v55, %v2182_v15  ;;  %v2156_v6 = vadd.f32 %v2155_v18, %v5277_v53  ;;  %vm2189_vm8 = vweird.f32 %v3389_v55 }
 0x66e   :  { %v2171_v12 = vsel %vm2170_vm6, %v3387_v26, %v2167_v62  ;;  %vm2190_vm9 = vmor %vm2188_vm0, %vm2189_vm8 }
 0x66f   :  { %v2185_v17 = vsub.f32 1.0, %v2184_v10  ;;  %v2176_v42 = vsel %vm2173_vm7, %v2175_v63, %v2171_v12 }
 0x670   :  { %v2198_v45 = vmul.f32 %v2176_v42, %v2156_v6 }
 0x671   :  { %v2186_v24 = vmul.f32 %v3389_v55, %v2185_v17 }
 0x672   :  { %v2199_v20 = vadd.f32 %v2198_v45, %v5280_v36 }
 0x673   :  { %v2187_v40 = vadd.f32 %v3389_v55, %v2186_v24 }
 0x674   :  { %3390 = vtanh.f32 %v2199_v20 }
 0x675   :  { %v2191_v34 = vsel %vm2190_vm9, %v3389_v55, %v2187_v40 }
 0x676   :  { %v2196_v26 = vsel %vm2193_vm10, %v2195_v61, %v2191_v34 }
 0x677   :  { %v2201_v4 = vsub.f32 1.0, %v2196_v26  ;;  %v2203_v12 = vmul.f32 0.0, %v2196_v26 }
 0x67a   :  { %v3391_v33 = vpop.eup %3390 }
 0x67b   :  { %v2202_v63 = vmul.f32 %v3391_v33, %v2201_v4 }
 0x67d   :  { %v5283_v29 = vadd.f32 %v2203_v12, %v2202_v63 }
 0x67f   :  { %6194 = vst [vmem:[#allocation59_spill] sm:$0xff] %v5283_v29  ;;  %2222 = vmatmul.f32.vlgmr.msra.gmra.mxu0 %v5283_v29  ;;  %2242 = vmatmul.f32.vlgmr.msrb.gmra.mxu1 %v5283_v29 }
 0x680   :  { %2262 = vmatmul.f32.vlgmr.msrb.gmra.mxu2 %v5283_v29  ;;  %2464 = vmatpush.msra.mxu0 %v5086_v25 }
 0x681   :  { %2533 = vmatpush.msrb.mxu1 %v4907_v58  ;;  %2553 = vmatpush.msrb.mxu2 %v4912_v50  ;;  %v6195_v58 = vld [vmem:[#allocation64_spill] sm:$0xff]  ;;  %v6197_v50 = vld [vmem:[#allocation61_spill] sm:$0xff] }
 0x682   :  { %2465 = vmatpush.msra.mxu0 %v5089_v46 }
 0x683   :  { %2534 = vmatpush.msrb.mxu1 %v4910_v56  ;;  %2554 = vmatpush.msrb.mxu2 %v4919_v47  ;;  %v6196_v56 = vld [vmem:[#allocation21_spill] sm:$0xff]  ;;  %v6199_v47 = vld [vmem:[#allocation48_spill] sm:$0xff] }
 0x684   :  { %2466 = vmatpush.msra.mxu0 %v5093_v51 }
 0x685   :  { %2535 = vmatpush.msrb.mxu1 %v4917_v44  ;;  %2555 = vmatpush.msrb.mxu2 %v4926_v37  ;;  %v6198_v44 = vld [vmem:[#allocation53_spill] sm:$0xff]  ;;  %v6201_v37 = vld [vmem:[#allocation55_spill] sm:$0xff] }
 0x686   :  { %2467 = vmatpush.msra.mxu0 %v5099_v59 }
 0x687   :  { %2536 = vmatpush.msrb.mxu1 %v4924_v32  ;;  %2556 = vmatpush.msrb.mxu2 %v4938_v38  ;;  %v6200_v32 = vld [vmem:[#allocation49_spill] sm:$0xff]  ;;  %v6203_v38 = vld [vmem:[#allocation52_spill] sm:$0xff] }
 0x688   :  { %2468 = vmatpush.msra.mxu0 %v5105_v19 }
 0x689   :  { %2537 = vmatpush.msrb.mxu1 %v4935_v31  ;;  %2557 = vmatpush.msrb.mxu2 %v4944_v22  ;;  %v6202_v31 = vld [vmem:[#allocation50_spill] sm:$0xff] }
 0x68a   :  { %2469 = vmatpush.msra.mxu0 %v5111_v23 }
 0x68b   :  { %2538 = vmatpush.msrb.mxu1 %v4942_v60  ;;  %2558 = vmatpush.msrb.mxu2 %v4952_v7 }
 0x68c   :  { %2470 = vmatpush.msra.mxu0 %v5115_v3 }
 0x68d   :  { %2539 = vmatpush.msrb.mxu1 %v4950_v8  ;;  %2559 = vmatpush.msrb.mxu2 %v4959_v1  ;;  %v6204_v8 = vld [vmem:[#allocation57_spill] sm:$0xff] }
 0x68e   :  { %2471 = vmatpush.msra.mxu0 %v5121_v35 }
 0x68f   :  { %2540 = vmatpush.msrb.mxu1 %v4957_v27  ;;  %2560 = vmatpush.msrb.mxu2 %v4965_v13  ;;  %v6205_v27 = vld [vmem:[#allocation20_spill] sm:$0xff] }
 0x690   :  { %2472 = vmatpush.msra.mxu0 %v5127_v39 }
 0x691   :  { %2541 = vmatpush.msrb.mxu1 %v4962_v16  ;;  %2561 = vmatpush.msrb.mxu2 %v4978_v28  ;;  %v6206_v16 = vld [vmem:[#allocation67_spill] sm:$0xff] }
 0x692   :  { %2473 = vmatpush.msra.mxu0 %v5133_v57 }
 0x693   :  { %2542 = vmatpush.msrb.mxu1 %v4974_v9  ;;  %2562 = vmatpush.msrb.mxu2 %v4984_v2  ;;  %v6207_v9 = vld [vmem:[#allocation58_spill] sm:$0xff] }
 0x694   :  { %2474 = vmatpush.msra.mxu0 %v5139_v52 }
 0x695   :  { %2543 = vmatpush.msrb.mxu1 %v4982_v0  ;;  %2563 = vmatpush.msrb.mxu2 %v4990_v14 }
 0x696   :  { %2475 = vmatpush.msra.mxu0 %v5145_v43 }
 0x697   :  { %2544 = vmatpush.msrb.mxu1 %v4987_v49  ;;  %2564 = vmatpush.msrb.mxu2 %v5005_v21 }
 0x698   :  { %2476 = vmatpush.msra.mxu0 %v5151_v41 }
 0x699   :  { %2545 = vmatpush.msrb.mxu1 %v4996_v30  ;;  %2565 = vmatpush.msrb.mxu2 %v5015_v48 }
 0x69a   :  { %2477 = vmatpush.msra.mxu0 %v6195_v58 }
 0x69b   :  { %2546 = vmatpush.msrb.mxu1 %v6196_v56  ;;  %2566 = vmatpush.msrb.mxu2 %v6197_v50 }
 0x69c   :  { %2478 = vmatpush.msra.mxu0 %v6198_v44 }
 0x69d   :  { %2547 = vmatpush.msrb.mxu1 %v6199_v47  ;;  %2567 = vmatpush.msrb.mxu2 %v6200_v32 }
 0x69e   :  { %2479 = vmatpush.msra.mxu0 %v6201_v37 }
 0x69f   :  { %2548 = vmatpush.msrb.mxu1 %v6202_v31  ;;  %2568 = vmatpush.msrb.mxu2 %v6203_v38 }
 0x6fc   :  { %v2223_v60 = vpop.f32.mrf.mxu0  ;;  %v2243_v22 = vpop.f32.mrf.mxu1 }
 0x6fd   :  { %v2224_v7 = vadd.f32 %v2223_v60, %v6204_v8  ;;  %v2244_v1 = vadd.f32 %v2243_v22, %v6205_v27 }
 0x6ff   :  { %v2266_v13 = vadd.f32 %v2224_v7, %v6206_v16  ;;  %v2286_v28 = vadd.f32 %v2244_v1, %v6207_v9 }
 0x701   :  { %v3213_v0 = vmul.f32 -1.442695, %v2266_v13  ;;  %v3214_v2 = vmul.f32 -1.442695, %v2286_v28 }
 0x703   :  { %3392 = vpow2.f32 %v3213_v0  ;;  %v2263_v5 = vpop.f32.mrf.mxu2 }
 0x704   :  { %3394 = vpow2.f32 %v3214_v2  ;;  %v2264_v61 = vadd.f32 %v2263_v5, %v5277_v53  ;;  %v5394_v5 = vld [vmem:[#allocation11 + $0xe0] sm:$0xff] }
 0x709   :  { %v3393_v49 = vpop.eup %3392 }
 0x70a   :  { %v3395_v14 = vpop.eup %3394  ;;  %v2270_v45 = vadd.f32 1.0, %v3393_v49 }
 0x70b   :  { %v2290_v24 = vadd.f32 1.0, %v3395_v14  ;;  %v5349_v14 = vld [vmem:[#allocation11 + $0x168] sm:$0xff] }
 0x70c   :  { %3396 = vrcp.f32 %v2270_v45  ;;  %v2282_v6 = vand.u32 2147483648, %v2270_v45  ;;  %v2280_v42 = vand.u32 2147483647, %v2270_v45  ;;  %vm2276_vm12 = vweird.f32 %v2270_v45 }
 0x70d   :  { %3398 = vrcp.f32 %v2290_v24  ;;  %v2302_v33 = vand.u32 2147483648, %v2290_v24  ;;  %vm2296_vm15 = vweird.f32 %v2290_v24  ;;  %v2300_v12 = vand.u32 2147483647, %v2290_v24 }
 0x70e   :  { %v2283_v40 = vor.u32 1.1754944e-38, %v2282_v6  ;;  %vm2281_vm14 = vcmp.eq.f32.partialorder %v2280_v42, 8.507059e+37  ;;  %v5380_v6 = vld [vmem:[#allocation11 + $0x110] sm:$0xff]  ;;  %v5387_v42 = vld [vmem:[#allocation11 + $0xf8] sm:$0xff] }
 0x70f   :  { %v2303_v7 = vor.u32 1.1754944e-38, %v2302_v33  ;;  %vm2301_vm3 = vcmp.eq.f32.partialorder %v2300_v12, 8.507059e+37  ;;  %v5419_v33 = vld [vmem:[#allocation11 + $0x78] sm:$0xff]  ;;  %v5426_v12 = vld [vmem:[#allocation11 + $0x60] sm:$0xff] }
 0x712   :  { %v3397_v15 = vpop.eup %3396 }
 0x713   :  { %v3399_v55 = vpop.eup %3398  ;;  %v2272_v11 = vmul.f32 %v3397_v15, %v2270_v45  ;;  %vm2277_vm11 = vweird.f32 %v3397_v15  ;;  %v5352_v45 = vld [vmem:[#allocation11 + $0x170] sm:$0xff] }
 0x714   :  { %v2292_v18 = vmul.f32 %v3399_v55, %v2290_v24  ;;  %vm2278_vm13 = vmor %vm2276_vm12, %vm2277_vm11  ;;  %vm2297_vm1 = vweird.f32 %v3399_v55  ;;  %v5356_v24 = vld [vmem:[#allocation11 + $0x150] sm:$0xff] }
 0x715   :  { %v2273_v62 = vsub.f32 1.0, %v2272_v11  ;;  %vm2298_vm2 = vmor %vm2296_vm15, %vm2297_vm1  ;;  %v5366_v11 = vld [vmem:[#allocation11 + $0x140] sm:$0xff] }
 0x716   :  { %v2293_v10 = vsub.f32 1.0, %v2292_v18  ;;  %v5370_v18 = vld [vmem:[#allocation11 + $0x120] sm:$0xff] }
 0x717   :  { %v2274_v17 = vmul.f32 %v3397_v15, %v2273_v62  ;;  %v5373_v62 = vld [vmem:[#allocation11 + $0x128] sm:$0xff] }
 0x718   :  { %v2294_v54 = vmul.f32 %v3399_v55, %v2293_v10  ;;  %v5377_v10 = vld [vmem:[#allocation11 + $0x108] sm:$0xff] }
 0x719   :  { %v2275_v20 = vadd.f32 %v3397_v15, %v2274_v17  ;;  %v5384_v17 = vld [vmem:[#allocation11 + $0xf0] sm:$0xff] }
 0x71a   :  { %v2295_v4 = vadd.f32 %v3399_v55, %v2294_v54  ;;  %v5391_v54 = vld [vmem:[#allocation11 + $0xd8] sm:$0xff] }
 0x71b   :  { %v2279_v34 = vsel %vm2278_vm13, %v3397_v15, %v2275_v20  ;;  %v5359_v15 = vld [vmem:[#allocation11 + $0x158] sm:$0xff]  ;;  %v5398_v20 = vld [vmem:[#allocation11 + $0xc0] sm:$0xff] }
 0x71c   :  { %v2284_v26 = vsel %vm2281_vm14, %v2283_v40, %v2279_v34  ;;  %v2299_v22 = vsel %vm2298_vm2, %v3399_v55, %v2295_v4  ;;  %v5363_v55 = vld [vmem:[#allocation11 + $0x138] sm:$0xff]  ;;  %v5401_v40 = vld [vmem:[#allocation11 + $0xc8] sm:$0xff]  ;;  %v5408_v34 = vld [vmem:[#allocation11 + $0xb0] sm:$0xff] }
 0x71d   :  { %v2306_v63 = vmul.f32 %v2284_v26, %v2264_v61  ;;  %v2304_v1 = vsel %vm2301_vm3, %v2303_v7, %v2299_v22  ;;  %v5405_v61 = vld [vmem:[#allocation11 + $0xa8] sm:$0xff]  ;;  %v5412_v26 = vld [vmem:[#allocation11 + $0x90] sm:$0xff]  ;;  %v5415_v4 = vld [vmem:[#allocation11 + $0x98] sm:$0xff] }
 0x71e   :  { %v2309_v13 = vsub.f32 1.0, %v2304_v1  ;;  %v2311_v2 = vmul.f32 %v2304_v1, %v5283_v29 }
 0x71f   :  { %v2307_v60 = vadd.f32 %v2306_v63, %v5280_v36  ;;  %v5422_v63 = vld [vmem:[#allocation11 + $0x80] sm:$0xff] }
 0x721   :  { %3400 = vtanh.f32 %v2307_v60 }
 0x727   :  { %v3401_v28 = vpop.eup %3400 }
 0x728   :  { %v2310_v0 = vmul.f32 %v3401_v28, %v2309_v13 }
 0x72a   :  { %v5343_v49 = vadd.f32 %v2311_v2, %v2310_v0 }
 0x72c   :  { %2331 = vmatmul.f32.vlgmr.msrb.gmra.mxu3 %v5343_v49  ;;  %2351 = vmatmul.f32.vlgmr.msrb.gmra.mxu0 %v5343_v49 }
 0x72d   :  { %2371 = vmatmul.f32.vlgmr.msra.gmra.mxu1 %v5343_v49  ;;  %2573 = vmatpush.msrb.mxu3 %v5086_v25 }
 0x72e   :  { %2642 = vmatpush.msrb.mxu0 %v5349_v14  ;;  %2662 = vmatpush.msra.mxu1 %v5352_v45 }
 0x72f   :  { %2574 = vmatpush.msrb.mxu3 %v5089_v46 }
 0x730   :  { %2643 = vmatpush.msrb.mxu0 %v5356_v24  ;;  %2663 = vmatpush.msra.mxu1 %v5359_v15 }
 0x731   :  { %2575 = vmatpush.msrb.mxu3 %v5093_v51 }
 0x732   :  { %2644 = vmatpush.msrb.mxu0 %v5363_v55  ;;  %2664 = vmatpush.msra.mxu1 %v5366_v11 }
 0x733   :  { %2576 = vmatpush.msrb.mxu3 %v5099_v59 }
 0x734   :  { %2645 = vmatpush.msrb.mxu0 %v5370_v18  ;;  %2665 = vmatpush.msra.mxu1 %v5373_v62 }
 0x735   :  { %2577 = vmatpush.msrb.mxu3 %v5105_v19 }
 0x736   :  { %2646 = vmatpush.msrb.mxu0 %v5377_v10  ;;  %2666 = vmatpush.msra.mxu1 %v5380_v6 }
 0x737   :  { %2578 = vmatpush.msrb.mxu3 %v5111_v23 }
 0x738   :  { %2647 = vmatpush.msrb.mxu0 %v5384_v17  ;;  %2667 = vmatpush.msra.mxu1 %v5387_v42 }
 0x739   :  { %2579 = vmatpush.msrb.mxu3 %v5115_v3 }
 0x73a   :  { %2648 = vmatpush.msrb.mxu0 %v5391_v54  ;;  %2668 = vmatpush.msra.mxu1 %v5394_v5 }
 0x73b   :  { %2580 = vmatpush.msrb.mxu3 %v5121_v35 }
 0x73c   :  { %2649 = vmatpush.msrb.mxu0 %v5398_v20  ;;  %2669 = vmatpush.msra.mxu1 %v5401_v40 }
 0x73d   :  { %2581 = vmatpush.msrb.mxu3 %v5127_v39 }
 0x73e   :  { %2650 = vmatpush.msrb.mxu0 %v5405_v61  ;;  %2670 = vmatpush.msra.mxu1 %v5408_v34 }
 0x73f   :  { %2582 = vmatpush.msrb.mxu3 %v5133_v57 }
 0x740   :  { %2651 = vmatpush.msrb.mxu0 %v5412_v26  ;;  %2671 = vmatpush.msra.mxu1 %v5415_v4 }
 0x741   :  { %2583 = vmatpush.msrb.mxu3 %v5139_v52 }
 0x742   :  { %2652 = vmatpush.msrb.mxu0 %v5419_v33  ;;  %2672 = vmatpush.msra.mxu1 %v5422_v63 }
 0x743   :  { %2584 = vmatpush.msrb.mxu3 %v5145_v43 }
 0x744   :  { %2653 = vmatpush.msrb.mxu0 %v5426_v12  ;;  %2673 = vmatpush.msra.mxu1 %v5005_v21 }
 0x745   :  { %2585 = vmatpush.msrb.mxu3 %v5151_v41 }
 0x746   :  { %2654 = vmatpush.msrb.mxu0 %v4996_v30  ;;  %2674 = vmatpush.msra.mxu1 %v5015_v48 }
 0x747   :  { %2586 = vmatpush.msrb.mxu3 %v6195_v58 }
 0x748   :  { %2655 = vmatpush.msrb.mxu0 %v6196_v56  ;;  %2675 = vmatpush.msra.mxu1 %v6197_v50 }
 0x749   :  { %2587 = vmatpush.msrb.mxu3 %v6198_v44 }
 0x74a   :  { %2656 = vmatpush.msrb.mxu0 %v6199_v47  ;;  %2676 = vmatpush.msra.mxu1 %v6200_v32 }
 0x74b   :  { %2588 = vmatpush.msrb.mxu3 %v6201_v37 }
 0x74c   :  { %2657 = vmatpush.msrb.mxu0 %v6202_v31  ;;  %2677 = vmatpush.msra.mxu1 %v6203_v38 }
 0x7a9   :  { %v2352_v30 = vpop.f32.mrf.mxu0 }
 0x7aa   :  { %v2353_v21 = vadd.f32 %v2352_v30, %v6205_v27 }
 0x7ac   :  { %v2395_v48 = vadd.f32 %v2353_v21, %v6207_v9 }
 0x7ae   :  { %v3216_v56 = vmul.f32 -1.442695, %v2395_v48 }
 0x7af   :  { %v2332_v60 = vpop.f32.mrf.mxu3 }
 0x7b0   :  { %3402 = vpow2.f32 %v3216_v56  ;;  %v2333_v50 = vadd.f32 %v2332_v60, %v6204_v8 }
 0x7b2   :  { %v2375_v47 = vadd.f32 %v2333_v50, %v6206_v16  ;;  %v2372_v50 = vpop.f32.mrf.mxu1 }
 0x7b4   :  { %v3215_v22 = vmul.f32 -1.442695, %v2375_v47 }
 0x7b6   :  { %v3403_v32 = vpop.eup %3402  ;;  %3404 = vpow2.f32 %v3215_v22 }
 0x7b7   :  { %v2399_v7 = vadd.f32 1.0, %v3403_v32  ;;  %v2373_v32 = vadd.f32 %v2372_v50, %v5277_v53 }
 0x7b9   :  { %3406 = vrcp.f32 %v2399_v7  ;;  %v2411_v16 = vand.u32 2147483648, %v2399_v7  ;;  %vm2405_vm0 = vweird.f32 %v2399_v7 }
 0x7bb   :  { %v2412_v27 = vor.u32 1.1754944e-38, %v2411_v16 }
 0x7bc   :  { %v3405_v31 = vpop.eup %3404 }
 0x7bd   :  { %v2379_v1 = vadd.f32 1.0, %v3405_v31 }
 0x7bf   :  { %3408 = vrcp.f32 %v2379_v1  ;;  %v3407_v38 = vpop.eup %3406  ;;  %v2391_v21 = vand.u32 2147483648, %v2379_v1  ;;  %v2389_v56 = vand.u32 2147483647, %v2379_v1  ;;  %vm2385_vm5 = vweird.f32 %v2379_v1 }
 0x7c0   :  { %v2401_v13 = vmul.f32 %v3407_v38, %v2399_v7  ;;  %vm2406_vm8 = vweird.f32 %v3407_v38 }
 0x7c1   :  { %v2392_v22 = vor.u32 1.1754944e-38, %v2391_v21  ;;  %vm2390_vm7 = vcmp.eq.f32.partialorder %v2389_v56, 8.507059e+37  ;;  %vm2407_vm9 = vmor %vm2405_vm0, %vm2406_vm8 }
 0x7c2   :  { %v2402_v2 = vsub.f32 1.0, %v2401_v13 }
 0x7c4   :  { %v2403_v60 = vmul.f32 %v3407_v38, %v2402_v2 }
 0x7c5   :  { %v3409_v28 = vpop.eup %3408 }
 0x7c6   :  { %v2381_v0 = vmul.f32 %v3409_v28, %v2379_v1  ;;  %vm2386_vm4 = vweird.f32 %v3409_v28  ;;  %v2404_v9 = vadd.f32 %v3407_v38, %v2403_v60 }
 0x7c7   :  { %vm2387_vm6 = vmor %vm2385_vm5, %vm2386_vm4 }
 0x7c8   :  { %v2382_v30 = vsub.f32 1.0, %v2381_v0  ;;  %v2409_v0 = vand.u32 2147483647, %v2399_v7  ;;  %v2408_v2 = vsel %vm2407_vm9, %v3407_v38, %v2404_v9 }
 0x7ca   :  { %v2383_v48 = vmul.f32 %v3409_v28, %v2382_v30  ;;  %vm2410_vm10 = vcmp.eq.f32.partialorder %v2409_v0, 8.507059e+37 }
 0x7cb   :  { %v2413_v1 = vsel %vm2410_vm10, %v2412_v27, %v2408_v2  ;;  %v6210_v27 = vld [vmem:[#allocation58_spill] sm:$0xff] }
 0x7cc   :  { %v2384_v47 = vadd.f32 %v3409_v28, %v2383_v48  ;;  %v2418_v21 = vsub.f32 1.0, %v2413_v1 }
 0x7ce   :  { %v2388_v31 = vsel %vm2387_vm6, %v3409_v28, %v2384_v47  ;;  %v2420_v28 = vmul.f32 %v2413_v1, %v5343_v49 }
 0x7cf   :  { %v2393_v29 = vsel %vm2390_vm7, %v2392_v22, %v2388_v31 }
 0x7d0   :  { %v2415_v13 = vmul.f32 %v2393_v29, %v2373_v32 }
 0x7d2   :  { %v2416_v30 = vadd.f32 %v2415_v13, %v5280_v36 }
 0x7d4   :  { %3410 = vtanh.f32 %v2416_v30 }
 0x7da   :  { %v3411_v48 = vpop.eup %3410 }
 0x7db   :  { %v2419_v50 = vmul.f32 %v3411_v48, %v2418_v21 }
 0x7dd   :  { %v5449_v56 = vadd.f32 %v2420_v28, %v2419_v50 }
 0x7df   :  { %2440 = vmatmul.f32.vlgmr.msra.gmra.mxu2 %v5449_v56  ;;  %2460 = vmatmul.f32.vlgmr.msra.gmra.mxu3 %v5449_v56 }
 0x7e0   :  { %2480 = vmatmul.f32.vlgmr.msra.gmra.mxu0 %v5449_v56  ;;  %2682 = vmatpush.msra.mxu2 %v5086_v25  ;;  %v5489_v25 = vld [vmem:[#allocation11 + $0x68] sm:$0xff] }
 0x7e1   :  { %2751 = vmatpush.msra.mxu3 %v5349_v14  ;;  %2771 = vmatpush.msra.mxu0 %v5352_v45 }
 0x7e2   :  { %2683 = vmatpush.msra.mxu2 %v5089_v46  ;;  %v5493_v46 = vld [vmem:[#allocation11 + $0x48] sm:$0xff] }
 0x7e3   :  { %2752 = vmatpush.msra.mxu3 %v5356_v24  ;;  %2772 = vmatpush.msra.mxu0 %v5359_v15 }
 0x7e4   :  { %2684 = vmatpush.msra.mxu2 %v5093_v51  ;;  %v5496_v51 = vld [vmem:[#allocation11 + $0x50] sm:$0xff] }
 0x7e5   :  { %2753 = vmatpush.msra.mxu3 %v5363_v55  ;;  %2773 = vmatpush.msra.mxu0 %v5366_v11 }
 0x7e6   :  { %2685 = vmatpush.msra.mxu2 %v5099_v59  ;;  %v5500_v59 = vld [vmem:[#allocation11 + $0x30] sm:$0xff] }
 0x7e7   :  { %2754 = vmatpush.msra.mxu3 %v5370_v18  ;;  %2774 = vmatpush.msra.mxu0 %v5373_v62 }
 0x7e8   :  { %2686 = vmatpush.msra.mxu2 %v5105_v19  ;;  %v5503_v19 = vld [vmem:[#allocation11 + $0x38] sm:$0xff] }
 0x7e9   :  { %2755 = vmatpush.msra.mxu3 %v5377_v10  ;;  %2775 = vmatpush.msra.mxu0 %v5380_v6 }
 0x7ea   :  { %2687 = vmatpush.msra.mxu2 %v5111_v23  ;;  %v5507_v23 = vld [vmem:[#allocation11 + $0x18] sm:$0xff] }
 0x7eb   :  { %2756 = vmatpush.msra.mxu3 %v5384_v17  ;;  %2776 = vmatpush.msra.mxu0 %v5387_v42 }
 0x7ec   :  { %2688 = vmatpush.msra.mxu2 %v5115_v3  ;;  %v5510_v3 = vld [vmem:[#allocation11 + $0x20] sm:$0xff] }
 0x7ed   :  { %2757 = vmatpush.msra.mxu3 %v5391_v54  ;;  %2777 = vmatpush.msra.mxu0 %v5394_v5 }
 0x7ee   :  { %2689 = vmatpush.msra.mxu2 %v5121_v35  ;;  %v5514_v35 = vld [vmem:[#allocation11] sm:$0xff] }
 0x7ef   :  { %2758 = vmatpush.msra.mxu3 %v5398_v20  ;;  %2778 = vmatpush.msra.mxu0 %v5401_v40 }
 0x7f0   :  { %2690 = vmatpush.msra.mxu2 %v5127_v39  ;;  %v5517_v39 = vld [vmem:[#allocation11 + $0x8] sm:$0xff] }
 0x7f1   :  { %2759 = vmatpush.msra.mxu3 %v5405_v61  ;;  %2779 = vmatpush.msra.mxu0 %v5408_v34 }
 0x7f2   :  { %2691 = vmatpush.msra.mxu2 %v5133_v57 }
 0x7f3   :  { %2760 = vmatpush.msra.mxu3 %v5412_v26  ;;  %2780 = vmatpush.msra.mxu0 %v5415_v4 }
 0x7f4   :  { %2692 = vmatpush.msra.mxu2 %v5139_v52 }
 0x7f5   :  { %2761 = vmatpush.msra.mxu3 %v5419_v33  ;;  %2781 = vmatpush.msra.mxu0 %v5422_v63 }
 0x7f6   :  { %2693 = vmatpush.msra.mxu2 %v5145_v43 }
 0x7f7   :  { %2762 = vmatpush.msra.mxu3 %v5426_v12  ;;  %2782 = vmatpush.msra.mxu0 %v5489_v25 }
 0x7f8   :  { %2694 = vmatpush.msra.mxu2 %v5151_v41  ;;  %v6208_v41 = vld [vmem:[#allocation20_spill] sm:$0xff] }
 0x7f9   :  { %2763 = vmatpush.msra.mxu3 %v5493_v46  ;;  %2783 = vmatpush.msra.mxu0 %v5496_v51 }
 0x7fa   :  { %2695 = vmatpush.msra.mxu2 %v6195_v58  ;;  %v6209_v58 = vld [vmem:[#allocation67_spill] sm:$0xff] }
 0x7fb   :  { %2764 = vmatpush.msra.mxu3 %v5500_v59  ;;  %2784 = vmatpush.msra.mxu0 %v5503_v19 }
 0x7fc   :  { %2696 = vmatpush.msra.mxu2 %v6198_v44 }
 0x7fd   :  { %2765 = vmatpush.msra.mxu3 %v5507_v23  ;;  %2785 = vmatpush.msra.mxu0 %v5510_v3 }
 0x7fe   :  { %2697 = vmatpush.msra.mxu2 %v6201_v37 }
 0x7ff   :  { %2766 = vmatpush.msra.mxu3 %v5514_v35  ;;  %2786 = vmatpush.msra.mxu0 %v5517_v39 }
 0x85d   :  { %v2481_v48 = vpop.f32.mrf.mxu0 }
 0x862   :  { %v2441_v57 = vpop.f32.mrf.mxu2  ;;  %v2461_v52 = vpop.f32.mrf.mxu3 }
 0x863   :  { %v2442_v43 = vadd.f32 %v2441_v57, %v6204_v8  ;;  %v2462_v29 = vadd.f32 %v2461_v52, %v6208_v41  ;;  %v2482_v52 = vadd.f32 %v2481_v48, %v5277_v53 }
 0x865   :  { %v2484_v44 = vadd.f32 %v2442_v43, %v6209_v58  ;;  %v2504_v16 = vadd.f32 %v2462_v29, %v6210_v27 }
 0x867   :  { %v3217_v9 = vmul.f32 -1.442695, %v2484_v44  ;;  %v3218_v37 = vmul.f32 -1.442695, %v2504_v16 }
 0x869   :  { %3412 = vpow2.f32 %v3217_v9 }
 0x86a   :  { %3414 = vpow2.f32 %v3218_v37 }
 0x86f   :  { %v3413_v7 = vpop.eup %3412 }
 0x870   :  { %v3415_v38 = vpop.eup %3414  ;;  %v2488_v60 = vadd.f32 1.0, %v3413_v7 }
 0x871   :  { %v2508_v47 = vadd.f32 1.0, %v3415_v38 }
 0x872   :  { %3416 = vrcp.f32 %v2488_v60  ;;  %v2500_v30 = vand.u32 2147483648, %v2488_v60  ;;  %v2498_v21 = vand.u32 2147483647, %v2488_v60  ;;  %vm2494_vm12 = vweird.f32 %v2488_v60 }
 0x873   :  { %3418 = vrcp.f32 %v2508_v47  ;;  %v2520_v9 = vand.u32 2147483648, %v2508_v47  ;;  %vm2514_vm15 = vweird.f32 %v2508_v47  ;;  %v2518_v37 = vand.u32 2147483647, %v2508_v47 }
 0x874   :  { %v2501_v57 = vor.u32 1.1754944e-38, %v2500_v30  ;;  %vm2499_vm14 = vcmp.eq.f32.partialorder %v2498_v21, 8.507059e+37  ;;  %v5547_v21 = vld [vmem:[#allocation11 + $0x130] sm:$0xff] }
 0x875   :  { %vm2519_vm3 = vcmp.eq.f32.partialorder %v2518_v37, 8.507059e+37 }
 0x878   :  { %v3417_v22 = vpop.eup %3416 }
 0x879   :  { %v3419_v32 = vpop.eup %3418  ;;  %v2490_v31 = vmul.f32 %v3417_v22, %v2488_v60  ;;  %vm2495_vm11 = vweird.f32 %v3417_v22 }
 0x87a   :  { %v2510_v13 = vmul.f32 %v3419_v32, %v2508_v47  ;;  %vm2496_vm13 = vmor %vm2494_vm12, %vm2495_vm11  ;;  %vm2515_vm1 = vweird.f32 %v3419_v32  ;;  %v5532_v47 = vld [vmem:[#allocation11 + $0x178] sm:$0xff] }
 0x87b   :  { %v2491_v0 = vsub.f32 1.0, %v2490_v31  ;;  %vm2516_vm2 = vmor %vm2514_vm15, %vm2515_vm1  ;;  %v2521_v31 = vor.u32 1.1754944e-38, %v2520_v9 }
 0x87c   :  { %v2511_v2 = vsub.f32 1.0, %v2510_v13 }
 0x87d   :  { %v2492_v1 = vmul.f32 %v3417_v22, %v2491_v0 }
 0x87e   :  { %v2512_v50 = vmul.f32 %v3419_v32, %v2511_v2 }
 0x87f   :  { %v2493_v28 = vadd.f32 %v3417_v22, %v2492_v1  ;;  %v5542_v1 = vld [vmem:[#allocation11 + $0x148] sm:$0xff] }
 0x880   :  { %v2513_v44 = vadd.f32 %v3419_v32, %v2512_v50 }
 0x881   :  { %v2497_v43 = vsel %vm2496_vm13, %v3417_v22, %v2493_v28 }
 0x882   :  { %v2502_v29 = vsel %vm2499_vm14, %v2501_v57, %v2497_v43  ;;  %v2517_v38 = vsel %vm2516_vm2, %v3419_v32, %v2513_v44  ;;  %v5537_v32 = vld [vmem:[#allocation11 + $0x160] sm:$0xff] }
 0x883   :  { %v2524_v16 = vmul.f32 %v2502_v29, %v2482_v52  ;;  %v2522_v60 = vsel %vm2519_vm3, %v2521_v31, %v2517_v38 }
 0x884   :  { %v2527_v13 = vsub.f32 1.0, %v2522_v60  ;;  %v2529_v22 = vmul.f32 %v2522_v60, %v5449_v56 }
 0x885   :  { %v2525_v7 = vadd.f32 %v2524_v16, %v5280_v36 }
 0x887   :  { %3420 = vtanh.f32 %v2525_v7 }
 0x88d   :  { %v3421_v0 = vpop.eup %3420 }
 0x88e   :  { %v2528_v30 = vmul.f32 %v3421_v0, %v2527_v13 }
 0x890   :  { %v5527_v2 = vadd.f32 %v2529_v22, %v2528_v30 }
 0x892   :  { %2549 = vmatmul.f32.vlgmr.msrb.gmra.mxu1 %v5527_v2  ;;  %2569 = vmatmul.f32.vlgmr.msrb.gmra.mxu2 %v5527_v2 }
 0x893   :  { %2589 = vmatmul.f32.vlgmr.msrb.gmra.mxu3 %v5527_v2  ;;  %2791 = vmatpush.msrb.mxu1 %v5532_v47 }
 0x894   :  { %2860 = vmatpush.msrb.mxu2 %v5349_v14  ;;  %2880 = vmatpush.msrb.mxu3 %v5352_v45  ;;  %v5552_v14 = vld [vmem:[#allocation11 + $0x118] sm:$0xff]  ;;  %v5557_v45 = vld [vmem:[#allocation11 + $0x100] sm:$0xff] }
 0x895   :  { %2792 = vmatpush.msrb.mxu1 %v5537_v32 }
 0x896   :  { %2861 = vmatpush.msrb.mxu2 %v5356_v24  ;;  %2881 = vmatpush.msrb.mxu3 %v5359_v15  ;;  %v5562_v24 = vld [vmem:[#allocation11 + $0xe8] sm:$0xff]  ;;  %v5567_v15 = vld [vmem:[#allocation11 + $0xd0] sm:$0xff] }
 0x897   :  { %2793 = vmatpush.msrb.mxu1 %v5542_v1 }
 0x898   :  { %2862 = vmatpush.msrb.mxu2 %v5363_v55  ;;  %2882 = vmatpush.msrb.mxu3 %v5366_v11  ;;  %v5572_v55 = vld [vmem:[#allocation11 + $0xb8] sm:$0xff]  ;;  %v5577_v11 = vld [vmem:[#allocation11 + $0xa0] sm:$0xff] }
 0x899   :  { %2794 = vmatpush.msrb.mxu1 %v5547_v21 }
 0x89a   :  { %2863 = vmatpush.msrb.mxu2 %v5370_v18  ;;  %2883 = vmatpush.msrb.mxu3 %v5373_v62  ;;  %v5582_v18 = vld [vmem:[#allocation11 + $0x88] sm:$0xff]  ;;  %v5587_v62 = vld [vmem:[#allocation11 + $0x70] sm:$0xff] }
 0x89b   :  { %2795 = vmatpush.msrb.mxu1 %v5552_v14 }
 0x89c   :  { %2864 = vmatpush.msrb.mxu2 %v5377_v10  ;;  %2884 = vmatpush.msrb.mxu3 %v5380_v6  ;;  %v5592_v10 = vld [vmem:[#allocation11 + $0x58] sm:$0xff]  ;;  %v5597_v6 = vld [vmem:[#allocation11 + $0x40] sm:$0xff] }
 0x89d   :  { %2796 = vmatpush.msrb.mxu1 %v5557_v45 }
 0x89e   :  { %2865 = vmatpush.msrb.mxu2 %v5384_v17  ;;  %2885 = vmatpush.msrb.mxu3 %v5387_v42  ;;  %v5602_v17 = vld [vmem:[#allocation11 + $0x28] sm:$0xff]  ;;  %v5607_v42 = vld [vmem:[#allocation11 + $0x10] sm:$0xff] }
 0x89f   :  { %2797 = vmatpush.msrb.mxu1 %v5562_v24 }
 0x8a0   :  { %2866 = vmatpush.msrb.mxu2 %v5391_v54  ;;  %2886 = vmatpush.msrb.mxu3 %v5394_v5 }
 0x8a1   :  { %2798 = vmatpush.msrb.mxu1 %v5567_v15 }
 0x8a2   :  { %2867 = vmatpush.msrb.mxu2 %v5398_v20  ;;  %2887 = vmatpush.msrb.mxu3 %v5401_v40 }
 0x8a3   :  { %2799 = vmatpush.msrb.mxu1 %v5572_v55 }
 0x8a4   :  { %2868 = vmatpush.msrb.mxu2 %v5405_v61  ;;  %2888 = vmatpush.msrb.mxu3 %v5408_v34 }
 0x8a5   :  { %2800 = vmatpush.msrb.mxu1 %v5577_v11 }
 0x8a6   :  { %2869 = vmatpush.msrb.mxu2 %v5412_v26  ;;  %2889 = vmatpush.msrb.mxu3 %v5415_v4 }
 0x8a7   :  { %2801 = vmatpush.msrb.mxu1 %v5582_v18 }
 0x8a8   :  { %2870 = vmatpush.msrb.mxu2 %v5419_v33  ;;  %2890 = vmatpush.msrb.mxu3 %v5422_v63 }
 0x8a9   :  { %2802 = vmatpush.msrb.mxu1 %v5587_v62 }
 0x8aa   :  { %2871 = vmatpush.msrb.mxu2 %v5426_v12  ;;  %2891 = vmatpush.msrb.mxu3 %v5489_v25 }
 0x8ab   :  { %2803 = vmatpush.msrb.mxu1 %v5592_v10 }
 0x8ac   :  { %2872 = vmatpush.msrb.mxu2 %v5493_v46  ;;  %2892 = vmatpush.msrb.mxu3 %v5496_v51 }
 0x8ad   :  { %2804 = vmatpush.msrb.mxu1 %v5597_v6 }
 0x8ae   :  { %2873 = vmatpush.msrb.mxu2 %v5500_v59  ;;  %2893 = vmatpush.msrb.mxu3 %v5503_v19 }
 0x8af   :  { %2805 = vmatpush.msrb.mxu1 %v5602_v17 }
 0x8b0   :  { %2874 = vmatpush.msrb.mxu2 %v5507_v23  ;;  %2894 = vmatpush.msrb.mxu3 %v5510_v3 }
 0x8b1   :  { %2806 = vmatpush.msrb.mxu1 %v5607_v42 }
 0x8b2   :  { %2875 = vmatpush.msrb.mxu2 %v5514_v35  ;;  %2895 = vmatpush.msrb.mxu3 %v5517_v39 }
 0x90f   :  { %v2550_v54 = vpop.f32.mrf.mxu1 }
 0x910   :  { %v2551_v5 = vadd.f32 %v2550_v54, %v6204_v8 }
 0x912   :  { %v2593_v20 = vadd.f32 %v2551_v5, %v6209_v58 }
 0x914   :  { %v3219_v40 = vmul.f32 -1.442695, %v2593_v20  ;;  %v2984_v20 = vld [vmem:[%s5832_s10 + $0x38] sm:$0xff] }
 0x915   :  { %v2570_v61 = vpop.f32.mrf.mxu2 }
 0x916   :  { %3422 = vpow2.f32 %v3219_v40  ;;  %v2571_v34 = vadd.f32 %v2570_v61, %v6208_v41  ;;  %v2590_v39 = vpop.f32.mrf.mxu3  ;;  %v2983_v40 = vld [vmem:[%s5832_s10 + $0x30] sm:$0xff] }
 0x917   :  { %v2591_v52 = vadd.f32 %v2590_v39, %v5277_v53 }
 0x918   :  { %v2613_v26 = vadd.f32 %v2571_v34, %v6210_v27  ;;  %v2982_v34 = vld [vmem:[%s5832_s10 + $0x28] sm:$0xff] }
 0x91a   :  { %v3220_v4 = vmul.f32 -1.442695, %v2613_v26 }
 0x91c   :  { %v3423_v33 = vpop.eup %3422  ;;  %3424 = vpow2.f32 %v3220_v4 }
 0x91d   :  { %v2597_v63 = vadd.f32 1.0, %v3423_v33 }
 0x91f   :  { %3426 = vrcp.f32 %v2597_v63  ;;  %v2609_v19 = vand.u32 2147483648, %v2597_v63  ;;  %v2607_v3 = vand.u32 2147483647, %v2597_v63  ;;  %vm2603_vm5 = vweird.f32 %v2597_v63 }
 0x921   :  { %v2610_v28 = vor.u32 1.1754944e-38, %v2609_v19  ;;  %vm2608_vm7 = vcmp.eq.f32.partialorder %v2607_v3, 8.507059e+37 }
 0x922   :  { %v3425_v12 = vpop.eup %3424 }
 0x923   :  { %v2617_v25 = vadd.f32 1.0, %v3425_v12  ;;  %v2980_v12 = vld [vmem:[%s5832_s10 + $0x18] sm:$0xff] }
 0x925   :  { %v3427_v46 = vpop.eup %3426  ;;  %3428 = vrcp.f32 %v2617_v25  ;;  %v2629_v16 = vand.u32 2147483648, %v2617_v25  ;;  %v2627_v37 = vand.u32 2147483647, %v2617_v25  ;;  %vm2623_vm0 = vweird.f32 %v2617_v25 }
 0x926   :  { %v2599_v51 = vmul.f32 %v3427_v46, %v2597_v63  ;;  %vm2604_vm4 = vweird.f32 %v3427_v46  ;;  %v2981_v63 = vld [vmem:[%s5832_s10 + $0x20] sm:$0xff] }
 0x927   :  { %vm2605_vm6 = vmor %vm2603_vm5, %vm2604_vm4  ;;  %v2630_v31 = vor.u32 1.1754944e-38, %v2629_v16  ;;  %vm2628_vm10 = vcmp.eq.f32.partialorder %v2627_v37, 8.507059e+37 }
 0x928   :  { %v2600_v59 = vsub.f32 1.0, %v2599_v51 }
 0x92a   :  { %v2601_v23 = vmul.f32 %v3427_v46, %v2600_v59 }
 0x92b   :  { %v3429_v35 = vpop.eup %3428 }
 0x92c   :  { %v2619_v48 = vmul.f32 %v3429_v35, %v2617_v25  ;;  %v2602_v50 = vadd.f32 %v3427_v46, %v2601_v23  ;;  %vm2624_vm8 = vweird.f32 %v3429_v35  ;;  %v2979_v25 = vld [vmem:[%s5832_s10 + $0x10] sm:$0xff]  ;;  %v2977_v23 = vld [vmem:[%s5832_s10] sm:$0xff] }
 0x92d   :  { %vm2625_vm9 = vmor %vm2623_vm0, %vm2624_vm8 }
 0x92e   :  { %v2620_v57 = vsub.f32 1.0, %v2619_v48  ;;  %v2606_v43 = vsel %vm2605_vm6, %v3427_v46, %v2602_v50  ;;  %v2978_v46 = vld [vmem:[%s5832_s10 + $0x8] sm:$0xff] }
 0x92f   :  { %v2611_v29 = vsel %vm2608_vm7, %v2610_v28, %v2606_v43 }
 0x930   :  { %v2621_v44 = vmul.f32 %v3429_v35, %v2620_v57  ;;  %v2633_v9 = vmul.f32 %v2611_v29, %v2591_v52 }
 0x932   :  { %v2622_v7 = vadd.f32 %v3429_v35, %v2621_v44  ;;  %v2634_v38 = vadd.f32 %v2633_v9, %v5280_v36 }
 0x934   :  { %v2626_v60 = vsel %vm2625_vm9, %v3429_v35, %v2622_v7  ;;  %3430 = vtanh.f32 %v2634_v38 }
 0x935   :  { %v2631_v13 = vsel %vm2628_vm10, %v2630_v31, %v2626_v60 }
 0x936   :  { %v2636_v0 = vsub.f32 1.0, %v2631_v13  ;;  %v2638_v54 = vmul.f32 %v2631_v13, %v5527_v2 }
 0x93a   :  { %v3431_v30 = vpop.eup %3430 }
 0x93b   :  { %v2637_v22 = vmul.f32 %v3431_v30, %v2636_v0 }
 0x93d   :  { %v5619_v5 = vadd.f32 %v2638_v54, %v2637_v22 }
 0x93f   :  { %2658 = vmatmul.f32.vlgmr.msrb.gmra.mxu0 %v5619_v5  ;;  %2678 = vmatmul.f32.vlgmr.msra.gmra.mxu1 %v5619_v5 }
 0x940   :  { %2698 = vmatmul.f32.vlgmr.msra.gmra.mxu2 %v5619_v5  ;;  %2900 = vmatpush.msrb.mxu0 %v5532_v47  ;;  %v2992_v47 = vld [vmem:[%s5832_s10 + $0x78] sm:$0xff] }
 0x941   :  { %2997 = vmatpush.msra.mxu1 %v2992_v47 }
 0x942   :  { %2901 = vmatpush.msrb.mxu0 %v5537_v32  ;;  %v2991_v32 = vld [vmem:[%s5832_s10 + $0x70] sm:$0xff] }
 0x943   :  { %2998 = vmatpush.msra.mxu1 %v2991_v32 }
 0x944   :  { %2902 = vmatpush.msrb.mxu0 %v5542_v1  ;;  %v2990_v1 = vld [vmem:[%s5832_s10 + $0x68] sm:$0xff] }
 0x945   :  { %2999 = vmatpush.msra.mxu1 %v2990_v1 }
 0x946   :  { %2903 = vmatpush.msrb.mxu0 %v5547_v21 }
 0x948   :  { %2904 = vmatpush.msrb.mxu0 %v5552_v14 }
 0x94a   :  { %2905 = vmatpush.msrb.mxu0 %v5557_v45 }
 0x94c   :  { %2906 = vmatpush.msrb.mxu0 %v5562_v24 }
 0x94e   :  { %2907 = vmatpush.msrb.mxu0 %v5567_v15  ;;  %v2989_v15 = vld [vmem:[%s5832_s10 + $0x60] sm:$0xff] }
 0x94f   :  { %3000 = vmatpush.msra.mxu1 %v2989_v15 }
 0x950   :  { %2908 = vmatpush.msrb.mxu0 %v5572_v55 }
 0x952   :  { %2909 = vmatpush.msrb.mxu0 %v5577_v11 }
 0x954   :  { %2910 = vmatpush.msrb.mxu0 %v5582_v18  ;;  %v2988_v18 = vld [vmem:[%s5832_s10 + $0x58] sm:$0xff] }
 0x955   :  { %3001 = vmatpush.msra.mxu1 %v2988_v18 }
 0x956   :  { %2911 = vmatpush.msrb.mxu0 %v5587_v62 }
 0x958   :  { %2912 = vmatpush.msrb.mxu0 %v5592_v10 }
 0x95a   :  { %2913 = vmatpush.msrb.mxu0 %v5597_v6  ;;  %v2987_v6 = vld [vmem:[%s5832_s10 + $0x50] sm:$0xff] }
 0x95b   :  { %3002 = vmatpush.msra.mxu1 %v2987_v6 }
 0x95c   :  { %2914 = vmatpush.msrb.mxu0 %v5602_v17  ;;  %v2986_v17 = vld [vmem:[%s5832_s10 + $0x48] sm:$0xff] }
 0x95d   :  { %3003 = vmatpush.msra.mxu1 %v2986_v17 }
 0x95e   :  { %2915 = vmatpush.msrb.mxu0 %v5607_v42  ;;  %v2985_v42 = vld [vmem:[%s5832_s10 + $0x40] sm:$0xff] }
 0x95f   :  { %3004 = vmatpush.msra.mxu1 %v2985_v42 }
 0x961   :  { %3005 = vmatpush.msra.mxu1 %v2984_v20 }
 0x963   :  { %3006 = vmatpush.msra.mxu1 %v2983_v40 }
 0x965   :  { %3007 = vmatpush.msra.mxu1 %v2982_v34 }
 0x967   :  { %3008 = vmatpush.msra.mxu1 %v2981_v63 }
 0x969   :  { %3009 = vmatpush.msra.mxu1 %v2980_v12 }
 0x96b   :  { %3010 = vmatpush.msra.mxu1 %v2979_v25 }
 0x96d   :  { %3011 = vmatpush.msra.mxu1 %v2978_v46 }
 0x96f   :  { %3012 = vmatpush.msra.mxu1 %v2977_v23 }
 0x9bc   :  { %v2659_v21 = vpop.f32.mrf.mxu0  ;;  %v2679_v14 = vpop.f32.mrf.mxu1 }
 0x9bd   :  { %v2660_v45 = vadd.f32 %v2659_v21, %v6204_v8  ;;  %v2680_v24 = vadd.f32 %v2679_v14, %v6208_v41  ;;  %v6211_v21 = vld [vmem:[#allocation59_spill] sm:$0xff] }
 0x9bf   :  { %v2702_v55 = vadd.f32 %v2660_v45, %v6209_v58  ;;  %v2722_v11 = vadd.f32 %v2680_v24, %v6210_v27 }
 0x9c1   :  { %v3221_v62 = vmul.f32 -1.442695, %v2702_v55  ;;  %v3222_v10 = vmul.f32 -1.442695, %v2722_v11 }
 0x9c3   :  { %3432 = vpow2.f32 %v3221_v62  ;;  %v2699_v52 = vpop.f32.mrf.mxu2 }
 0x9c4   :  { %3434 = vpow2.f32 %v3222_v10  ;;  %v2700_v44 = vadd.f32 %v2699_v52, %v5277_v53 }
 0x9c9   :  { %v3433_v61 = vpop.eup %3432 }
 0x9ca   :  { %v3435_v26 = vpop.eup %3434  ;;  %v2706_v4 = vadd.f32 1.0, %v3433_v61 }
 0x9cb   :  { %v2726_v33 = vadd.f32 1.0, %v3435_v26 }
 0x9cc   :  { %3436 = vrcp.f32 %v2706_v4  ;;  %v2718_v48 = vand.u32 2147483648, %v2706_v4  ;;  %v2716_v28 = vand.u32 2147483647, %v2706_v4  ;;  %vm2712_vm12 = vweird.f32 %v2706_v4 }
 0x9cd   :  { %3438 = vrcp.f32 %v2726_v33  ;;  %v2738_v7 = vand.u32 2147483648, %v2726_v33  ;;  %vm2732_vm15 = vweird.f32 %v2726_v33  ;;  %v2736_v31 = vand.u32 2147483647, %v2726_v33 }
 0x9ce   :  { %v2719_v29 = vor.u32 1.1754944e-38, %v2718_v48  ;;  %vm2717_vm14 = vcmp.eq.f32.partialorder %v2716_v28, 8.507059e+37 }
 0x9cf   :  { %v2739_v0 = vor.u32 1.1754944e-38, %v2738_v7  ;;  %vm2737_vm3 = vcmp.eq.f32.partialorder %v2736_v31, 8.507059e+37 }
 0x9d2   :  { %v3437_v51 = vpop.eup %3436 }
 0x9d3   :  { %v3439_v59 = vpop.eup %3438  ;;  %v2708_v19 = vmul.f32 %v3437_v51, %v2706_v4  ;;  %vm2713_vm11 = vweird.f32 %v3437_v51 }
 0x9d4   :  { %v2728_v3 = vmul.f32 %v3439_v59, %v2726_v33  ;;  %vm2714_vm13 = vmor %vm2712_vm12, %vm2713_vm11  ;;  %vm2733_vm1 = vweird.f32 %v3439_v59 }
 0x9d5   :  { %v2709_v35 = vsub.f32 1.0, %v2708_v19  ;;  %vm2734_vm2 = vmor %vm2732_vm15, %vm2733_vm1 }
 0x9d6   :  { %v2729_v39 = vsub.f32 1.0, %v2728_v3 }
 0x9d7   :  { %v2710_v50 = vmul.f32 %v3437_v51, %v2709_v35 }
 0x9d8   :  { %v2730_v57 = vmul.f32 %v3439_v59, %v2729_v39 }
 0x9d9   :  { %v2711_v43 = vadd.f32 %v3437_v51, %v2710_v50 }
 0x9da   :  { %v2731_v37 = vadd.f32 %v3439_v59, %v2730_v57 }
 0x9db   :  { %v2715_v16 = vsel %vm2714_vm13, %v3437_v51, %v2711_v43 }
 0x9dc   :  { %v2720_v9 = vsel %vm2717_vm14, %v2719_v29, %v2715_v16  ;;  %v2735_v13 = vsel %vm2734_vm2, %v3439_v59, %v2731_v37 }
 0x9dd   :  { %v2742_v38 = vmul.f32 %v2720_v9, %v2700_v44  ;;  %v2740_v30 = vsel %vm2737_vm3, %v2739_v0, %v2735_v13 }
 0x9de   :  { %v2745_v22 = vsub.f32 1.0, %v2740_v30  ;;  %v2747_v32 = vmul.f32 %v2740_v30, %v5619_v5 }
 0x9df   :  { %v2743_v60 = vadd.f32 %v2742_v38, %v5280_v36 }
 0x9e1   :  { %3440 = vtanh.f32 %v2743_v60 }
 0x9e7   :  { %v3441_v54 = vpop.eup %3440 }
 0x9e8   :  { %v2746_v47 = vmul.f32 %v3441_v54, %v2745_v22 }
 0x9ea   :  { %v5695_v1 = vadd.f32 %v2747_v32, %v2746_v47 }
 0x9ec   :  { %2767 = vmatmul.f32.vlgmr.msra.gmra.mxu3 %v5695_v1  ;;  %2787 = vmatmul.f32.vlgmr.msra.gmra.mxu0 %v5695_v1 }
 0x9ed   :  { %2807 = vmatmul.f32.vlgmr.msrb.gmra.mxu1 %v5695_v1 }
 0x9f5   :  { %3013 = vmatmul.f32.vlgmr.msra.gmra.mxu1 %v6211_v21 }
 0x9fd   :  { %3016 = vmatmul.f32.gmra.mxu1 %v5343_v49  ;;  %v5711_v49 = vld [vmem:[%s5833_s11] ss:$0 sm:$0xff] }
 0xa05   :  { %3019 = vmatmul.f32.gmra.mxu1 %v5449_v56 }
 0xa0d   :  { %3022 = vmatmul.f32.gmra.mxu1 %v5527_v2 }
 0xa15   :  { %3025 = vmatmul.f32.gmra.mxu1 %v5619_v5 }
 0xa1d   :  { %3028 = vmatmul.f32.gmra.mxu1 %v5695_v1 }
 0xa69   :  { %v2788_v14 = vpop.f32.mrf.mxu0 }
 0xa6a   :  { %v2789_v45 = vadd.f32 %v2788_v14, %v6208_v41  ;;  %v2808_v24 = vpop.f32.mrf.mxu1 }
 0xa6b   :  { %v2809_v48 = vadd.f32 %v2808_v24, %v5277_v53 }
 0xa6c   :  { %v2831_v15 = vadd.f32 %v2789_v45, %v6210_v27 }
 0xa6e   :  { %v3224_v55 = vmul.f32 -1.442695, %v2831_v15 }
 0xa6f   :  { %v2768_v11 = vpop.f32.mrf.mxu3 }
 0xa70   :  { %3442 = vpow2.f32 %v3224_v55  ;;  %v2769_v56 = vadd.f32 %v2768_v11, %v6204_v8 }
 0xa72   :  { %v2811_v2 = vadd.f32 %v2769_v56, %v6209_v58  ;;  %v3014_v5 = vpop.f32.mrf.mxu1 }
 0xa73   :  { %v5716_v18 = vadd.f32 %v5711_v49, %v3014_v5 }
 0xa74   :  { %v3223_v62 = vmul.f32 -1.442695, %v2811_v2 }
 0xa75   :  { %3038 = vmax.xlane.f32.xlu0 %v5716_v18 }
 0xa76   :  { %v3443_v10 = vpop.eup %3442  ;;  %3444 = vpow2.f32 %v3223_v62 }
 0xa77   :  { %v2835_v6 = vadd.f32 1.0, %v3443_v10 }
 0xa79   :  { %3446 = vrcp.f32 %v2835_v6  ;;  %v2847_v52 = vand.u32 2147483648, %v2835_v6  ;;  %vm2841_vm0 = vweird.f32 %v2835_v6  ;;  %v2845_v29 = vand.u32 2147483647, %v2835_v6 }
 0xa7a   :  { %v3017_v17 = vpop.f32.mrf.mxu1 }
 0xa7b   :  { %v5720_v42 = vadd.f32 %v5711_v49, %v3017_v17  ;;  %v2848_v7 = vor.u32 1.1754944e-38, %v2847_v52  ;;  %vm2846_vm10 = vcmp.eq.f32.partialorder %v2845_v29, 8.507059e+37 }
 0xa7c   :  { %v3445_v20 = vpop.eup %3444 }
 0xa7d   :  { %v2815_v40 = vadd.f32 1.0, %v3445_v20  ;;  %3040 = vmax.xlane.f32.xlu0 %v5720_v42 }
 0xa7f   :  { %3448 = vrcp.f32 %v2815_v40  ;;  %v3447_v61 = vpop.eup %3446  ;;  %v2827_v46 = vand.u32 2147483648, %v2815_v40  ;;  %v2825_v59 = vand.u32 2147483647, %v2815_v40  ;;  %vm2821_vm5 = vweird.f32 %v2815_v40 }
 0xa80   :  { %v2837_v26 = vmul.f32 %v3447_v61, %v2835_v6  ;;  %vm2842_vm8 = vweird.f32 %v3447_v61 }
 0xa81   :  { %v2828_v39 = vor.u32 1.1754944e-38, %v2827_v46  ;;  %vm2826_vm7 = vcmp.eq.f32.partialorder %v2825_v59, 8.507059e+37  ;;  %vm2843_vm9 = vmor %vm2841_vm0, %vm2842_vm8 }
 0xa82   :  { %v3020_v34 = vpop.f32.mrf.mxu1  ;;  %v2838_v12 = vsub.f32 1.0, %v2837_v26 }
 0xa83   :  { %v5724_v4 = vadd.f32 %v5711_v49, %v3020_v34 }
 0xa84   :  { %v2839_v23 = vmul.f32 %v3447_v61, %v2838_v12 }
 0xa85   :  { %v3449_v33 = vpop.eup %3448  ;;  %3042 = vmax.xlane.f32.xlu1 %v5724_v4 }
 0xa86   :  { %v2817_v63 = vmul.f32 %v3449_v33, %v2815_v40  ;;  %vm2822_vm4 = vweird.f32 %v3449_v33  ;;  %v2840_v57 = vadd.f32 %v3447_v61, %v2839_v23 }
 0xa87   :  { %vm2823_vm6 = vmor %vm2821_vm5, %vm2822_vm4 }
 0xa88   :  { %v2818_v25 = vsub.f32 1.0, %v2817_v63  ;;  %v2844_v37 = vsel %vm2843_vm9, %v3447_v61, %v2840_v57 }
 0xa89   :  { %v2849_v38 = vsel %vm2846_vm10, %v2848_v7, %v2844_v37 }
 0xa8a   :  { %v2819_v51 = vmul.f32 %v3449_v33, %v2818_v25  ;;  %v3023_v19 = vpop.f32.mrf.mxu1  ;;  %v2854_v31 = vsub.f32 1.0, %v2849_v38  ;;  %v2856_v22 = vmul.f32 %v2849_v38, %v5695_v1 }
 0xa8b   :  { %v5728_v3 = vadd.f32 %v5711_v49, %v3023_v19 }
 0xa8c   :  { %v2820_v35 = vadd.f32 %v3449_v33, %v2819_v51 }
 0xa8d   :  { %3044 = vmax.xlane.f32.xlu1 %v5728_v3 }
 0xa8e   :  { %v2824_v50 = vsel %vm2823_vm6, %v3449_v33, %v2820_v35 }
 0xa8f   :  { %v2829_v28 = vsel %vm2826_vm7, %v2828_v39, %v2824_v50 }
 0xa90   :  { %v2851_v43 = vmul.f32 %v2829_v28, %v2809_v48 }
 0xa92   :  { %v3026_v44 = vpop.f32.mrf.mxu1  ;;  %v2852_v16 = vadd.f32 %v2851_v43, %v5280_v36 }
 0xa93   :  { %v5734_v9 = vadd.f32 %v5711_v49, %v3026_v44 }
 0xa94   :  { %3450 = vtanh.f32 %v2852_v16 }
 0xa95   :  { %3046 = vmax.xlane.f32.xlu2 %v5734_v9 }
 0xa9a   :  { %v3451_v60 = vpop.eup %3450  ;;  %v3029_v13 = vpop.f32.mrf.mxu1 }
 0xa9b   :  { %v5738_v0 = vadd.f32 %v5711_v49, %v3029_v13  ;;  %v2855_v30 = vmul.f32 %v3451_v60, %v2854_v31 }
 0xa9d   :  { %3048 = vmax.xlane.f32.xlu2 %v5738_v0  ;;  %v5742_v54 = vadd.f32 %v2856_v22, %v2855_v30 }
 0xa9f   :  { %2876 = vmatmul.f32.vlgmr.msrb.gmra.mxu2 %v5742_v54  ;;  %2896 = vmatmul.f32.vlgmr.msrb.gmra.mxu3 %v5742_v54 }
 0xaa0   :  { %2916 = vmatmul.f32.vlgmr.msrb.gmra.mxu0 %v5742_v54  ;;  %3031 = vmatmul.f32.gmra.mxu1 %v5742_v54 }
 0xae8   :  { %v5748_v47 = vpop.xlane.xlu0 %3038 }
 0xae9   :  { %v3054_v32 = vsub.f32 %v5716_v18, %v5748_v47 }
 0xaeb   :  { %v3062_v21 = vmul.f32 1.442695, %v3054_v32 }
 0xaed   :  { %3452 = vpow2.f32 %v3062_v21 }
 0xaf0   :  { %v5758_v11 = vpop.xlane.xlu0 %3040 }
 0xaf1   :  { %v3055_v56 = vsub.f32 %v5720_v42, %v5758_v11 }
 0xaf3   :  { %v3453_v1 = vpop.eup %3452  ;;  %v3064_v2 = vmul.f32 1.442695, %v3055_v56 }
 0xaf4   :  { %3078 = vadd.xlane.f32.xlu2 %v3453_v1 }
 0xaf8   :  { %v5752_v14 = vpop.xlane.xlu1 %3042 }
 0xb00   :  { %v5754_v45 = vpop.xlane.xlu1 %3044 }
 0xb01   :  { %v3057_v24 = vsub.f32 %v5728_v3, %v5754_v45 }
 0xb03   :  { %v3068_v15 = vmul.f32 1.442695, %v3057_v24 }
 0xb05   :  { %3454 = vpow2.f32 %v3068_v15 }
 0xb06   :  { %3456 = vpow2.f32 %v3064_v2 }
 0xb08   :  { %v5762_v5 = vpop.xlane.xlu2 %3046 }
 0xb09   :  { %v3058_v6 = vsub.f32 %v5734_v9, %v5762_v5 }
 0xb0b   :  { %v3455_v55 = vpop.eup %3454  ;;  %v3070_v34 = vmul.f32 1.442695, %v3058_v6 }
 0xb0c   :  { %3084 = vadd.xlane.f32.xlu2 %v3455_v55  ;;  %v3457_v63 = vpop.eup %3456 }
 0xb0d   :  { %3458 = vpow2.f32 %v3070_v34 }
 0xb10   :  { %v5777_v55 = vpop.xlane.xlu2 %3048 }
 0xb13   :  { %v3459_v46 = vpop.eup %3458 }
 0xb1d   :  { %v3032_v62 = vpop.f32.mrf.mxu1  ;;  %v2917_v57 = vpop.f32.mrf.mxu0 }
 0xb1e   :  { %v5765_v10 = vadd.f32 %v5711_v49, %v3032_v62  ;;  %v2918_v44 = vadd.f32 %v2917_v57, %v5277_v53 }
 0xb20   :  { %3050 = vmax.xlane.f32.xlu0 %v5765_v10 }
 0xb22   :  { %v2877_v17 = vpop.f32.mrf.mxu2  ;;  %v2897_v20 = vpop.f32.mrf.mxu3 }
 0xb23   :  { %v2878_v40 = vadd.f32 %v2877_v17, %v6204_v8  ;;  %v2898_v61 = vadd.f32 %v2897_v20, %v6208_v41 }
 0xb25   :  { %v2920_v26 = vadd.f32 %v2878_v40, %v6209_v58  ;;  %v2940_v33 = vadd.f32 %v2898_v61, %v6210_v27 }
 0xb27   :  { %v3225_v12 = vmul.f32 -1.442695, %v2920_v26  ;;  %v3226_v25 = vmul.f32 -1.442695, %v2940_v33 }
 0xb28   :  { %3080 = vadd.xlane.f32.xlu0 %v3457_v63 }
 0xb29   :  { %3460 = vpow2.f32 %v3225_v12 }
 0xb2a   :  { %3462 = vpow2.f32 %v3226_v25 }
 0xb2f   :  { %v3461_v51 = vpop.eup %3460 }
 0xb30   :  { %v3463_v59 = vpop.eup %3462  ;;  %v2924_v19 = vadd.f32 1.0, %v3461_v51  ;;  %3086 = vadd.xlane.f32.xlu0 %v3459_v46 }
 0xb31   :  { %v2944_v8 = vadd.f32 1.0, %v3463_v59 }
 0xb32   :  { %3464 = vrcp.f32 %v2924_v19  ;;  %v2936_v39 = vand.u32 2147483648, %v2924_v19  ;;  %v2934_v28 = vand.u32 2147483647, %v2924_v19  ;;  %vm2930_vm12 = vweird.f32 %v2924_v19 }
 0xb33   :  { %3466 = vrcp.f32 %v2944_v8  ;;  %v2956_v38 = vand.u32 2147483648, %v2944_v8  ;;  %vm2950_vm15 = vweird.f32 %v2944_v8  ;;  %v2954_v60 = vand.u32 2147483647, %v2944_v8 }
 0xb34   :  { %v2937_v29 = vor.u32 1.1754944e-38, %v2936_v39  ;;  %vm2935_vm14 = vcmp.eq.f32.partialorder %v2934_v28, 8.507059e+37 }
 0xb35   :  { %v2957_v22 = vor.u32 1.1754944e-38, %v2956_v38  ;;  %vm2955_vm3 = vcmp.eq.f32.partialorder %v2954_v60, 8.507059e+37 }
 0xb38   :  { %v3465_v41 = vpop.eup %3464 }
 0xb39   :  { %v3467_v23 = vpop.eup %3466  ;;  %v2926_v58 = vmul.f32 %v3465_v41, %v2924_v19  ;;  %vm2931_vm11 = vweird.f32 %v3465_v41 }
 0xb3a   :  { %v2946_v35 = vmul.f32 %v3467_v23, %v2944_v8  ;;  %vm2932_vm13 = vmor %vm2930_vm12, %vm2931_vm11  ;;  %vm2951_vm1 = vweird.f32 %v3467_v23  ;;  %v3056_v8 = vsub.f32 %v5724_v4, %v5752_v14 }
 0xb3b   :  { %v2927_v27 = vsub.f32 1.0, %v2926_v58  ;;  %vm2952_vm2 = vmor %vm2950_vm15, %vm2951_vm1 }
 0xb3c   :  { %v2947_v48 = vsub.f32 1.0, %v2946_v35 }
 0xb3d   :  { %v2928_v50 = vmul.f32 %v3465_v41, %v2927_v27 }
 0xb3e   :  { %v2948_v52 = vmul.f32 %v3467_v23, %v2947_v48 }
 0xb3f   :  { %v2929_v43 = vadd.f32 %v3465_v41, %v2928_v50 }
 0xb40   :  { %v2949_v7 = vadd.f32 %v3467_v23, %v2948_v52 }
 0xb41   :  { %v2933_v16 = vsel %vm2932_vm13, %v3465_v41, %v2929_v43 }
 0xb42   :  { %v2938_v37 = vsel %vm2935_vm14, %v2937_v29, %v2933_v16  ;;  %v2953_v30 = vsel %vm2952_vm2, %v3467_v23, %v2949_v7  ;;  %v3059_v23 = vsub.f32 %v5738_v0, %v5777_v55 }
 0xb43   :  { %v2960_v31 = vmul.f32 %v2938_v37, %v2918_v44  ;;  %v2958_v32 = vsel %vm2955_vm3, %v2957_v22, %v2953_v30 }
 0xb44   :  { %v2963_v21 = vsub.f32 1.0, %v2958_v32  ;;  %v2965_v24 = vmul.f32 %v2958_v32, %v5742_v54  ;;  %v3072_v58 = vmul.f32 1.442695, %v3059_v23 }
 0xb45   :  { %v2961_v13 = vadd.f32 %v2960_v31, %v5280_v36 }
 0xb47   :  { %3468 = vtanh.f32 %v2961_v13 }
 0xb4d   :  { %v3469_v1 = vpop.eup %3468 }
 0xb4e   :  { %v2964_v53 = vmul.f32 %v3469_v1, %v2963_v21 }
 0xb50   :  { %v2966_v15 = vadd.f32 %v2965_v24, %v2964_v53 }
 0xb52   :  { %3034 = vmatmul.f32.gmra.mxu1 %v2966_v15 }
 0xb67   :  { %v3079_v56 = vpop.xlane.xlu2 %3078 }
 0xb68   :  { %3470 = vlog2.f32 %v3079_v56 }
 0xb6e   :  { %v3471_v2 = vpop.eup %3470 }
 0xb6f   :  { %v3095_v62 = vmul.f32 0.6931472, %v3471_v2 }
 0xb71   :  { %v3110_v36 = vadd.f32 %v3095_v62, %v5748_v47 }
 0xb73   :  { %v3118_v6 = vsub.f32 %v5716_v18, %v3110_v36 }
 0xb75   :  { %3126 = vst [vmem:[%s5834_s12] sm:$0xff] %v3118_v6 }
 0xb7f   :  { %v3085_v17 = vpop.xlane.xlu2 %3084 }
 0xb80   :  { %3472 = vlog2.f32 %v3085_v17 }
 0xb86   :  { %v3473_v20 = vpop.eup %3472 }
 0xb87   :  { %v3101_v54 = vmul.f32 0.6931472, %v3473_v20 }
 0xb89   :  { %v3113_v40 = vadd.f32 %v3101_v54, %v5754_v45 }
 0xb8b   :  { %v3121_v61 = vsub.f32 %v5728_v3, %v3113_v40 }
 0xb8d   :  { %3129 = vst [vmem:[%s5834_s12 + $0x18] sm:$0xff] %v3121_v61 }
 0xb93   :  { %v3051_v34 = vpop.xlane.xlu0 %3050 }
 0xb94   :  { %v3060_v47 = vsub.f32 %v5765_v10, %v3051_v34 }
 0xb96   :  { %v3074_v18 = vmul.f32 1.442695, %v3060_v47 }
 0xb98   :  { %3474 = vpow2.f32 %v3074_v18 }
 0xb9b   :  { %v3081_v26 = vpop.xlane.xlu0 %3080 }
 0xb9c   :  { %3476 = vlog2.f32 %v3081_v26 }
 0xb9e   :  { %v3475_v33 = vpop.eup %3474 }
 0xb9f   :  { %3090 = vadd.xlane.f32.xlu2 %v3475_v33 }
 0xba2   :  { %v3477_v63 = vpop.eup %3476 }
 0xba3   :  { %v3097_v12 = vmul.f32 0.6931472, %v3477_v63  ;;  %v3087_v25 = vpop.xlane.xlu0 %3086 }
 0xba4   :  { %3478 = vlog2.f32 %v3087_v25 }
 0xba5   :  { %v3111_v45 = vadd.f32 %v3097_v12, %v5758_v11  ;;  %v3066_v11 = vmul.f32 1.442695, %v3056_v8 }
 0xba7   :  { %v3119_v3 = vsub.f32 %v5720_v42, %v3111_v45  ;;  %3480 = vpow2.f32 %v3066_v11 }
 0xba8   :  { %3482 = vpow2.f32 %v3072_v58 }
 0xba9   :  { %3127 = vst [vmem:[%s5834_s12 + $0x8] sm:$0xff] %v3119_v3 }
 0xbaa   :  { %v3479_v46 = vpop.eup %3478 }
 0xbab   :  { %v3103_v51 = vmul.f32 0.6931472, %v3479_v46 }
 0xbad   :  { %v3114_v59 = vadd.f32 %v3103_v51, %v5762_v5  ;;  %v3481_v5 = vpop.eup %3480 }
 0xbaf   :  { %v3122_v19 = vsub.f32 %v5734_v9, %v3114_v59  ;;  %v3483_v9 = vpop.eup %3482 }
 0xbb1   :  { %3130 = vst [vmem:[%s5834_s12 + $0x20] sm:$0xff] %v3122_v19 }
 0xbcf   :  { %v3035_v41 = vpop.f32.mrf.mxu1 }
 0xbd0   :  { %v3036_v42 = vadd.f32 %v5711_v49, %v3035_v41 }
 0xbd2   :  { %3052 = vmax.xlane.f32.xlu1 %v3036_v42 }
 0xbda   :  { %3082 = vadd.xlane.f32.xlu1 %v3481_v5 }
 0xbe2   :  { %3088 = vadd.xlane.f32.xlu1 %v3483_v9 }
 0xc12   :  { %v3091_v35 = vpop.xlane.xlu2 %3090 }
 0xc13   :  { %3484 = vlog2.f32 %v3091_v35 }
 0xc19   :  { %v3485_v27 = vpop.eup %3484 }
 0xc1a   :  { %v3107_v39 = vmul.f32 0.6931472, %v3485_v27 }
 0xc1c   :  { %v3116_v48 = vadd.f32 %v3107_v39, %v3051_v34 }
 0xc1e   :  { %v3124_v50 = vsub.f32 %v5765_v10, %v3116_v48 }
 0xc20   :  { %3132 = vst [vmem:[%s5834_s12 + $0x30] sm:$0xff] %v3124_v50 }
 0xc45   :  { %v3053_v49 = vpop.xlane.xlu1 %3052 }
 0xc46   :  { %v3061_v28 = vsub.f32 %v3036_v42, %v3053_v49 }
 0xc48   :  { %v3076_v57 = vmul.f32 1.442695, %v3061_v28 }
 0xc4a   :  { %3486 = vpow2.f32 %v3076_v57 }
 0xc4d   :  { %v3083_v52 = vpop.xlane.xlu1 %3082 }
 0xc4e   :  { %3488 = vlog2.f32 %v3083_v52 }
 0xc50   :  { %v3487_v43 = vpop.eup %3486 }
 0xc51   :  { %3092 = vadd.xlane.f32.xlu0 %v3487_v43 }
 0xc54   :  { %v3489_v29 = vpop.eup %3488 }
 0xc55   :  { %v3099_v44 = vmul.f32 0.6931472, %v3489_v29  ;;  %v3089_v16 = vpop.xlane.xlu1 %3088 }
 0xc56   :  { %3490 = vlog2.f32 %v3089_v16 }
 0xc57   :  { %v3112_v37 = vadd.f32 %v3099_v44, %v5752_v14 }
 0xc59   :  { %v3120_v10 = vsub.f32 %v5724_v4, %v3112_v37 }
 0xc5b   :  { %3128 = vst [vmem:[%s5834_s12 + $0x10] sm:$0xff] %v3120_v10 }
 0xc5c   :  { %v3491_v7 = vpop.eup %3490 }
 0xc5d   :  { %v3105_v38 = vmul.f32 0.6931472, %v3491_v7 }
 0xc5f   :  { %v3115_v31 = vadd.f32 %v3105_v38, %v5777_v55 }
 0xc61   :  { %v3123_v60 = vsub.f32 %v5738_v0, %v3115_v31 }
 0xc63   :  { %3131 = vst [vmem:[%s5834_s12 + $0x28] sm:$0xff] %v3123_v60 }
 0xcc4   :  { %v3093_v13 = vpop.xlane.xlu0 %3092 }
 0xcc5   :  { %3492 = vlog2.f32 %v3093_v13 }
 0xccb   :  { %v3493_v30 = vpop.eup %3492 }
 0xccc   :  { %v3109_v14 = vmul.f32 0.6931472, %v3493_v30 }
 0xcce   :  { %v3117_v22 = vadd.f32 %v3109_v14, %v3053_v49 }
 0xcd0   :  { %v3125_v4 = vsub.f32 %v3036_v42, %v3117_v22 }
 0xcd2   :  { %3133 = vst [vmem:[%s5834_s12 + $0x38] sm:$0xff] %v3125_v4 }
 0xcd3   :  { %3138 = vsyncpa [#allocation5], 1 }
 0xcd4   :  { %3139 = vsyncpa [#allocation7], 1 }
 0xcd5   :  { %3140 = vsyncpa [#allocation10], 1 }
 0xcd6   :  { %3141 = vsyncpa [#allocation13], 1 }

</bundles_post_ra>
